<compile_context>
chip_gen: v7x
topology: tpu7x:2x2x1
jax: 0.10.0
libtpu: 0.0.40
codegen_flags: <defaults>
</compile_context>

<pallas_src>
import functools

import jax
import jax.numpy as jnp
from jax.experimental import pallas as pl
from jax.experimental.pallas import tpu as pltpu


def _round_up(n, m):
    return ((n + m - 1) // m) * m


def _pad2(a, rows, cols):
    out = jnp.zeros((rows, cols), a.dtype)
    return out.at[: a.shape[0], : a.shape[1]].set(a)


def _has_native_bf16_vpu():
    """v6e (Trillium) and v7x have bf16 VALU; v5e and older do not."""
    try:
        kind = jax.devices()[0].device_kind.lower()
    except Exception:
        return False
    return ("v6" in kind) or ("v7" in kind) or ("trillium" in kind)


def din_base_kernel(idx_ref, tw1u_ref, tw1a_ref, b1_ref, w2_ref, b2_ref,
                    w3_ref, b3_ref, out_ref, *, vocab_tile, onehot_dtype):
    bb, L = idx_ref.shape
    Vp, H1p = tw1u_ref.shape
    L1 = L - 1
    TV = vocab_tile
    num_tiles = Vp // TV

    idx = idx_ref[...]                                     # [bb, L] int32
    behav = idx[:, :L1]                                    # [bb, L1]
    ad_id = idx[:, L1:L]                                   # [bb, 1]
    mask = (behav > 0).astype(jnp.float32)                 # [bb, L1]
    avg = jnp.mean(mask, axis=1, keepdims=True)            # [bb, 1]
    # weights are multiples of 1/L1; wrapper only selects bf16 when that is
    # exactly representable, so this cast is lossless.
    weight = (mask * avg).astype(onehot_dtype)             # [bb, L1]
    zero = jnp.zeros((), onehot_dtype)

    # Hoisted iota (JAX does not CSE broadcast_in_dim inside the loop).
    iota0 = jax.lax.broadcasted_iota(jnp.int32, (bb, TV), 1)

    def tile_body(k, h1):
        v0 = pl.multiple_of(k * TV, TV)
        b_loc = behav - v0                                 # shift ids, not iota
        a_loc = ad_id - v0
        # weighted one-hot "counts" for this vocab tile; seeded with l=0 term.
        counts = jnp.where(iota0 == b_loc[:, 0:1], weight[:, 0:1], zero)
        for l in range(1, L1):                             # small, unrolled
            counts = counts + jnp.where(iota0 == b_loc[:, l:l + 1],
                                        weight[:, l:l + 1], zero)
        ad_oh = (iota0 == a_loc).astype(jnp.float32)       # [bb, TV]
        tw_u = tw1u_ref[pl.ds(v0, TV), :]                  # [TV, H1p]
        tw_a = tw1a_ref[pl.ds(v0, TV), :]
        h1 = h1 + jnp.dot(counts.astype(jnp.float32), tw_u,
                          preferred_element_type=jnp.float32)
        h1 = h1 + jnp.dot(ad_oh, tw_a, preferred_element_type=jnp.float32)
        return h1

    h1 = jax.lax.fori_loop(0, num_tiles, tile_body,
                           jnp.zeros((bb, H1p), jnp.float32), unroll=True)

    h1 = jnp.maximum(h1 + b1_ref[...], 0.0)
    h2 = jnp.maximum(jnp.dot(h1, w2_ref[...],
                             preferred_element_type=jnp.float32) + b2_ref[...],
                     0.0)
    h3 = jnp.dot(h2, w3_ref[...], preferred_element_type=jnp.float32) + b3_ref[...]
    out_ref[...] = 1.0 / (1.0 + jnp.exp(-h3))              # sigmoid (exact)


def din_base_forward(x, emb_table, params, *, block_b=512, vocab_tile=256):
    """x: [B, L] int32 ids (last column = ad id).  Returns [B, 1] float32."""
    w1, b1, w2, b2, w3, b3 = params
    vocab, E = emb_table.shape
    B, L = x.shape
    L1 = L - 1

    # ----- batch tiling: multiple of 8; >= 2 grid blocks when batch allows,
    # so v7x's two TensorCores both get work under the "parallel" axis -----
    bb = min(block_b, _round_up(B, 8))
    Bp = _round_up(B, bb)
    if Bp // bb < 2 and Bp >= 16:
        bb = _round_up(Bp // 2, 8)
        Bp = _round_up(B, bb)
    x = x.astype(jnp.int32)
    if Bp != B:
        x = jnp.pad(x, ((0, Bp - B), (0, 0)))              # padded rows: id==0

    # ----- lane-dense padded dims -----
    H1, H2 = w1.shape[1], w2.shape[1]
    H1p, H2p, OUT = _round_up(H1, 128), _round_up(H2, 128), 128
    TV = min(vocab_tile, _round_up(vocab, 128))
    Vp = _round_up(vocab, TV)

    # ----- fold the embedding table into the first MLP layer -----
    f32 = jnp.float32
    hi = jax.lax.Precision.HIGHEST
    tw1u = _pad2(jnp.dot(emb_table.astype(f32), w1[:E].astype(f32), precision=hi),
                 Vp, H1p)
    tw1a = _pad2(jnp.dot(emb_table.astype(f32), w1[E:].astype(f32), precision=hi),
                 Vp, H1p)
    b1p = _pad2(b1.reshape(1, -1).astype(f32), 1, H1p)
    w2p = _pad2(w2.astype(f32), H1p, H2p)
    b2p = _pad2(b2.reshape(1, -1).astype(f32), 1, H2p)
    w3p = _pad2(w3.astype(f32), H2p, OUT)                  # lane-dense out store
    b3p = _pad2(b3.reshape(1, -1).astype(f32), 1, OUT)

    # bf16 one-hot build only where it is exact (L1 a power of two) AND the
    # chip has a native bf16 VPU (v6e / v7x).  v5e stays f32.
    use_bf16 = _has_native_bf16_vpu() and L1 > 0 and (L1 & (L1 - 1)) == 0
    onehot_dtype = jnp.bfloat16 if use_bf16 else jnp.float32

    const = lambda shape: pl.BlockSpec(shape, lambda i: (0, 0))
    grid = (Bp // bb,)

    flops = 2 * Bp * (2 * Vp * H1p + H1p * H2p + H2p * OUT)
    bytes_accessed = (Bp * L * 4 + 2 * Vp * H1p * 4
                      + (H1p * H2p + H2p * OUT + H1p + H2p + OUT) * 4
                      + Bp * OUT * 4)

    kernel = functools.partial(din_base_kernel,
                               vocab_tile=TV, onehot_dtype=onehot_dtype)

    out = pl.pallas_call(
        kernel,
        out_shape=jax.ShapeDtypeStruct((Bp, OUT), jnp.float32),
        grid=grid,
        in_specs=[
            pl.BlockSpec((bb, L), lambda i: (i, 0)),       # ids: tiled over batch
            const((Vp, H1p)), const((Vp, H1p)),            # folded tables: resident
            const((1, H1p)),
            const((H1p, H2p)), const((1, H2p)),
            const((H2p, OUT)), const((1, OUT)),
        ],
        out_specs=pl.BlockSpec((bb, OUT), lambda i: (i, 0)),
        compiler_params=pltpu.CompilerParams(
            dimension_semantics=("parallel",)),            # megacore on v7x
        cost_estimate=pl.CostEstimate(
            flops=flops, transcendentals=Bp * OUT,
            bytes_accessed=bytes_accessed),
    )(x, tw1u, tw1a, b1p, w2p, b2p, w3p, b3p)

    return out[:B, :1]


def din_base_reference(x, emb_table, params):
    """Pure-JAX reference mirroring the PyTorch forward exactly."""
    w1, b1, w2, b2, w3, b3 = params
    behaviors = x[:, :-1]
    mask = (behaviors > 0).astype(jnp.float32)[..., None]          # [B, L1, 1]
    avg = jnp.mean(mask, axis=1, keepdims=True)                    # [B, 1, 1]
    weight = mask * avg
    ub = jnp.sum(emb_table[behaviors] * weight, axis=1)            # [B, E]
    ad_emb = emb_table[x[:, -1]]                                   # [B, E]
    concat = jnp.concatenate([ub, ad_emb], axis=-1)                # [B, 2E]
    h1 = jnp.maximum(concat @ w1 + b1, 0.0)
    h2 = jnp.maximum(h1 @ w2 + b2, 0.0)
    h3 = h2 @ w3 + b3
    return jax.nn.sigmoid(h3)


if __name__ == "__main__":
    # small, deterministic setup
    vocab = 1000          # feature_nums[0]
    emb_dim = 32
    B, L = 20, 9          # 8 behaviors + 1 ad id; B=20 exercises grid + padding

    key = jax.random.PRNGKey(0)
    k_emb, k_idx, k1, k2, k3 = jax.random.split(key, 5)

    emb_table = jax.random.normal(k_emb, (vocab, emb_dim), dtype=jnp.float32)

    # MLP params for DenseLayer([2*emb_dim, 120, 60, 1]), stored [in, out]
    def lin(k, fan_in, fan_out):
        s = 1.0 / jnp.sqrt(fan_in)
        return jax.random.uniform(k, (fan_in, fan_out), jnp.float32, -s, s)

    params = (
        lin(k1, 2 * emb_dim, 120), jnp.zeros((120,), jnp.float32),
        lin(k2, 120, 60),          jnp.zeros((60,), jnp.float32),
        lin(k3, 60, 1),            jnp.zeros((1,), jnp.float32),
    )

    # integer input ids; include some zeros so the mask path is exercised
    x = jax.random.randint(k_idx, (B, L), 0, vocab, dtype=jnp.int32)
    x = x.at[0, :3].set(0).at[3, 1].set(0)

    ref = din_base_reference(x, emb_table, params)

    # default block_b (auto-splits batch into >= 2 grid blocks)
    out = jax.block_until_ready(din_base_forward(x, emb_table, params))
    assert out.shape == (B, 1)
    assert jnp.allclose(out, ref, atol=1e-5, rtol=1e-5), (out, ref)

    # small explicit block to exercise multi-block grid + batch padding
    out2 = jax.block_until_ready(din_base_forward(x, emb_table, params, block_b=8))
    assert out2.shape == (B, 1)
    assert jnp.allclose(out2, ref, atol=1e-5, rtol=1e-5), (out2, ref)

    print("KERNEL_OK")
</pallas_src>

<mosaic_0001>
module attributes {stable_mosaic.version = 11 : i64} {
  func.func @din_base_kernel(%arg0: i32, %arg1: memref<16x9xi32, #tpu.memory_space<vmem>>, %arg2: memref<1024x128xf32, #tpu.memory_space<vmem>>, %arg3: memref<1024x128xf32, #tpu.memory_space<vmem>>, %arg4: memref<1x128xf32, #tpu.memory_space<vmem>>, %arg5: memref<128x128xf32, #tpu.memory_space<vmem>>, %arg6: memref<1x128xf32, #tpu.memory_space<vmem>>, %arg7: memref<128x128xf32, #tpu.memory_space<vmem>>, %arg8: memref<1x128xf32, #tpu.memory_space<vmem>>, %arg9: memref<16x128xf32, #tpu.memory_space<vmem>>) attributes {dimension_semantics = [#tpu.dimension_semantics<parallel>], iteration_bounds = array<i64: 2>, scalar_prefetch = 0 : i64, scratch_operands = 0 : i64, tpu.core_type = #tpu.core_type<tc>, window_params = [{transform_indices = @transform_0, window_bounds = array<i64: 16, 9>}, {pipeline_mode = #tpu.pipeline_mode<synchronous>, transform_indices = @transform_1, window_bounds = array<i64: 1024, 128>}, {pipeline_mode = #tpu.pipeline_mode<synchronous>, transform_indices = @transform_2, window_bounds = array<i64: 1024, 128>}, {pipeline_mode = #tpu.pipeline_mode<synchronous>, transform_indices = @transform_3, window_bounds = array<i64: 1, 128>}, {pipeline_mode = #tpu.pipeline_mode<synchronous>, transform_indices = @transform_4, window_bounds = array<i64: 128, 128>}, {pipeline_mode = #tpu.pipeline_mode<synchronous>, transform_indices = @transform_5, window_bounds = array<i64: 1, 128>}, {pipeline_mode = #tpu.pipeline_mode<synchronous>, transform_indices = @transform_6, window_bounds = array<i64: 128, 128>}, {pipeline_mode = #tpu.pipeline_mode<synchronous>, transform_indices = @transform_7, window_bounds = array<i64: 1, 128>}, {transform_indices = @transform_8, window_bounds = array<i64: 16, 128>}]} {
    %c0 = arith.constant 0 : index
    %c0_0 = arith.constant 0 : index
    %0 = vector.load %arg1[%c0, %c0_0] : memref<16x9xi32, #tpu.memory_space<vmem>>, vector<16x9xi32>
    %1 = vector.extract_strided_slice %0 {offsets = [0, 0], sizes = [16, 8], strides = [1, 1]} : vector<16x9xi32> to vector<16x8xi32>
    %2 = vector.extract_strided_slice %0 {offsets = [0, 8], sizes = [16, 1], strides = [1, 1]} : vector<16x9xi32> to vector<16x1xi32>
    %c0_i32 = arith.constant 0 : i32
    %3 = vector.broadcast %c0_i32 : i32 to vector<16x8xi32>
    %4 = arith.cmpi sgt, %1, %3 : vector<16x8xi32>
    %5 = arith.extui %4 : vector<16x8xi1> to vector<16x8xi32>
    %6 = arith.sitofp %5 : vector<16x8xi32> to vector<16x8xf32>
    %cst = arith.constant dense<0.000000e+00> : vector<16xf32>
    %7 = vector.multi_reduction <add>, %6, %cst [1] : vector<16x8xf32> to vector<16xf32>
    %8 = vector.shape_cast %7 : vector<16xf32> to vector<16x1xf32>
    %cst_1 = arith.constant 8.000000e+00 : f32
    %9 = vector.broadcast %cst_1 : f32 to vector<16x1xf32>
    %10 = arith.divf %8, %9 : vector<16x1xf32>
    %11 = vector.broadcast %10 : vector<16x1xf32> to vector<16x8xf32>
    %12 = arith.mulf %6, %11 : vector<16x8xf32>
    %13 = tpu.iota {dimensions = array<i32: 1>} : vector<16x256xi32>
    %cst_2 = arith.constant 0.000000e+00 : f32
    %14 = vector.broadcast %cst_2 : f32 to vector<16x128xf32>
    %cst_3 = arith.constant 0.000000e+00 : f32
    %c0_i32_4 = arith.constant 0 : i32
    %c256_i32 = arith.constant 256 : i32
    %15 = arith.muli %c0_i32_4, %c256_i32 : i32
    %16 = tpu.assume_multiple %15, 256 : i32
    %17 = vector.broadcast %16 : i32 to vector<16x8xi32>
    %18 = arith.subi %1, %17 : vector<16x8xi32>
    %19 = vector.broadcast %16 : i32 to vector<16x1xi32>
    %20 = arith.subi %2, %19 : vector<16x1xi32>
    %21 = vector.extract_strided_slice %18 {offsets = [0, 0], sizes = [16, 1], strides = [1, 1]} : vector<16x8xi32> to vector<16x1xi32>
    %22 = vector.broadcast %21 : vector<16x1xi32> to vector<16x256xi32>
    %23 = arith.cmpi eq, %13, %22 : vector<16x256xi32>
    %24 = vector.extract_strided_slice %12 {offsets = [0, 0], sizes = [16, 1], strides = [1, 1]} : vector<16x8xf32> to vector<16x1xf32>
    %25 = vector.shape_cast %24 : vector<16x1xf32> to vector<16x1xf32>
    %26 = vector.broadcast %25 : vector<16x1xf32> to vector<16x256xf32>
    %27 = vector.broadcast %cst_3 : f32 to vector<16x256xf32>
    %28 = arith.select %23, %26, %27 : vector<16x256xi1>, vector<16x256xf32>
    %29 = vector.extract_strided_slice %18 {offsets = [0, 1], sizes = [16, 1], strides = [1, 1]} : vector<16x8xi32> to vector<16x1xi32>
    %30 = vector.broadcast %29 : vector<16x1xi32> to vector<16x256xi32>
    %31 = arith.cmpi eq, %13, %30 : vector<16x256xi32>
    %32 = vector.extract_strided_slice %12 {offsets = [0, 1], sizes = [16, 1], strides = [1, 1]} : vector<16x8xf32> to vector<16x1xf32>
    %33 = vector.shape_cast %32 : vector<16x1xf32> to vector<16x1xf32>
    %34 = vector.broadcast %33 : vector<16x1xf32> to vector<16x256xf32>
    %35 = vector.broadcast %cst_3 : f32 to vector<16x256xf32>
    %36 = arith.select %31, %34, %35 : vector<16x256xi1>, vector<16x256xf32>
    %37 = arith.addf %28, %36 : vector<16x256xf32>
    %38 = vector.extract_strided_slice %18 {offsets = [0, 2], sizes = [16, 1], strides = [1, 1]} : vector<16x8xi32> to vector<16x1xi32>
    %39 = vector.broadcast %38 : vector<16x1xi32> to vector<16x256xi32>
    %40 = arith.cmpi eq, %13, %39 : vector<16x256xi32>
    %41 = vector.extract_strided_slice %12 {offsets = [0, 2], sizes = [16, 1], strides = [1, 1]} : vector<16x8xf32> to vector<16x1xf32>
    %42 = vector.shape_cast %41 : vector<16x1xf32> to vector<16x1xf32>
    %43 = vector.broadcast %42 : vector<16x1xf32> to vector<16x256xf32>
    %44 = vector.broadcast %cst_3 : f32 to vector<16x256xf32>
    %45 = arith.select %40, %43, %44 : vector<16x256xi1>, vector<16x256xf32>
    %46 = arith.addf %37, %45 : vector<16x256xf32>
    %47 = vector.extract_strided_slice %18 {offsets = [0, 3], sizes = [16, 1], strides = [1, 1]} : vector<16x8xi32> to vector<16x1xi32>
    %48 = vector.broadcast %47 : vector<16x1xi32> to vector<16x256xi32>
    %49 = arith.cmpi eq, %13, %48 : vector<16x256xi32>
    %50 = vector.extract_strided_slice %12 {offsets = [0, 3], sizes = [16, 1], strides = [1, 1]} : vector<16x8xf32> to vector<16x1xf32>
    %51 = vector.shape_cast %50 : vector<16x1xf32> to vector<16x1xf32>
    %52 = vector.broadcast %51 : vector<16x1xf32> to vector<16x256xf32>
    %53 = vector.broadcast %cst_3 : f32 to vector<16x256xf32>
    %54 = arith.select %49, %52, %53 : vector<16x256xi1>, vector<16x256xf32>
    %55 = arith.addf %46, %54 : vector<16x256xf32>
    %56 = vector.extract_strided_slice %18 {offsets = [0, 4], sizes = [16, 1], strides = [1, 1]} : vector<16x8xi32> to vector<16x1xi32>
    %57 = vector.broadcast %56 : vector<16x1xi32> to vector<16x256xi32>
    %58 = arith.cmpi eq, %13, %57 : vector<16x256xi32>
    %59 = vector.extract_strided_slice %12 {offsets = [0, 4], sizes = [16, 1], strides = [1, 1]} : vector<16x8xf32> to vector<16x1xf32>
    %60 = vector.shape_cast %59 : vector<16x1xf32> to vector<16x1xf32>
    %61 = vector.broadcast %60 : vector<16x1xf32> to vector<16x256xf32>
    %62 = vector.broadcast %cst_3 : f32 to vector<16x256xf32>
    %63 = arith.select %58, %61, %62 : vector<16x256xi1>, vector<16x256xf32>
    %64 = arith.addf %55, %63 : vector<16x256xf32>
    %65 = vector.extract_strided_slice %18 {offsets = [0, 5], sizes = [16, 1], strides = [1, 1]} : vector<16x8xi32> to vector<16x1xi32>
    %66 = vector.broadcast %65 : vector<16x1xi32> to vector<16x256xi32>
    %67 = arith.cmpi eq, %13, %66 : vector<16x256xi32>
    %68 = vector.extract_strided_slice %12 {offsets = [0, 5], sizes = [16, 1], strides = [1, 1]} : vector<16x8xf32> to vector<16x1xf32>
    %69 = vector.shape_cast %68 : vector<16x1xf32> to vector<16x1xf32>
    %70 = vector.broadcast %69 : vector<16x1xf32> to vector<16x256xf32>
    %71 = vector.broadcast %cst_3 : f32 to vector<16x256xf32>
    %72 = arith.select %67, %70, %71 : vector<16x256xi1>, vector<16x256xf32>
    %73 = arith.addf %64, %72 : vector<16x256xf32>
    %74 = vector.extract_strided_slice %18 {offsets = [0, 6], sizes = [16, 1], strides = [1, 1]} : vector<16x8xi32> to vector<16x1xi32>
    %75 = vector.broadcast %74 : vector<16x1xi32> to vector<16x256xi32>
    %76 = arith.cmpi eq, %13, %75 : vector<16x256xi32>
    %77 = vector.extract_strided_slice %12 {offsets = [0, 6], sizes = [16, 1], strides = [1, 1]} : vector<16x8xf32> to vector<16x1xf32>
    %78 = vector.shape_cast %77 : vector<16x1xf32> to vector<16x1xf32>
    %79 = vector.broadcast %78 : vector<16x1xf32> to vector<16x256xf32>
    %80 = vector.broadcast %cst_3 : f32 to vector<16x256xf32>
    %81 = arith.select %76, %79, %80 : vector<16x256xi1>, vector<16x256xf32>
    %82 = arith.addf %73, %81 : vector<16x256xf32>
    %83 = vector.extract_strided_slice %18 {offsets = [0, 7], sizes = [16, 1], strides = [1, 1]} : vector<16x8xi32> to vector<16x1xi32>
    %84 = vector.broadcast %83 : vector<16x1xi32> to vector<16x256xi32>
    %85 = arith.cmpi eq, %13, %84 : vector<16x256xi32>
    %86 = vector.extract_strided_slice %12 {offsets = [0, 7], sizes = [16, 1], strides = [1, 1]} : vector<16x8xf32> to vector<16x1xf32>
    %87 = vector.shape_cast %86 : vector<16x1xf32> to vector<16x1xf32>
    %88 = vector.broadcast %87 : vector<16x1xf32> to vector<16x256xf32>
    %89 = vector.broadcast %cst_3 : f32 to vector<16x256xf32>
    %90 = arith.select %85, %88, %89 : vector<16x256xi1>, vector<16x256xf32>
    %91 = arith.addf %82, %90 : vector<16x256xf32>
    %92 = vector.broadcast %20 : vector<16x1xi32> to vector<16x256xi32>
    %93 = arith.cmpi eq, %13, %92 : vector<16x256xi32>
    %94 = arith.extui %93 : vector<16x256xi1> to vector<16x256xi32>
    %95 = arith.sitofp %94 : vector<16x256xi32> to vector<16x256xf32>
    %96 = arith.index_cast %16 : i32 to index
    %c0_5 = arith.constant 0 : index
    %97 = vector.load %arg2[%96, %c0_5] : memref<1024x128xf32, #tpu.memory_space<vmem>>, vector<256x128xf32>
    %98 = arith.index_cast %16 : i32 to index
    %c0_6 = arith.constant 0 : index
    %99 = vector.load %arg3[%98, %c0_6] : memref<1024x128xf32, #tpu.memory_space<vmem>>, vector<256x128xf32>
    %cst_7 = arith.constant dense<0.000000e+00> : vector<16x128xf32>
    %100 = tpu.matmul %91, %97, %cst_7 {dimension_numbers = #tpu.dot_dimension_numbers<[1], [0], [0], [1], [0, 0, 1, 1], [], []>} : vector<16x256xf32>, vector<256x128xf32>, vector<16x128xf32> -> vector<16x128xf32>
    %101 = arith.addf %14, %100 : vector<16x128xf32>
    %cst_8 = arith.constant dense<0.000000e+00> : vector<16x128xf32>
    %102 = tpu.matmul %95, %99, %cst_8 {dimension_numbers = #tpu.dot_dimension_numbers<[1], [0], [0], [1], [0, 0, 1, 1], [], []>} : vector<16x256xf32>, vector<256x128xf32>, vector<16x128xf32> -> vector<16x128xf32>
    %103 = arith.addf %101, %102 : vector<16x128xf32>
    %c1_i32 = arith.constant 1 : i32
    %c256_i32_9 = arith.constant 256 : i32
    %104 = arith.muli %c1_i32, %c256_i32_9 : i32
    %105 = tpu.assume_multiple %104, 256 : i32
    %106 = vector.broadcast %105 : i32 to vector<16x8xi32>
    %107 = arith.subi %1, %106 : vector<16x8xi32>
    %108 = vector.broadcast %105 : i32 to vector<16x1xi32>
    %109 = arith.subi %2, %108 : vector<16x1xi32>
    %110 = vector.extract_strided_slice %107 {offsets = [0, 0], sizes = [16, 1], strides = [1, 1]} : vector<16x8xi32> to vector<16x1xi32>
    %111 = vector.broadcast %110 : vector<16x1xi32> to vector<16x256xi32>
    %112 = arith.cmpi eq, %13, %111 : vector<16x256xi32>
    %113 = vector.extract_strided_slice %12 {offsets = [0, 0], sizes = [16, 1], strides = [1, 1]} : vector<16x8xf32> to vector<16x1xf32>
    %114 = vector.shape_cast %113 : vector<16x1xf32> to vector<16x1xf32>
    %115 = vector.broadcast %114 : vector<16x1xf32> to vector<16x256xf32>
    %116 = vector.broadcast %cst_3 : f32 to vector<16x256xf32>
    %117 = arith.select %112, %115, %116 : vector<16x256xi1>, vector<16x256xf32>
    %118 = vector.extract_strided_slice %107 {offsets = [0, 1], sizes = [16, 1], strides = [1, 1]} : vector<16x8xi32> to vector<16x1xi32>
    %119 = vector.broadcast %118 : vector<16x1xi32> to vector<16x256xi32>
    %120 = arith.cmpi eq, %13, %119 : vector<16x256xi32>
    %121 = vector.extract_strided_slice %12 {offsets = [0, 1], sizes = [16, 1], strides = [1, 1]} : vector<16x8xf32> to vector<16x1xf32>
    %122 = vector.shape_cast %121 : vector<16x1xf32> to vector<16x1xf32>
    %123 = vector.broadcast %122 : vector<16x1xf32> to vector<16x256xf32>
    %124 = vector.broadcast %cst_3 : f32 to vector<16x256xf32>
    %125 = arith.select %120, %123, %124 : vector<16x256xi1>, vector<16x256xf32>
    %126 = arith.addf %117, %125 : vector<16x256xf32>
    %127 = vector.extract_strided_slice %107 {offsets = [0, 2], sizes = [16, 1], strides = [1, 1]} : vector<16x8xi32> to vector<16x1xi32>
    %128 = vector.broadcast %127 : vector<16x1xi32> to vector<16x256xi32>
    %129 = arith.cmpi eq, %13, %128 : vector<16x256xi32>
    %130 = vector.extract_strided_slice %12 {offsets = [0, 2], sizes = [16, 1], strides = [1, 1]} : vector<16x8xf32> to vector<16x1xf32>
    %131 = vector.shape_cast %130 : vector<16x1xf32> to vector<16x1xf32>
    %132 = vector.broadcast %131 : vector<16x1xf32> to vector<16x256xf32>
    %133 = vector.broadcast %cst_3 : f32 to vector<16x256xf32>
    %134 = arith.select %129, %132, %133 : vector<16x256xi1>, vector<16x256xf32>
    %135 = arith.addf %126, %134 : vector<16x256xf32>
    %136 = vector.extract_strided_slice %107 {offsets = [0, 3], sizes = [16, 1], strides = [1, 1]} : vector<16x8xi32> to vector<16x1xi32>
    %137 = vector.broadcast %136 : vector<16x1xi32> to vector<16x256xi32>
    %138 = arith.cmpi eq, %13, %137 : vector<16x256xi32>
    %139 = vector.extract_strided_slice %12 {offsets = [0, 3], sizes = [16, 1], strides = [1, 1]} : vector<16x8xf32> to vector<16x1xf32>
    %140 = vector.shape_cast %139 : vector<16x1xf32> to vector<16x1xf32>
    %141 = vector.broadcast %140 : vector<16x1xf32> to vector<16x256xf32>
    %142 = vector.broadcast %cst_3 : f32 to vector<16x256xf32>
    %143 = arith.select %138, %141, %142 : vector<16x256xi1>, vector<16x256xf32>
    %144 = arith.addf %135, %143 : vector<16x256xf32>
    %145 = vector.extract_strided_slice %107 {offsets = [0, 4], sizes = [16, 1], strides = [1, 1]} : vector<16x8xi32> to vector<16x1xi32>
    %146 = vector.broadcast %145 : vector<16x1xi32> to vector<16x256xi32>
    %147 = arith.cmpi eq, %13, %146 : vector<16x256xi32>
    %148 = vector.extract_strided_slice %12 {offsets = [0, 4], sizes = [16, 1], strides = [1, 1]} : vector<16x8xf32> to vector<16x1xf32>
    %149 = vector.shape_cast %148 : vector<16x1xf32> to vector<16x1xf32>
    %150 = vector.broadcast %149 : vector<16x1xf32> to vector<16x256xf32>
    %151 = vector.broadcast %cst_3 : f32 to vector<16x256xf32>
    %152 = arith.select %147, %150, %151 : vector<16x256xi1>, vector<16x256xf32>
    %153 = arith.addf %144, %152 : vector<16x256xf32>
    %154 = vector.extract_strided_slice %107 {offsets = [0, 5], sizes = [16, 1], strides = [1, 1]} : vector<16x8xi32> to vector<16x1xi32>
    %155 = vector.broadcast %154 : vector<16x1xi32> to vector<16x256xi32>
    %156 = arith.cmpi eq, %13, %155 : vector<16x256xi32>
    %157 = vector.extract_strided_slice %12 {offsets = [0, 5], sizes = [16, 1], strides = [1, 1]} : vector<16x8xf32> to vector<16x1xf32>
    %158 = vector.shape_cast %157 : vector<16x1xf32> to vector<16x1xf32>
    %159 = vector.broadcast %158 : vector<16x1xf32> to vector<16x256xf32>
    %160 = vector.broadcast %cst_3 : f32 to vector<16x256xf32>
    %161 = arith.select %156, %159, %160 : vector<16x256xi1>, vector<16x256xf32>
    %162 = arith.addf %153, %161 : vector<16x256xf32>
    %163 = vector.extract_strided_slice %107 {offsets = [0, 6], sizes = [16, 1], strides = [1, 1]} : vector<16x8xi32> to vector<16x1xi32>
    %164 = vector.broadcast %163 : vector<16x1xi32> to vector<16x256xi32>
    %165 = arith.cmpi eq, %13, %164 : vector<16x256xi32>
    %166 = vector.extract_strided_slice %12 {offsets = [0, 6], sizes = [16, 1], strides = [1, 1]} : vector<16x8xf32> to vector<16x1xf32>
    %167 = vector.shape_cast %166 : vector<16x1xf32> to vector<16x1xf32>
    %168 = vector.broadcast %167 : vector<16x1xf32> to vector<16x256xf32>
    %169 = vector.broadcast %cst_3 : f32 to vector<16x256xf32>
    %170 = arith.select %165, %168, %169 : vector<16x256xi1>, vector<16x256xf32>
    %171 = arith.addf %162, %170 : vector<16x256xf32>
    %172 = vector.extract_strided_slice %107 {offsets = [0, 7], sizes = [16, 1], strides = [1, 1]} : vector<16x8xi32> to vector<16x1xi32>
    %173 = vector.broadcast %172 : vector<16x1xi32> to vector<16x256xi32>
    %174 = arith.cmpi eq, %13, %173 : vector<16x256xi32>
    %175 = vector.extract_strided_slice %12 {offsets = [0, 7], sizes = [16, 1], strides = [1, 1]} : vector<16x8xf32> to vector<16x1xf32>
    %176 = vector.shape_cast %175 : vector<16x1xf32> to vector<16x1xf32>
    %177 = vector.broadcast %176 : vector<16x1xf32> to vector<16x256xf32>
    %178 = vector.broadcast %cst_3 : f32 to vector<16x256xf32>
    %179 = arith.select %174, %177, %178 : vector<16x256xi1>, vector<16x256xf32>
    %180 = arith.addf %171, %179 : vector<16x256xf32>
    %181 = vector.broadcast %109 : vector<16x1xi32> to vector<16x256xi32>
    %182 = arith.cmpi eq, %13, %181 : vector<16x256xi32>
    %183 = arith.extui %182 : vector<16x256xi1> to vector<16x256xi32>
    %184 = arith.sitofp %183 : vector<16x256xi32> to vector<16x256xf32>
    %185 = arith.index_cast %105 : i32 to index
    %c0_10 = arith.constant 0 : index
    %186 = vector.load %arg2[%185, %c0_10] : memref<1024x128xf32, #tpu.memory_space<vmem>>, vector<256x128xf32>
    %187 = arith.index_cast %105 : i32 to index
    %c0_11 = arith.constant 0 : index
    %188 = vector.load %arg3[%187, %c0_11] : memref<1024x128xf32, #tpu.memory_space<vmem>>, vector<256x128xf32>
    %cst_12 = arith.constant dense<0.000000e+00> : vector<16x128xf32>
    %189 = tpu.matmul %180, %186, %cst_12 {dimension_numbers = #tpu.dot_dimension_numbers<[1], [0], [0], [1], [0, 0, 1, 1], [], []>} : vector<16x256xf32>, vector<256x128xf32>, vector<16x128xf32> -> vector<16x128xf32>
    %190 = arith.addf %103, %189 : vector<16x128xf32>
    %cst_13 = arith.constant dense<0.000000e+00> : vector<16x128xf32>
    %191 = tpu.matmul %184, %188, %cst_13 {dimension_numbers = #tpu.dot_dimension_numbers<[1], [0], [0], [1], [0, 0, 1, 1], [], []>} : vector<16x256xf32>, vector<256x128xf32>, vector<16x128xf32> -> vector<16x128xf32>
    %192 = arith.addf %190, %191 : vector<16x128xf32>
    %c2_i32 = arith.constant 2 : i32
    %c256_i32_14 = arith.constant 256 : i32
    %193 = arith.muli %c2_i32, %c256_i32_14 : i32
    %194 = tpu.assume_multiple %193, 256 : i32
    %195 = vector.broadcast %194 : i32 to vector<16x8xi32>
    %196 = arith.subi %1, %195 : vector<16x8xi32>
    %197 = vector.broadcast %194 : i32 to vector<16x1xi32>
    %198 = arith.subi %2, %197 : vector<16x1xi32>
    %199 = vector.extract_strided_slice %196 {offsets = [0, 0], sizes = [16, 1], strides = [1, 1]} : vector<16x8xi32> to vector<16x1xi32>
    %200 = vector.broadcast %199 : vector<16x1xi32> to vector<16x256xi32>
    %201 = arith.cmpi eq, %13, %200 : vector<16x256xi32>
    %202 = vector.extract_strided_slice %12 {offsets = [0, 0], sizes = [16, 1], strides = [1, 1]} : vector<16x8xf32> to vector<16x1xf32>
    %203 = vector.shape_cast %202 : vector<16x1xf32> to vector<16x1xf32>
    %204 = vector.broadcast %203 : vector<16x1xf32> to vector<16x256xf32>
    %205 = vector.broadcast %cst_3 : f32 to vector<16x256xf32>
    %206 = arith.select %201, %204, %205 : vector<16x256xi1>, vector<16x256xf32>
    %207 = vector.extract_strided_slice %196 {offsets = [0, 1], sizes = [16, 1], strides = [1, 1]} : vector<16x8xi32> to vector<16x1xi32>
    %208 = vector.broadcast %207 : vector<16x1xi32> to vector<16x256xi32>
    %209 = arith.cmpi eq, %13, %208 : vector<16x256xi32>
    %210 = vector.extract_strided_slice %12 {offsets = [0, 1], sizes = [16, 1], strides = [1, 1]} : vector<16x8xf32> to vector<16x1xf32>
    %211 = vector.shape_cast %210 : vector<16x1xf32> to vector<16x1xf32>
    %212 = vector.broadcast %211 : vector<16x1xf32> to vector<16x256xf32>
    %213 = vector.broadcast %cst_3 : f32 to vector<16x256xf32>
    %214 = arith.select %209, %212, %213 : vector<16x256xi1>, vector<16x256xf32>
    %215 = arith.addf %206, %214 : vector<16x256xf32>
    %216 = vector.extract_strided_slice %196 {offsets = [0, 2], sizes = [16, 1], strides = [1, 1]} : vector<16x8xi32> to vector<16x1xi32>
    %217 = vector.broadcast %216 : vector<16x1xi32> to vector<16x256xi32>
    %218 = arith.cmpi eq, %13, %217 : vector<16x256xi32>
    %219 = vector.extract_strided_slice %12 {offsets = [0, 2], sizes = [16, 1], strides = [1, 1]} : vector<16x8xf32> to vector<16x1xf32>
    %220 = vector.shape_cast %219 : vector<16x1xf32> to vector<16x1xf32>
    %221 = vector.broadcast %220 : vector<16x1xf32> to vector<16x256xf32>
    %222 = vector.broadcast %cst_3 : f32 to vector<16x256xf32>
    %223 = arith.select %218, %221, %222 : vector<16x256xi1>, vector<16x256xf32>
    %224 = arith.addf %215, %223 : vector<16x256xf32>
    %225 = vector.extract_strided_slice %196 {offsets = [0, 3], sizes = [16, 1], strides = [1, 1]} : vector<16x8xi32> to vector<16x1xi32>
    %226 = vector.broadcast %225 : vector<16x1xi32> to vector<16x256xi32>
    %227 = arith.cmpi eq, %13, %226 : vector<16x256xi32>
    %228 = vector.extract_strided_slice %12 {offsets = [0, 3], sizes = [16, 1], strides = [1, 1]} : vector<16x8xf32> to vector<16x1xf32>
    %229 = vector.shape_cast %228 : vector<16x1xf32> to vector<16x1xf32>
    %230 = vector.broadcast %229 : vector<16x1xf32> to vector<16x256xf32>
    %231 = vector.broadcast %cst_3 : f32 to vector<16x256xf32>
    %232 = arith.select %227, %230, %231 : vector<16x256xi1>, vector<16x256xf32>
    %233 = arith.addf %224, %232 : vector<16x256xf32>
    %234 = vector.extract_strided_slice %196 {offsets = [0, 4], sizes = [16, 1], strides = [1, 1]} : vector<16x8xi32> to vector<16x1xi32>
    %235 = vector.broadcast %234 : vector<16x1xi32> to vector<16x256xi32>
    %236 = arith.cmpi eq, %13, %235 : vector<16x256xi32>
    %237 = vector.extract_strided_slice %12 {offsets = [0, 4], sizes = [16, 1], strides = [1, 1]} : vector<16x8xf32> to vector<16x1xf32>
    %238 = vector.shape_cast %237 : vector<16x1xf32> to vector<16x1xf32>
    %239 = vector.broadcast %238 : vector<16x1xf32> to vector<16x256xf32>
    %240 = vector.broadcast %cst_3 : f32 to vector<16x256xf32>
    %241 = arith.select %236, %239, %240 : vector<16x256xi1>, vector<16x256xf32>
    %242 = arith.addf %233, %241 : vector<16x256xf32>
    %243 = vector.extract_strided_slice %196 {offsets = [0, 5], sizes = [16, 1], strides = [1, 1]} : vector<16x8xi32> to vector<16x1xi32>
    %244 = vector.broadcast %243 : vector<16x1xi32> to vector<16x256xi32>
    %245 = arith.cmpi eq, %13, %244 : vector<16x256xi32>
    %246 = vector.extract_strided_slice %12 {offsets = [0, 5], sizes = [16, 1], strides = [1, 1]} : vector<16x8xf32> to vector<16x1xf32>
    %247 = vector.shape_cast %246 : vector<16x1xf32> to vector<16x1xf32>
    %248 = vector.broadcast %247 : vector<16x1xf32> to vector<16x256xf32>
    %249 = vector.broadcast %cst_3 : f32 to vector<16x256xf32>
    %250 = arith.select %245, %248, %249 : vector<16x256xi1>, vector<16x256xf32>
    %251 = arith.addf %242, %250 : vector<16x256xf32>
    %252 = vector.extract_strided_slice %196 {offsets = [0, 6], sizes = [16, 1], strides = [1, 1]} : vector<16x8xi32> to vector<16x1xi32>
    %253 = vector.broadcast %252 : vector<16x1xi32> to vector<16x256xi32>
    %254 = arith.cmpi eq, %13, %253 : vector<16x256xi32>
    %255 = vector.extract_strided_slice %12 {offsets = [0, 6], sizes = [16, 1], strides = [1, 1]} : vector<16x8xf32> to vector<16x1xf32>
    %256 = vector.shape_cast %255 : vector<16x1xf32> to vector<16x1xf32>
    %257 = vector.broadcast %256 : vector<16x1xf32> to vector<16x256xf32>
    %258 = vector.broadcast %cst_3 : f32 to vector<16x256xf32>
    %259 = arith.select %254, %257, %258 : vector<16x256xi1>, vector<16x256xf32>
    %260 = arith.addf %251, %259 : vector<16x256xf32>
    %261 = vector.extract_strided_slice %196 {offsets = [0, 7], sizes = [16, 1], strides = [1, 1]} : vector<16x8xi32> to vector<16x1xi32>
    %262 = vector.broadcast %261 : vector<16x1xi32> to vector<16x256xi32>
    %263 = arith.cmpi eq, %13, %262 : vector<16x256xi32>
    %264 = vector.extract_strided_slice %12 {offsets = [0, 7], sizes = [16, 1], strides = [1, 1]} : vector<16x8xf32> to vector<16x1xf32>
    %265 = vector.shape_cast %264 : vector<16x1xf32> to vector<16x1xf32>
    %266 = vector.broadcast %265 : vector<16x1xf32> to vector<16x256xf32>
    %267 = vector.broadcast %cst_3 : f32 to vector<16x256xf32>
    %268 = arith.select %263, %266, %267 : vector<16x256xi1>, vector<16x256xf32>
    %269 = arith.addf %260, %268 : vector<16x256xf32>
    %270 = vector.broadcast %198 : vector<16x1xi32> to vector<16x256xi32>
    %271 = arith.cmpi eq, %13, %270 : vector<16x256xi32>
    %272 = arith.extui %271 : vector<16x256xi1> to vector<16x256xi32>
    %273 = arith.sitofp %272 : vector<16x256xi32> to vector<16x256xf32>
    %274 = arith.index_cast %194 : i32 to index
    %c0_15 = arith.constant 0 : index
    %275 = vector.load %arg2[%274, %c0_15] : memref<1024x128xf32, #tpu.memory_space<vmem>>, vector<256x128xf32>
    %276 = arith.index_cast %194 : i32 to index
    %c0_16 = arith.constant 0 : index
    %277 = vector.load %arg3[%276, %c0_16] : memref<1024x128xf32, #tpu.memory_space<vmem>>, vector<256x128xf32>
    %cst_17 = arith.constant dense<0.000000e+00> : vector<16x128xf32>
    %278 = tpu.matmul %269, %275, %cst_17 {dimension_numbers = #tpu.dot_dimension_numbers<[1], [0], [0], [1], [0, 0, 1, 1], [], []>} : vector<16x256xf32>, vector<256x128xf32>, vector<16x128xf32> -> vector<16x128xf32>
    %279 = arith.addf %192, %278 : vector<16x128xf32>
    %cst_18 = arith.constant dense<0.000000e+00> : vector<16x128xf32>
    %280 = tpu.matmul %273, %277, %cst_18 {dimension_numbers = #tpu.dot_dimension_numbers<[1], [0], [0], [1], [0, 0, 1, 1], [], []>} : vector<16x256xf32>, vector<256x128xf32>, vector<16x128xf32> -> vector<16x128xf32>
    %281 = arith.addf %279, %280 : vector<16x128xf32>
    %c3_i32 = arith.constant 3 : i32
    %c256_i32_19 = arith.constant 256 : i32
    %282 = arith.muli %c3_i32, %c256_i32_19 : i32
    %283 = tpu.assume_multiple %282, 256 : i32
    %284 = vector.broadcast %283 : i32 to vector<16x8xi32>
    %285 = arith.subi %1, %284 : vector<16x8xi32>
    %286 = vector.broadcast %283 : i32 to vector<16x1xi32>
    %287 = arith.subi %2, %286 : vector<16x1xi32>
    %288 = vector.extract_strided_slice %285 {offsets = [0, 0], sizes = [16, 1], strides = [1, 1]} : vector<16x8xi32> to vector<16x1xi32>
    %289 = vector.broadcast %288 : vector<16x1xi32> to vector<16x256xi32>
    %290 = arith.cmpi eq, %13, %289 : vector<16x256xi32>
    %291 = vector.extract_strided_slice %12 {offsets = [0, 0], sizes = [16, 1], strides = [1, 1]} : vector<16x8xf32> to vector<16x1xf32>
    %292 = vector.shape_cast %291 : vector<16x1xf32> to vector<16x1xf32>
    %293 = vector.broadcast %292 : vector<16x1xf32> to vector<16x256xf32>
    %294 = vector.broadcast %cst_3 : f32 to vector<16x256xf32>
    %295 = arith.select %290, %293, %294 : vector<16x256xi1>, vector<16x256xf32>
    %296 = vector.extract_strided_slice %285 {offsets = [0, 1], sizes = [16, 1], strides = [1, 1]} : vector<16x8xi32> to vector<16x1xi32>
    %297 = vector.broadcast %296 : vector<16x1xi32> to vector<16x256xi32>
    %298 = arith.cmpi eq, %13, %297 : vector<16x256xi32>
    %299 = vector.extract_strided_slice %12 {offsets = [0, 1], sizes = [16, 1], strides = [1, 1]} : vector<16x8xf32> to vector<16x1xf32>
    %300 = vector.shape_cast %299 : vector<16x1xf32> to vector<16x1xf32>
    %301 = vector.broadcast %300 : vector<16x1xf32> to vector<16x256xf32>
    %302 = vector.broadcast %cst_3 : f32 to vector<16x256xf32>
    %303 = arith.select %298, %301, %302 : vector<16x256xi1>, vector<16x256xf32>
    %304 = arith.addf %295, %303 : vector<16x256xf32>
    %305 = vector.extract_strided_slice %285 {offsets = [0, 2], sizes = [16, 1], strides = [1, 1]} : vector<16x8xi32> to vector<16x1xi32>
    %306 = vector.broadcast %305 : vector<16x1xi32> to vector<16x256xi32>
    %307 = arith.cmpi eq, %13, %306 : vector<16x256xi32>
    %308 = vector.extract_strided_slice %12 {offsets = [0, 2], sizes = [16, 1], strides = [1, 1]} : vector<16x8xf32> to vector<16x1xf32>
    %309 = vector.shape_cast %308 : vector<16x1xf32> to vector<16x1xf32>
    %310 = vector.broadcast %309 : vector<16x1xf32> to vector<16x256xf32>
    %311 = vector.broadcast %cst_3 : f32 to vector<16x256xf32>
    %312 = arith.select %307, %310, %311 : vector<16x256xi1>, vector<16x256xf32>
    %313 = arith.addf %304, %312 : vector<16x256xf32>
    %314 = vector.extract_strided_slice %285 {offsets = [0, 3], sizes = [16, 1], strides = [1, 1]} : vector<16x8xi32> to vector<16x1xi32>
    %315 = vector.broadcast %314 : vector<16x1xi32> to vector<16x256xi32>
    %316 = arith.cmpi eq, %13, %315 : vector<16x256xi32>
    %317 = vector.extract_strided_slice %12 {offsets = [0, 3], sizes = [16, 1], strides = [1, 1]} : vector<16x8xf32> to vector<16x1xf32>
    %318 = vector.shape_cast %317 : vector<16x1xf32> to vector<16x1xf32>
    %319 = vector.broadcast %318 : vector<16x1xf32> to vector<16x256xf32>
    %320 = vector.broadcast %cst_3 : f32 to vector<16x256xf32>
    %321 = arith.select %316, %319, %320 : vector<16x256xi1>, vector<16x256xf32>
    %322 = arith.addf %313, %321 : vector<16x256xf32>
    %323 = vector.extract_strided_slice %285 {offsets = [0, 4], sizes = [16, 1], strides = [1, 1]} : vector<16x8xi32> to vector<16x1xi32>
    %324 = vector.broadcast %323 : vector<16x1xi32> to vector<16x256xi32>
    %325 = arith.cmpi eq, %13, %324 : vector<16x256xi32>
    %326 = vector.extract_strided_slice %12 {offsets = [0, 4], sizes = [16, 1], strides = [1, 1]} : vector<16x8xf32> to vector<16x1xf32>
    %327 = vector.shape_cast %326 : vector<16x1xf32> to vector<16x1xf32>
    %328 = vector.broadcast %327 : vector<16x1xf32> to vector<16x256xf32>
    %329 = vector.broadcast %cst_3 : f32 to vector<16x256xf32>
    %330 = arith.select %325, %328, %329 : vector<16x256xi1>, vector<16x256xf32>
    %331 = arith.addf %322, %330 : vector<16x256xf32>
    %332 = vector.extract_strided_slice %285 {offsets = [0, 5], sizes = [16, 1], strides = [1, 1]} : vector<16x8xi32> to vector<16x1xi32>
    %333 = vector.broadcast %332 : vector<16x1xi32> to vector<16x256xi32>
    %334 = arith.cmpi eq, %13, %333 : vector<16x256xi32>
    %335 = vector.extract_strided_slice %12 {offsets = [0, 5], sizes = [16, 1], strides = [1, 1]} : vector<16x8xf32> to vector<16x1xf32>
    %336 = vector.shape_cast %335 : vector<16x1xf32> to vector<16x1xf32>
    %337 = vector.broadcast %336 : vector<16x1xf32> to vector<16x256xf32>
    %338 = vector.broadcast %cst_3 : f32 to vector<16x256xf32>
    %339 = arith.select %334, %337, %338 : vector<16x256xi1>, vector<16x256xf32>
    %340 = arith.addf %331, %339 : vector<16x256xf32>
    %341 = vector.extract_strided_slice %285 {offsets = [0, 6], sizes = [16, 1], strides = [1, 1]} : vector<16x8xi32> to vector<16x1xi32>
    %342 = vector.broadcast %341 : vector<16x1xi32> to vector<16x256xi32>
    %343 = arith.cmpi eq, %13, %342 : vector<16x256xi32>
    %344 = vector.extract_strided_slice %12 {offsets = [0, 6], sizes = [16, 1], strides = [1, 1]} : vector<16x8xf32> to vector<16x1xf32>
    %345 = vector.shape_cast %344 : vector<16x1xf32> to vector<16x1xf32>
    %346 = vector.broadcast %345 : vector<16x1xf32> to vector<16x256xf32>
    %347 = vector.broadcast %cst_3 : f32 to vector<16x256xf32>
    %348 = arith.select %343, %346, %347 : vector<16x256xi1>, vector<16x256xf32>
    %349 = arith.addf %340, %348 : vector<16x256xf32>
    %350 = vector.extract_strided_slice %285 {offsets = [0, 7], sizes = [16, 1], strides = [1, 1]} : vector<16x8xi32> to vector<16x1xi32>
    %351 = vector.broadcast %350 : vector<16x1xi32> to vector<16x256xi32>
    %352 = arith.cmpi eq, %13, %351 : vector<16x256xi32>
    %353 = vector.extract_strided_slice %12 {offsets = [0, 7], sizes = [16, 1], strides = [1, 1]} : vector<16x8xf32> to vector<16x1xf32>
    %354 = vector.shape_cast %353 : vector<16x1xf32> to vector<16x1xf32>
    %355 = vector.broadcast %354 : vector<16x1xf32> to vector<16x256xf32>
    %356 = vector.broadcast %cst_3 : f32 to vector<16x256xf32>
    %357 = arith.select %352, %355, %356 : vector<16x256xi1>, vector<16x256xf32>
    %358 = arith.addf %349, %357 : vector<16x256xf32>
    %359 = vector.broadcast %287 : vector<16x1xi32> to vector<16x256xi32>
    %360 = arith.cmpi eq, %13, %359 : vector<16x256xi32>
    %361 = arith.extui %360 : vector<16x256xi1> to vector<16x256xi32>
    %362 = arith.sitofp %361 : vector<16x256xi32> to vector<16x256xf32>
    %363 = arith.index_cast %283 : i32 to index
    %c0_20 = arith.constant 0 : index
    %364 = vector.load %arg2[%363, %c0_20] : memref<1024x128xf32, #tpu.memory_space<vmem>>, vector<256x128xf32>
    %365 = arith.index_cast %283 : i32 to index
    %c0_21 = arith.constant 0 : index
    %366 = vector.load %arg3[%365, %c0_21] : memref<1024x128xf32, #tpu.memory_space<vmem>>, vector<256x128xf32>
    %cst_22 = arith.constant dense<0.000000e+00> : vector<16x128xf32>
    %367 = tpu.matmul %358, %364, %cst_22 {dimension_numbers = #tpu.dot_dimension_numbers<[1], [0], [0], [1], [0, 0, 1, 1], [], []>} : vector<16x256xf32>, vector<256x128xf32>, vector<16x128xf32> -> vector<16x128xf32>
    %368 = arith.addf %281, %367 : vector<16x128xf32>
    %cst_23 = arith.constant dense<0.000000e+00> : vector<16x128xf32>
    %369 = tpu.matmul %362, %366, %cst_23 {dimension_numbers = #tpu.dot_dimension_numbers<[1], [0], [0], [1], [0, 0, 1, 1], [], []>} : vector<16x256xf32>, vector<256x128xf32>, vector<16x128xf32> -> vector<16x128xf32>
    %370 = arith.addf %368, %369 : vector<16x128xf32>
    %c4_i32 = arith.constant 4 : i32
    %c0_24 = arith.constant 0 : index
    %c0_25 = arith.constant 0 : index
    %371 = vector.load %arg4[%c0_24, %c0_25] : memref<1x128xf32, #tpu.memory_space<vmem>>, vector<1x128xf32>
    %372 = vector.broadcast %371 : vector<1x128xf32> to vector<16x128xf32>
    %373 = arith.addf %370, %372 : vector<16x128xf32>
    %cst_26 = arith.constant 0.000000e+00 : f32
    %374 = vector.broadcast %cst_26 : f32 to vector<16x128xf32>
    %375 = arith.maximumf %373, %374 : vector<16x128xf32>
    %c0_27 = arith.constant 0 : index
    %c0_28 = arith.constant 0 : index
    %376 = vector.load %arg5[%c0_27, %c0_28] : memref<128x128xf32, #tpu.memory_space<vmem>>, vector<128x128xf32>
    %cst_29 = arith.constant dense<0.000000e+00> : vector<16x128xf32>
    %377 = tpu.matmul %375, %376, %cst_29 {dimension_numbers = #tpu.dot_dimension_numbers<[1], [0], [0], [1], [0, 0, 1, 1], [], []>} : vector<16x128xf32>, vector<128x128xf32>, vector<16x128xf32> -> vector<16x128xf32>
    %c0_30 = arith.constant 0 : index
    %c0_31 = arith.constant 0 : index
    %378 = vector.load %arg6[%c0_30, %c0_31] : memref<1x128xf32, #tpu.memory_space<vmem>>, vector<1x128xf32>
    %379 = vector.broadcast %378 : vector<1x128xf32> to vector<16x128xf32>
    %380 = arith.addf %377, %379 : vector<16x128xf32>
    %cst_32 = arith.constant 0.000000e+00 : f32
    %381 = vector.broadcast %cst_32 : f32 to vector<16x128xf32>
    %382 = arith.maximumf %380, %381 : vector<16x128xf32>
    %c0_33 = arith.constant 0 : index
    %c0_34 = arith.constant 0 : index
    %383 = vector.load %arg7[%c0_33, %c0_34] : memref<128x128xf32, #tpu.memory_space<vmem>>, vector<128x128xf32>
    %cst_35 = arith.constant dense<0.000000e+00> : vector<16x128xf32>
    %384 = tpu.matmul %382, %383, %cst_35 {dimension_numbers = #tpu.dot_dimension_numbers<[1], [0], [0], [1], [0, 0, 1, 1], [], []>} : vector<16x128xf32>, vector<128x128xf32>, vector<16x128xf32> -> vector<16x128xf32>
    %c0_36 = arith.constant 0 : index
    %c0_37 = arith.constant 0 : index
    %385 = vector.load %arg8[%c0_36, %c0_37] : memref<1x128xf32, #tpu.memory_space<vmem>>, vector<1x128xf32>
    %386 = vector.broadcast %385 : vector<1x128xf32> to vector<16x128xf32>
    %387 = arith.addf %384, %386 : vector<16x128xf32>
    %cst_38 = arith.constant 0.000000e+00 : f32
    %388 = vector.broadcast %cst_38 : f32 to vector<16x128xf32>
    %389 = arith.subf %388, %387 : vector<16x128xf32>
    %390 = math.exp %389 : vector<16x128xf32>
    %cst_39 = arith.constant 1.000000e+00 : f32
    %391 = vector.broadcast %cst_39 : f32 to vector<16x128xf32>
    %392 = arith.addf %391, %390 : vector<16x128xf32>
    %cst_40 = arith.constant 1.000000e+00 : f32
    %393 = vector.broadcast %cst_40 : f32 to vector<16x128xf32>
    %394 = arith.divf %393, %392 : vector<16x128xf32>
    %c0_41 = arith.constant 0 : index
    %c0_42 = arith.constant 0 : index
    %395 = vector.load %arg9[%c0_41, %c0_42] : memref<16x128xf32, #tpu.memory_space<vmem>>, vector<16x128xf32>
    tpu.vector_store %arg9[%c0_41, %c0_42], %394 {strides = array<i32>} : memref<16x128xf32, #tpu.memory_space<vmem>>, vector<16x128xf32>,
    return
  }
  func.func @transform_0(%arg0: i32) -> (i32, i32) {
    %c0_i32 = arith.constant 0 : i32
    %c0_i32_0 = arith.constant 0 : i32
    return %arg0, %c0_i32 : i32, i32
  }
  func.func @transform_1(%arg0: i32) -> (i32, i32) {
    %c0_i32 = arith.constant 0 : i32
    %c0_i32_0 = arith.constant 0 : i32
    %c0_i32_1 = arith.constant 0 : i32
    return %c0_i32, %c0_i32_0 : i32, i32
  }
  func.func @transform_2(%arg0: i32) -> (i32, i32) {
    %c0_i32 = arith.constant 0 : i32
    %c0_i32_0 = arith.constant 0 : i32
    %c0_i32_1 = arith.constant 0 : i32
    return %c0_i32, %c0_i32_0 : i32, i32
  }
  func.func @transform_3(%arg0: i32) -> (i32, i32) {
    %c0_i32 = arith.constant 0 : i32
    %c0_i32_0 = arith.constant 0 : i32
    %c0_i32_1 = arith.constant 0 : i32
    return %c0_i32, %c0_i32_0 : i32, i32
  }
  func.func @transform_4(%arg0: i32) -> (i32, i32) {
    %c0_i32 = arith.constant 0 : i32
    %c0_i32_0 = arith.constant 0 : i32
    %c0_i32_1 = arith.constant 0 : i32
    return %c0_i32, %c0_i32_0 : i32, i32
  }
  func.func @transform_5(%arg0: i32) -> (i32, i32) {
    %c0_i32 = arith.constant 0 : i32
    %c0_i32_0 = arith.constant 0 : i32
    %c0_i32_1 = arith.constant 0 : i32
    return %c0_i32, %c0_i32_0 : i32, i32
  }
  func.func @transform_6(%arg0: i32) -> (i32, i32) {
    %c0_i32 = arith.constant 0 : i32
    %c0_i32_0 = arith.constant 0 : i32
    %c0_i32_1 = arith.constant 0 : i32
    return %c0_i32, %c0_i32_0 : i32, i32
  }
  func.func @transform_7(%arg0: i32) -> (i32, i32) {
    %c0_i32 = arith.constant 0 : i32
    %c0_i32_0 = arith.constant 0 : i32
    %c0_i32_1 = arith.constant 0 : i32
    return %c0_i32, %c0_i32_0 : i32, i32
  }
  func.func @transform_8(%arg0: i32) -> (i32, i32) {
    %c0_i32 = arith.constant 0 : i32
    %c0_i32_0 = arith.constant 0 : i32
    return %arg0, %c0_i32 : i32, i32
  }
}

</mosaic_0001>

<bundles_post_ra>
// kernel: tpu_custom_call.1
= control target key start
LH: loop header
LB: loop body
LE: loop exit
PB: predicated region body
PF: predicated region fallthrough
CT: control target
= control target key end

     0   :  { %13 = vsyncpa [#allocation3], 0  ;;  %s4784_s0 = inlined_call_operand.vmem [shape: s32[32,9], index: 0, kind: input, shape index: {}]   ;;  %s4785_s1 = inlined_call_operand.hbm [shape: f32[1024,128], index: 1, kind: input, shape index: {}]   ;;  %s4786_s2 = inlined_call_operand.hbm [shape: f32[1024,128], index: 2, kind: input, shape index: {}]   ;;  %s4787_s3 = inlined_call_operand.vmem [shape: f32[1,128], index: 3, kind: input, shape index: {}]   ;;  %s4788_s4 = inlined_call_operand.hbm [shape: f32[128,128], index: 4, kind: input, shape index: {}]   ;;  %s4789_s5 = inlined_call_operand.vmem [shape: f32[1,128], index: 5, kind: input, shape index: {}]   ;;  %s4790_s6 = inlined_call_operand.hbm [shape: f32[128,128], index: 6, kind: input, shape index: {}]   ;;  %s4791_s7 = inlined_call_operand.vmem [shape: f32[1,128], index: 7, kind: input, shape index: {}]   ;;  %s4792_s8 = inlined_call_operand.hbm [shape: f32[32,128], index: 8, kind: output, shape index: {}]  }
   0x1   :  { %14 = vsyncpa [#allocation6], 0 }
   0x2   :  { %15 = vsyncpa [#allocation9], 0 }
   0x3   :  { %16 = vsyncpa [#allocation4], 0 }
   0x4   :  { %18 = vsyncpa [#allocation4 + $0x1], 0  ;;  %s3540_s27 = smov 0   ;;  %s3542_s28 = smov 0  }
   0x5   :  { %s3544_s29 = smov 0   ;;  %s3546_s30 = smov 0  }
   0x6 LB: > { %4800 = sst [smem:[#allocation15_spill]] %s3469_s29  ;;  %s3561_s9 = sadd.s32 4294967295, %s3473_s30   ;;  %s3473_s30 = sphi %s3546_s30, %s4825_s30   ;;  %s3469_s29 = sphi %s3544_s29, %s4827_s29   ;;  %s3465_s28 = sphi %s3542_s28, %s4829_s28   ;;  %s3461_s27 = sphi %s3540_s27, %s4828_s27  }
   0x7   : > { %s2313_s10 = sadd.s32 4294967294, %s3473_s30   ;;  %s3565_s11 = sadd.s32 1, %s3473_s30  }
   0x8   : > { %4801 = sst [smem:[#allocation16_spill]] %s3565_s11  ;;  %s204_s12 = sadd.s32 1, %s3469_s29 }
   0x9   : > { %s201_s13 = ssub.s32 %s3473_s30, %s3565_s11  ;;  %p214_p0 = scmp.ne.s32.totalorder %s3469_s29, %s3465_s28 }
   0xa   : > { %p202_p1 = scmp.eq.s32.totalorder %s201_s13, 0  ;;  %p215_p2 = scmp.eq.s32.totalorder %s3561_s9, 1 }
   0xb   : > { %p220_p3 = scmp.ne.s32.totalorder %s3465_s28, %s3461_s27  ;;  %p221_p4 = scmp.eq.s32.totalorder %s2313_s10, 1 }
   0xc   : > { %s3576_s14 = scalar_select %p202_p1, %s3469_s29, %s204_s12  }
   0xd   : > { %p3578_p5 = por %p215_p2, %p214_p0  ;;  %p3582_p6 = por %p221_p4, %p220_p3 }
   0xe   : > { %4802 = sst [smem:[#allocation17_spill]] %s3576_s14  ;;  %p2314_p7 = scmp.ge.s32.totalorder %s3473_s30, 1 }
   0xf   : > { %s4803_s15 = scalar_select %p3578_p5, 1, 0 }
  0x10   : > { %s4804_s16 = scalar_select %p3582_p6, 1, 0 }
  0x11   : > { %p228_p8 = scmp.lt.s32.totalorder %s3473_s30, 3  ;;  %p4793_p9 = scmp.eq.s32.totalorder %s3561_s9, 0 }
  0x12   : > { %4805 = sst [smem:[#allocation18_spill]] %s4804_s16  ;;  %s3475_s18 = smov [#allocation5]  }
  0x13   : > { %p3589_p10 = pnand %p2314_p7, %p228_p8  ;;  %s253_s19 = sshll.u32 %s3475_s18, 4  ;;  %s3595_s19 = int_to_ptr.vmem [resolvable:$true] %s253_s19 }
  0x14   : > { %s3476_s21 = smov [#allocation2]   ;;  %s3477_s23 = smov [#allocation7]  }
  0x15   : > { %s4806_s17 = scalar_select %p3589_p10, 1, 0 }
  0x16   : > { %p3125_p11 = pneg %p3589_p10  ;;  %s240_s22 = sshll.u32 %s3476_s21, 4  ;;  %s3603_s22 = int_to_ptr.vmem [resolvable:$true] %s240_s22 }
  0x17   : > { %s3605_s24 = sshll.u32 %s3477_s23, 4  ;;  %s3287_s10 = scalar_lea.hbm %s4786_s2, 16384  ;;  %s270_s24 = int_to_ptr.vmem [resolvable:$true] %s3605_s24 }
  0x18   : > { %p3599_p12 = pnand %p4793_p9, %p3125_p11  ;;  %p3288_p13 = scmp.ne.s32.totalorder %s4786_s2, %s3287_s10 }
  0x19   : > { %p3294_p3 = scmp.lt.u32.totalorder %s3287_s10, %s4786_s2 }
  0x1a   : > { %p3615_p0 = pneg %p3599_p12 }
  0x1c   : > { %p3290_p1 = pnand %p3615_p0, %p3288_p13 }
  0x1e   : > { %p3291_p2 = pneg %p3290_p1 }
  0x20   : > { %p3296_p4 = pnand %p3294_p3, %p3291_p2 }
  0x22   : > { %3299 = shalt.err (!%p3296_p4)
}
  0x23   : > { %s3300_s25 = scalar_lea.vmem %s3595_s19, 16384  ;;  %p3308_p9 = scmp.lt.s32.totalorder %s3595_s19, %s3595_s19 }
  0x24   : > { %p3301_p7 = scmp.ne.s32.totalorder %s3595_s19, %s3300_s25  ;;  %p3309_p6 = scmp.lt.s32.totalorder %s3300_s25, %s3300_s25 }
  0x26   : > { %p3303_p8 = pnand %p3301_p7, %p3615_p0  ;;  %p3310_p13 = por %p3309_p6, %p3308_p9 }
  0x28   : > { %p3304_p11 = pneg %p3303_p8 }
  0x2a   : > { %p3311_p1 = pnand %p3310_p13, %p3304_p11 }
  0x2c   : > { %3314 = shalt.err (!%p3311_p1)
}
  0x2d   : > { %s3478_s26 = smov 128   ;;  %s3479_s10 = smov 8  }
  0x2e   : > { %3131 = dma.hbm_to_vmem [thread:$0]  (!%p3599_p12), %s4786_s2, 16384, %s3595_s19, [#allocation6], %s3478_s26, %s3478_s26, %s3479_s10  }
  0x2f   : > { %s3315_s25 = scalar_lea.hbm %s4785_s1, 16384 }
  0x30   : > { %p3316_p6 = scmp.ne.s32.totalorder %s4785_s1, %s3315_s25  ;;  %p3322_p3 = scmp.lt.u32.totalorder %s3315_s25, %s4785_s1 }
  0x32   : > { %p3318_p9 = pnand %p3316_p6, %p3615_p0 }
  0x34   : > { %p3319_p2 = pneg %p3318_p9 }
  0x36   : > { %p3324_p4 = pnand %p3322_p3, %p3319_p2 }
  0x38   : > { %3327 = shalt.err (!%p3324_p4)
}
  0x39   : > { %s3328_s19 = scalar_lea.vmem %s3603_s22, 16384  ;;  %p3336_p13 = scmp.lt.s32.totalorder %s3603_s22, %s3603_s22 }
  0x3a   : > { %p3329_p7 = scmp.ne.s32.totalorder %s3603_s22, %s3328_s19  ;;  %p3337_p1 = scmp.lt.s32.totalorder %s3328_s19, %s3328_s19 }
  0x3c   : > { %p3331_p8 = pnand %p3329_p7, %p3615_p0  ;;  %p3338_p6 = por %p3337_p1, %p3336_p13 }
  0x3e   : > { %p3332_p11 = pneg %p3331_p8 }
  0x40   : > { %p3339_p9 = pnand %p3338_p6, %p3332_p11 }
  0x42   : > { %3342 = shalt.err (!%p3339_p9)
}
  0x43   : > { %3128 = dma.hbm_to_vmem [thread:$0]  (!%p3599_p12), %s4785_s1, 16384, %s3603_s22, [#allocation3], %s3478_s26, %s3478_s26, %s3479_s10  }
  0x44   : > { %s3343_s12 = scalar_lea.hbm %s4788_s4, 2048 }
  0x45   : > { %p3344_p2 = scmp.ne.s32.totalorder %s4788_s4, %s3343_s12  ;;  %p3350_p7 = scmp.lt.u32.totalorder %s3343_s12, %s4788_s4 }
  0x47   : > { %p3346_p3 = pnand %p3344_p2, %p3615_p0 }
  0x49   : > { %p3347_p4 = pneg %p3346_p3 }
  0x4b   : > { %p3352_p8 = pnand %p3350_p7, %p3347_p4 }
  0x4d   : > { %3355 = shalt.err (!%p3352_p8)
}
  0x4e   : > { %s3356_s19 = scalar_lea.vmem %s270_s24, 2048  ;;  %p3364_p6 = scmp.lt.s32.totalorder %s270_s24, %s270_s24 }
  0x4f   : > { %p3357_p11 = scmp.ne.s32.totalorder %s270_s24, %s3356_s19  ;;  %p3365_p9 = scmp.lt.s32.totalorder %s3356_s19, %s3356_s19 }
  0x51   : > { %p3359_p13 = pnand %p3357_p11, %p3615_p0  ;;  %p3366_p5 = por %p3365_p9, %p3364_p6 }
  0x53   : > { %p3360_p1 = pneg %p3359_p13 }
  0x55   : > { %p3367_p10 = pnand %p3366_p5, %p3360_p1 }
  0x57   : > { %3370 = shalt.err (!%p3367_p10)
}
  0x58   : > { %3134 = dma.hbm_to_vmem [thread:$0]  (!%p3599_p12), %s4788_s4, 2048, %s270_s24, [#allocation6], %s3478_s26, %s3478_s26, %s3479_s10  }
  0x59   : > { %s3480_s11 = smov [#allocation8]   ;;  %s3371_s13 = scalar_lea.hbm %s4790_s6, 2048 }
  0x5a   : > { %s285_s14 = sshll.u32 %s3480_s11, 4  ;;  %p3372_p5 = scmp.ne.s32.totalorder %s4790_s6, %s3371_s13  ;;  %s286_s14 = int_to_ptr.vmem [resolvable:$true] %s285_s14 }
  0x5b   : > { %p3378_p3 = scmp.lt.u32.totalorder %s3371_s13, %s4790_s6 }
  0x5c   : > { %p3374_p10 = pnand %p3372_p5, %p3615_p0 }
  0x5e   : > { %p3375_p2 = pneg %p3374_p10 }
  0x60   : > { %p3380_p4 = pnand %p3378_p3, %p3375_p2 }
  0x62   : > { %3383 = shalt.err (!%p3380_p4)
}
  0x63   : > { %s3384_s24 = scalar_lea.vmem %s286_s14, 2048  ;;  %p3392_p13 = scmp.lt.s32.totalorder %s286_s14, %s286_s14 }
  0x64   : > { %p3385_p7 = scmp.ne.s32.totalorder %s286_s14, %s3384_s24  ;;  %p3393_p1 = scmp.lt.s32.totalorder %s3384_s24, %s3384_s24 }
  0x66   : > { %p3387_p8 = pnand %p3385_p7, %p3615_p0  ;;  %p3394_p6 = por %p3393_p1, %p3392_p13 }
  0x68   : > { %p3388_p11 = pneg %p3387_p8 }
  0x6a   : > { %p3395_p9 = pnand %p3394_p6, %p3388_p11 }
  0x6c   : > { %3398 = shalt.err (!%p3395_p9)
}
  0x6d   : > { %3137 = dma.hbm_to_vmem [thread:$0]  (!%p3599_p12), %s4790_s6, 2048, %s286_s14, [#allocation9], %s3478_s26, %s3478_s26, %s3479_s10  }
  0x6e   : > { %p4809_p5 = scmp.ne.s32.totalorder %s4806_s17, 0 }
  0x6f   : > { %p4810_p0 = scmp.eq.s32.totalorder (!%p4809_p5), %s3561_s9, 0 }
  0x70   : > { %313 = sbr.rel (%p4809_p5) target bundleno = 1289 (0x509), region = 52 }
  0x77   : > { %3444 = dma.done.wait (%p4810_p0), [#allocation3], 16384   ;;  %p4811_p10 = pmov %p4810_p0 }
  0x78   : > { %p4812_p2 = pmov %p4810_p0 }
  0x79   : > { %3446 = vsyncadd (%p4811_p10), [#allocation3], 4294950912 }
  0x7a   : > { %3448 = dma.done.wait (%p4812_p2), [#allocation6], 18432   ;;  %p4813_p3 = pmov %p4810_p0 }
  0x7b   : > { %p4814_p4 = pmov %p4810_p0 }
  0x7c   : > { %3450 = vsyncadd (%p4813_p3), [#allocation6], 4294948864 }
  0x7d   : > { %3452 = dma.done.wait (%p4814_p4), [#allocation9], 2048   ;;  %p4815_p12 = pmov %p4810_p0 }
  0x7e   : > { %s2326_s17 = sshll.u32 %s3561_s9, 1  ;;  %v3481_v0 = vmov 0   ;;  %v3482_v1 = vmov 7   ;;  %vm374_vm0 = vcmask 64512   ;;  %v3483_v4 = vmov 0.0   ;;  %v664_v15 = vld [vmem:[#allocation5 + $0x80] sm:$0xff] }
  0x7f   : > { %3454 = vsyncadd (%p4815_p12), [#allocation9], 4294965248  ;;  %p360_p7 = scmp.lt.s32.totalorder %s2326_s17, 3  ;;  %3202 = vset.pattern.permute.xlu1 %v3481_v0  ;;  %3209 = vset.pattern.permute.xlu0 %v3482_v1  ;;  %v3484_v9 = vmov 1   ;;  %v3485_v10 = vmov 2   ;;  %v3486_v11 = vmov 3  }
  0x80   : > { %v3487_v12 = vmov 4   ;;  %v3488_v13 = vmov 5   ;;  %v3489_v14 = vmov 6   ;;  %v665_v16 = vld [vmem:[#allocation5 + $0x88] sm:$0xff]  ;;  %v648_v18 = vld [vmem:[#allocation5] sm:$0xff]  ;;  %v666_v21 = vld [vmem:[#allocation5 + $0x90] sm:$0xff] }
  0x81   : > { %s4831_s17 = smov (!%p360_p7, %s2326_s17), 3  ;;  %v2787_v17 = vpack.c.bf16 %v665_v16, %v664_v15  ;;  %v649_v19 = vld [vmem:[#allocation5 + $0x8] sm:$0xff]  ;;  %v667_v22 = vld [vmem:[#allocation5 + $0x98] sm:$0xff]  ;;  %v3490_v23 = vmov 8   ;;  %v650_v25 = vld [vmem:[#allocation5 + $0x10] sm:$0xff]  ;;  %s356_s23 = sand.u32 1, %s3465_s28  }
  0x82   : > { %s2327_s20 = sshll.u32 %s4831_s17, 3  ;;  %v2789_v20 = vpack.c.bf16 %v649_v19, %v648_v18  ;;  %v2791_v24 = vpack.c.bf16 %v667_v22, %v666_v21  ;;  %v651_v26 = vld [vmem:[#allocation5 + $0x18] sm:$0xff]  ;;  %v668_v28 = vld [vmem:[#allocation5 + $0xa0] sm:$0xff]  ;;  %v669_v29 = vld [vmem:[#allocation5 + $0xa8] sm:$0xff]  ;;  %s2325_s25 = sshll.u32 %s356_s23, 4 }
  0x83   : > { %s363_s10 = scalar_lea.vmem %s4784_s0, %s2327_s20  ;;  %2788 = vmatprep.subr.bf16.mxu0 %v2787_v17  ;;  %v2793_v27 = vpack.c.bf16 %v651_v26, %v650_v25  ;;  %v2795_v30 = vpack.c.bf16 %v669_v29, %v668_v28  ;;  %v652_v31 = vld [vmem:[#allocation5 + $0x20] sm:$0xff]  ;;  %v653_v32 = vld [vmem:[#allocation5 + $0x28] sm:$0xff]  ;;  %v670_v34 = vld [vmem:[#allocation5 + $0xb0] sm:$0xff]  ;;  %s2376_s19 = sshll.u32 %s3561_s9, 8 }
  0x84   : > { %v3728_v2 = vld [vmem:[%s363_s10] sm:$0xff]  ;;  %v3730_v3 = vld [vmem:[%s363_s10 + $0x8] sm:$0xff]  ;;  %2790 = vmatpush3.bf16.msra.mxu0 %v2789_v20  ;;  %v2797_v33 = vpack.c.bf16 %v653_v32, %v652_v31  ;;  %v671_v35 = vld [vmem:[#allocation5 + $0xb8] sm:$0xff]  ;;  %s358_s24 = scalar_lea.vmem [#allocation10], %s2325_s25  ;;  %s4739_s20 = scalar_lea.hbm %s4792_s8, %s2376_s19 }
  0x85   : > { %vm368_vm1 = vcmp.gt.s32.totalorder %v3728_v2, 0  ;;  %vm369_vm2 = vcmp.gt.s32.totalorder %v3730_v3, 0  ;;  %393 = vperm.xlu1 %3202, %v3728_v2   ;;  %2792 = vmatprep.subr.bf16.mxu0 %v2791_v24  ;;  %v2799_v36 = vpack.c.bf16 %v671_v35, %v670_v34  ;;  %v654_v37 = vld [vmem:[#allocation5 + $0x30] sm:$0xff]  ;;  %v655_v38 = vld [vmem:[#allocation5 + $0x38] sm:$0xff]  ;;  %v672_v40 = vld [vmem:[#allocation5 + $0xc0] sm:$0xff]  ;;  %v3767_v42 = vadd.s32 4294967040, %v3728_v2 }
  0x86   : > { %v3735_v5 = vsel %vm368_vm1, 1.0, %v3483_v4  ;;  %v3737_v6 = vsel %vm369_vm2, 1.0, %v3483_v4  ;;  %v2801_v39 = vpack.c.bf16 %v655_v38, %v654_v37  ;;  %v673_v41 = vld [vmem:[#allocation5 + $0xc8] sm:$0xff]  ;;  %v656_v44 = vld [vmem:[#allocation5 + $0x40] sm:$0xff]  ;;  %v674_v47 = vld [vmem:[#allocation5 + $0xd0] sm:$0xff]  ;;  %v3774_v52 = vadd.s32 4294967040, %v3730_v3 }
  0x87   : > { %v375_v7 = vsel %vm374_vm0, %v3735_v5, 0.0  ;;  %v378_v8 = vsel %vm374_vm0, %v3737_v6, 0.0  ;;  %v2803_v43 = vpack.c.bf16 %v673_v41, %v672_v40  ;;  %v657_v45 = vld [vmem:[#allocation5 + $0x48] sm:$0xff]  ;;  %v675_v48 = vld [vmem:[#allocation5 + $0xd8] sm:$0xff]  ;;  %v658_v50 = vld [vmem:[#allocation5 + $0x50] sm:$0xff]  ;;  %s2210_s22 = sshll.u32 %s358_s24, 4  ;;  %s4741_s22 = int_to_ptr.vmem [resolvable:$true] %s2210_s22 }
  0x88   : > { %376 = vadd.xlane.f32.xlu0 %v375_v7  ;;  %2794 = vmatpush3.bf16.msra.mxu0 %v2793_v27  ;;  %v2805_v46 = vpack.c.bf16 %v657_v45, %v656_v44  ;;  %v2807_v49 = vpack.c.bf16 %v675_v48, %v674_v47  ;;  %v659_v51 = vld [vmem:[#allocation5 + $0x58] sm:$0xff]  ;;  %v676_v54 = vld [vmem:[#allocation5 + $0xe0] sm:$0xff]  ;;  %v677_v55 = vld [vmem:[#allocation5 + $0xe8] sm:$0xff]  ;;  %s4743_s18 = scalar_lea.sflag [#allocation4], %s356_s23  ;;  %s3399_s26 = scalar_lea.vmem %s4741_s22, 256 }
  0x89   : > { %3203 = vset.pattern.permute.xlu1 %v3484_v9  ;;  %2796 = vmatprep.subr.bf16.mxu0 %v2795_v30  ;;  %v2809_v53 = vpack.c.bf16 %v659_v51, %v658_v50  ;;  %v2811_v56 = vpack.c.bf16 %v677_v55, %v676_v54  ;;  %v660_v57 = vld [vmem:[#allocation5 + $0x60] sm:$0xff]  ;;  %v661_v58 = vld [vmem:[#allocation5 + $0x68] sm:$0xff]  ;;  %v678_v60 = vld [vmem:[#allocation5 + $0xf0] sm:$0xff]  ;;  %p3400_p8 = scmp.ne.s32.totalorder %s4741_s22, %s3399_s26  ;;  %p4822_p11 = scmp.ne.s32.totalorder %s4803_s15, 0 }
  0x8a   : > { %417 = vperm.xlu1 %3203, %v3728_v2   ;;  %v2813_v59 = vpack.c.bf16 %v661_v58, %v660_v57  ;;  %v679_v61 = vld [vmem:[#allocation5 + $0xf8] sm:$0xff]  ;;  %v662_v63 = vld [vmem:[#allocation5 + $0x70] sm:$0xff]  ;;  %v632_v24 = vld [vmem:[#allocation2 + $0x80] sm:$0xff]  ;;  %s3492_s9 = smov [#allocation10]  }
  0x8b   : > { %v2815_v62 = vpack.c.bf16 %v679_v61, %v678_v60  ;;  %v663_v4 = vld [vmem:[#allocation5 + $0x78] sm:$0xff]  ;;  %v633_v25 = vld [vmem:[#allocation2 + $0x88] sm:$0xff]  ;;  %v616_v27 = vld [vmem:[#allocation2] sm:$0xff]  ;;  %p3401_p13 = pnand %p3400_p8, %p4822_p11  ;;  %s3403_s10 = sshll.u32 %s3492_s9, 4  ;;  %s3404_s10 = int_to_ptr.vmem [resolvable:$false] %s3403_s10 }
  0x8c   : > { %379 = vadd.xlane.f32.xlu0 %v378_v8  ;;  %2798 = vmatpush3.bf16.msra.mxu0 %v2797_v33  ;;  %v2817_v7 = vpack.c.bf16 %v663_v4, %v662_v63  ;;  %v3799_v8 = vadd.s32 4294966784, %v3728_v2  ;;  %v2819_v26 = vpack.c.bf16 %v633_v25, %v632_v24  ;;  %v617_v28 = vld [vmem:[#allocation2 + $0x8] sm:$0xff]  ;;  %v1008_v29 = vld [vmem:[#allocation2 + $0x180] sm:$0xff]  ;;  %v635_v35 = vld [vmem:[#allocation2 + $0x98] sm:$0xff]  ;;  %s3405_s11 = scalar_lea.vmem %s3404_s10, 512  ;;  %p3406_p6 = scmp.lt.s32.totalorder %s4741_s22, %s3404_s10 }
  0x8d   : > { %2800 = vmatprep.subr.bf16.mxu0 %v2799_v36  ;;  %v2821_v30 = vpack.c.bf16 %v617_v28, %v616_v27  ;;  %v1009_v31 = vld [vmem:[#allocation2 + $0x188] sm:$0xff]  ;;  %v386_v36 = vlaneseq  ;;  %v618_v38 = vld [vmem:[#allocation2 + $0x10] sm:$0xff]  ;;  %v620_v48 = vld [vmem:[#allocation2 + $0x20] sm:$0xff]  ;;  %p3402_p1 = pneg %p3401_p13  ;;  %p3407_p9 = scmp.lt.s32.totalorder %s3405_s11, %s3399_s26 }
  0x8e   : > { %3204 = vset.pattern.permute.xlu1 %v3485_v10  ;;  %2820 = vmatprep.subr.bf16.mxu1 %v2819_v26  ;;  %v2851_v32 = vpack.c.bf16 %v1009_v31, %v1008_v29  ;;  %v637_v44 = vld [vmem:[#allocation2 + $0xa8] sm:$0xff]  ;;  %v992_v51 = vld [vmem:[#allocation2 + $0x100] sm:$0xff]  ;;  %v1010_v54 = vld [vmem:[#allocation2 + $0x190] sm:$0xff]  ;;  %v3491_v26 = vmov 1.0  }
  0x8f   : > { %443 = vperm.xlu1 %3204, %v3728_v2   ;;  %2822 = vmatpush3.bf16.msra.mxu1 %v2821_v30  ;;  %v3833_v45 = vand.u32 127, %v386_v36  ;;  %v1011_v55 = vld [vmem:[#allocation2 + $0x198] sm:$0xff]  ;;  %v622_v61 = vld [vmem:[#allocation2 + $0x30] sm:$0xff]  ;;  %v1012_v27 = vld [vmem:[#allocation2 + $0x1a0] sm:$0xff]  ;;  %p3408_p5 = por %p3407_p9, %p3406_p6 }
  0x90   : > { %2802 = vmatpush3.bf16.msra.mxu0 %v2801_v39  ;;  %v619_v39 = vld [vmem:[#allocation2 + $0x18] sm:$0xff]  ;;  %v994_v24 = vld [vmem:[#allocation2 + $0x110] sm:$0xff]  ;;  %v1013_v28 = vld [vmem:[#allocation2 + $0x1a8] sm:$0xff] }
  0x91   : > { %2804 = vmatprep.subr.bf16.mxu0 %v2803_v43  ;;  %v2825_v40 = vpack.c.bf16 %v619_v39, %v618_v38  ;;  %v636_v43 = vld [vmem:[#allocation2 + $0xa0] sm:$0xff]  ;;  %v639_v57 = vld [vmem:[#allocation2 + $0xb8] sm:$0xff]  ;;  %v3841_v58 = vadd.s32 128, %v3833_v45  ;;  %v641_v30 = vld [vmem:[#allocation2 + $0xc8] sm:$0xff]  ;;  %p3409_p0 = pnand %p3408_p5, %p3402_p1 }
  0x92   : > { %v2827_v47 = vpack.c.bf16 %v637_v44, %v636_v43  ;;  %v995_v25 = vld [vmem:[#allocation2 + $0x118] sm:$0xff]  ;;  %v640_v29 = vld [vmem:[#allocation2 + $0xc0] sm:$0xff]  ;;  %v997_v39 = vld [vmem:[#allocation2 + $0x128] sm:$0xff] }
  0x93   : > { %3205 = vset.pattern.permute.xlu1 %v3486_v11  ;;  %v2857_v31 = vpack.c.bf16 %v995_v25, %v994_v24  ;;  %v996_v38 = vld [vmem:[#allocation2 + $0x120] sm:$0xff]  ;;  %v1014_v43 = vld [vmem:[#allocation2 + $0x1b0] sm:$0xff]  ;;  %v1015_v44 = vld [vmem:[#allocation2 + $0x1b8] sm:$0xff] }
  0x94   : > { %469 = vperm.xlu1 %3205, %v3728_v2   ;;  %2806 = vmatpush3.bf16.msra.mxu0 %v2805_v46  ;;  %v1000_v24 = vld [vmem:[#allocation2 + $0x140] sm:$0xff]  ;;  %v1001_v25 = vld [vmem:[#allocation2 + $0x148] sm:$0xff] }
  0x95   : > { %2808 = vmatprep.subr.bf16.mxu0 %v2807_v49  ;;  %v621_v49 = vld [vmem:[#allocation2 + $0x28] sm:$0xff] }
  0x96   : > { %v2829_v50 = vpack.c.bf16 %v621_v49, %v620_v48  ;;  %v2861_v48 = vpack.c.bf16 %v997_v39, %v996_v38  ;;  %v626_v49 = vld [vmem:[#allocation2 + $0x50] sm:$0xff] }
  0x97   : > { %v1002_v39 = vld [vmem:[#allocation2 + $0x150] sm:$0xff] }
  0x98   : > { %3206 = vset.pattern.permute.xlu1 %v3487_v12  ;;  %2810 = vmatpush3.bf16.msra.mxu0 %v2809_v53  ;;  %v993_v53 = vld [vmem:[#allocation2 + $0x108] sm:$0xff] }
  0x99   : > { %495 = vperm.xlu1 %3206, %v3728_v2   ;;  %2812 = vmatprep.subr.bf16.mxu0 %v2811_v56  ;;  %v638_v56 = vld [vmem:[#allocation2 + $0xb0] sm:$0xff]  ;;  %v2853_v4 = vpack.c.bf16 %v993_v53, %v992_v51  ;;  %v2863_v51 = vpack.c.bf16 %v1015_v44, %v1014_v43 }
  0x9a   : > { %v2831_v60 = vpack.c.bf16 %v639_v57, %v638_v56  ;;  %v998_v53 = vld [vmem:[#allocation2 + $0x130] sm:$0xff]  ;;  %v1016_v56 = vld [vmem:[#allocation2 + $0x1c0] sm:$0xff]  ;;  %v1017_v57 = vld [vmem:[#allocation2 + $0x1c8] sm:$0xff] }
  0x9c   : > { %2814 = vmatpush3.bf16.msra.mxu0 %v2813_v59 }
  0x9d   : > { %3207 = vset.pattern.permute.xlu1 %v3488_v13  ;;  %2816 = vmatprep.subr.bf16.mxu0 %v2815_v62  ;;  %v623_v62 = vld [vmem:[#allocation2 + $0x38] sm:$0xff] }
  0x9e   : > { %521 = vperm.xlu1 %3207, %v3728_v2  }
  0xa0   : > { %2818 = vmatpush3.bf16.msra.mxu0 %v2817_v7  ;;  %v2833_v7 = vpack.c.bf16 %v623_v62, %v622_v61  ;;  %v644_v61 = vld [vmem:[#allocation2 + $0xe0] sm:$0xff]  ;;  %v645_v62 = vld [vmem:[#allocation2 + $0xe8] sm:$0xff] }
  0xa1   : > { %2852 = vmatprep.subr.bf16.mxu0 %v2851_v32  ;;  %v2835_v32 = vpack.c.bf16 %v641_v30, %v640_v29  ;;  %v1019_v29 = vld [vmem:[#allocation2 + $0x1d8] sm:$0xff]  ;;  %v646_v30 = vld [vmem:[#allocation2 + $0xf0] sm:$0xff] }
  0xa2   : > { %3208 = vset.pattern.permute.xlu1 %v3489_v14  ;;  %573 = vperm.xlu0 %3209, %v3728_v2  }
  0xa3   : > { %547 = vperm.xlu1 %3208, %v3728_v2  }
  0xa6   : > { %3216 = vset.pattern.permute.xlu0 %v3488_v13 }
  0xa7   : > { %3210 = vset.pattern.permute.xlu1 %v3490_v23  ;;  %524 = vperm.xlu0 %3216, %v3730_v3  }
  0xa8   : > { %599 = vperm.xlu1 %3210, %v3728_v2  }
  0xab   : > { %3218 = vset.pattern.permute.xlu0 %v3489_v14 }
  0xac   : > { %3211 = vset.pattern.permute.xlu1 %v3484_v9  ;;  %550 = vperm.xlu0 %3218, %v3730_v3  }
  0xad   : > { %420 = vperm.xlu1 %3211, %v3730_v3  }
  0xb0   : > { %3221 = vset.pattern.permute.xlu0 %v3490_v23 }
  0xb1   : > { %3212 = vset.pattern.permute.xlu1 %v3485_v10  ;;  %602 = vperm.xlu0 %3221, %v3730_v3  }
  0xb2   : > { %446 = vperm.xlu1 %3212, %v3730_v3  }
  0xb5   : > { %3222 = vset.pattern.permute.xlu0 %v3487_v12 }
  0xb6   : > { %3213 = vset.pattern.permute.xlu1 %v3481_v0  ;;  %498 = vperm.xlu0 %3222, %v3730_v3  }
  0xb7   : > { %834 = vperm.xlu1 %3213, %v3767_v42  }
  0xba   : > { %905 = vperm.xlu0 %3222, %v3774_v52  }
  0xbb   : > { %3214 = vset.pattern.permute.xlu1 %v3485_v10 }
  0xbc   : > { %866 = vperm.xlu1 %3214, %v3767_v42  }
  0xbe   : > { %3229 = vset.pattern.permute.xlu0 %v3481_v0 }
  0xbf   : > { %396 = vperm.xlu0 %3229, %v3730_v3  }
  0xc0   : > { %3215 = vset.pattern.permute.xlu1 %v3486_v11 }
  0xc1   : > { %884 = vperm.xlu1 %3215, %v3767_v42  }
  0xc3   : > { %837 = vperm.xlu0 %3229, %v3774_v52  }
  0xc5   : > { %3217 = vset.pattern.permute.xlu1 %v3487_v12 }
  0xc6   : > { %902 = vperm.xlu1 %3217, %v3767_v42  }
  0xca   : > { %3219 = vset.pattern.permute.xlu1 %v3488_v13 }
  0xcb   : > { %920 = vperm.xlu1 %3219, %v3767_v42  }
  0xcf   : > { %3220 = vset.pattern.permute.xlu1 %v3489_v14 }
  0xd0   : > { %938 = vperm.xlu1 %3220, %v3767_v42  }
  0xd4   : > { %3223 = vset.pattern.permute.xlu1 %v3482_v1 }
  0xd5   : > { %956 = vperm.xlu1 %3223, %v3767_v42  }
  0xd9   : > { %3224 = vset.pattern.permute.xlu1 %v3490_v23 }
  0xda   : > { %974 = vperm.xlu1 %3224, %v3767_v42  }
  0xde   : > { %3225 = vset.pattern.permute.xlu1 %v3484_v9 }
  0xdf   : > { %851 = vperm.xlu1 %3225, %v3774_v52  }
  0xe3   : > { %3226 = vset.pattern.permute.xlu1 %v3485_v10 }
  0xe4   : > { %869 = vperm.xlu1 %3226, %v3774_v52  }
  0xe8   : > { %3227 = vset.pattern.permute.xlu1 %v3481_v0 }
  0xe9   : > { %1215 = vperm.xlu1 %3227, %v3799_v8  }
  0xed   : > { %3228 = vset.pattern.permute.xlu1 %v3484_v9 }
  0xee   : > { %1229 = vperm.xlu1 %3228, %v3799_v8  }
  0xf2   : > { %3231 = vset.pattern.permute.xlu1 %v3485_v10 }
  0xf3   : > { %1247 = vperm.xlu1 %3231, %v3799_v8  }
  0xf7   : > { %3232 = vset.pattern.permute.xlu1 %v3488_v13 }
  0xf8   : > { %923 = vperm.xlu1 %3232, %v3774_v52  }
  0xfc   : > { %3234 = vset.pattern.permute.xlu1 %v3484_v9 }
 0x104   : > { %v3810_v15 = vpop.permute.xlu1 %393 }
 0x105   : > { %vm398_vm13 = vcmp.eq.s32.totalorder %v3833_v45, %v3810_v15  ;;  %vm399_vm14 = vcmp.eq.s32.totalorder %v3841_v58, %v3810_v15 }
 0x109   : > { %v3812_v16 = vpop.permute.xlu1 %417 }
 0x10a   : > { %vm422_vm15 = vcmp.eq.s32.totalorder %v3833_v45, %v3812_v16  ;;  %vm423_vm0 = vcmp.eq.s32.totalorder %v3841_v58, %v3812_v16 }
 0x10e   : > { %v3814_v17 = vpop.permute.xlu1 %443 }
 0x10f   : > { %vm448_vm1 = vcmp.eq.s32.totalorder %v3833_v45, %v3814_v17  ;;  %vm449_vm2 = vcmp.eq.s32.totalorder %v3841_v58, %v3814_v17 }
 0x113   : > { %v3816_v18 = vpop.permute.xlu1 %469 }
 0x115   : > { %v377_v19 = vpop.xlane.xlu0 %376 }
 0x116   : > { %v382_v20 = vmul.f32 0.125, %v377_v19 }
 0x118   : > { %v3819_v21 = vmul.f32 %v3735_v5, %v382_v20  ;;  %v3821_v22 = vpop.permute.xlu1 %495  ;;  %v634_v5 = vld [vmem:[#allocation2 + $0x90] sm:$0xff]  ;;  %v2855_v20 = vpack.c.bf16 %v1011_v55, %v1010_v54  ;;  %v999_v54 = vld [vmem:[#allocation2 + $0x138] sm:$0xff] }
 0x119   : > { %v380_v33 = vpop.xlane.xlu0 %379  ;;  %v2823_v37 = vpack.c.bf16 %v635_v35, %v634_v5  ;;  %v625_v5 = vld [vmem:[#allocation2 + $0x48] sm:$0xff] }
 0x11a   : > { %427 = vperm.xlu1 %3234, %v3819_v21   ;;  %404 = vperm.xlu0 %3229, %v3819_v21   ;;  %v383_v19 = vmul.f32 0.125, %v380_v33  ;;  %v624_v33 = vld [vmem:[#allocation2 + $0x40] sm:$0xff] }
 0x11b   : > { %2824 = vmatprep.subr.bf16.mxu1 %v2823_v37  ;;  %v2859_v37 = vpack.c.bf16 %v1013_v28, %v1012_v27  ;;  %v1018_v28 = vld [vmem:[#allocation2 + $0x1d0] sm:$0xff] }
 0x11c   : > { %2826 = vmatpush3.bf16.msra.mxu1 %v2825_v40  ;;  %v3854_v35 = vmul.f32 %v3737_v6, %v383_v19  ;;  %v2837_v40 = vpack.c.bf16 %v625_v5, %v624_v33  ;;  %v643_v6 = vld [vmem:[#allocation2 + $0xd8] sm:$0xff]  ;;  %v629_v19 = vld [vmem:[#allocation2 + $0x68] sm:$0xff]  ;;  %v630_v5 = vld [vmem:[#allocation2 + $0x70] sm:$0xff]  ;;  %v2871_v38 = vpack.c.bf16 %v1019_v29, %v1018_v28 }
 0x11d   : > { %v3825_v34 = vpop.permute.xlu1 %521  ;;  %2828 = vmatprep.subr.bf16.mxu1 %v2827_v47  ;;  %v642_v47 = vld [vmem:[#allocation2 + $0xd0] sm:$0xff] }
 0x11e   : > { %3235 = vset.pattern.permute.xlu1 %v3485_v10  ;;  %3230 = vset.pattern.permute.xlu0 %v3486_v11 }
 0x11f   : > { %453 = vperm.xlu1 %3235, %v3819_v21   ;;  %472 = vperm.xlu0 %3230, %v3730_v3  }
 0x120   : > { %2830 = vmatpush3.bf16.msra.mxu1 %v2829_v50  ;;  %v627_v50 = vld [vmem:[#allocation2 + $0x58] sm:$0xff] }
 0x121   : > { %v3831_v41 = vpop.permute.xlu0 %573  ;;  %2832 = vmatprep.subr.bf16.mxu1 %v2831_v60  ;;  %v2841_v55 = vpack.c.bf16 %v627_v50, %v626_v49  ;;  %v1005_v49 = vld [vmem:[#allocation2 + $0x168] sm:$0xff]  ;;  %v1022_v50 = vld [vmem:[#allocation2 + $0x1f0] sm:$0xff] }
 0x122   : > { %v3835_v46 = vpop.permute.xlu1 %547 }
 0x123   : > { %3236 = vset.pattern.permute.xlu1 %v3486_v11  ;;  %887 = vperm.xlu0 %3230, %v3774_v52  }
 0x124   : > { %479 = vperm.xlu1 %3236, %v3819_v21   ;;  %2834 = vmatpush3.bf16.msra.mxu1 %v2833_v7  ;;  %v628_v7 = vld [vmem:[#allocation2 + $0x60] sm:$0xff] }
 0x125   : > { %2836 = vmatprep.subr.bf16.mxu1 %v2835_v32  ;;  %v2845_v27 = vpack.c.bf16 %v629_v19, %v628_v7  ;;  %v2869_v32 = vpack.c.bf16 %v1001_v25, %v1000_v24  ;;  %v1041_v7 = vld [vmem:[#allocation5 + $0x180] sm:$0xff]  ;;  %v1042_v19 = vld [vmem:[#allocation5 + $0x188] sm:$0xff] }
 0x126   : > { %v3843_v59 = vpop.permute.xlu0 %524  ;;  %v1389_v24 = vld [vmem:[#allocation2 + $0x280] sm:$0xff]  ;;  %v1390_v25 = vld [vmem:[#allocation2 + $0x288] sm:$0xff] }
 0x127   : > { %1265 = vperm.xlu0 %3230, %v3799_v8   ;;  %v600_v63 = vpop.permute.xlu1 %599 }
 0x128   : > { %3237 = vset.pattern.permute.xlu1 %v3487_v12  ;;  %vm605_vm3 = vcmp.eq.s32.totalorder %v3841_v58, %v600_v63  ;;  %vm604_vm4 = vcmp.eq.s32.totalorder %v3833_v45, %v600_v63  ;;  %2838 = vmatpush3.bf16.msra.mxu1 %v2837_v40  ;;  %v2865_v63 = vpack.c.bf16 %v999_v54, %v998_v53  ;;  %v1003_v40 = vld [vmem:[#allocation2 + $0x158] sm:$0xff] }
 0x129   : > { %505 = vperm.xlu1 %3237, %v3819_v21   ;;  %2334 = vmatprep.mubr.msk.f32.mxu0 %vm605_vm3, %v3491_v26  ;;  %vm474_vm3 = vcmp.eq.s32.totalorder %v3833_v45, %v3816_v18 }
 0x12a   : > { %2335 = vmatmul.mubr.msk.f32.vlgmr.msra.gmra.mrb[0].mxu0 %vm604_vm4, %v3491_v26  ;;  %vm475_vm4 = vcmp.eq.s32.totalorder %v3841_v58, %v3816_v18 }
 0x12b   : > { %3233 = vset.pattern.permute.xlu0 %v3484_v9  ;;  %2854 = vmatpush3.bf16.msra.mxu0 %v2853_v4  ;;  %v3857_v36 = vpop.permute.xlu0 %550  ;;  %v2843_v4 = vpack.c.bf16 %v645_v62, %v644_v61 }
 0x12c   : > { %848 = vperm.xlu0 %3233, %v3767_v42   ;;  %2856 = vmatprep.subr.bf16.mxu0 %v2855_v20  ;;  %v2839_v42 = vpack.c.bf16 %v643_v6, %v642_v47  ;;  %v2867_v20 = vpack.c.bf16 %v1017_v57, %v1016_v56  ;;  %v3874_v44 = vpop.permute.xlu1 %420  ;;  %v1020_v47 = vld [vmem:[#allocation2 + $0x1e0] sm:$0xff]  ;;  %v1021_v6 = vld [vmem:[#allocation2 + $0x1e8] sm:$0xff]  ;;  %v1006_v56 = vld [vmem:[#allocation2 + $0x170] sm:$0xff] }
 0x12d   : > { %3238 = vset.pattern.permute.xlu1 %v3488_v13  ;;  %v1007_v57 = vld [vmem:[#allocation2 + $0x178] sm:$0xff] }
 0x12e   : > { %531 = vperm.xlu1 %3238, %v3819_v21   ;;  %2840 = vmatprep.subr.bf16.mxu1 %v2839_v42  ;;  %v1004_v42 = vld [vmem:[#allocation2 + $0x160] sm:$0xff]  ;;  %v2881_v61 = vpack.c.bf16 %v1007_v57, %v1006_v56 }
 0x12f   : > { %2858 = vmatpush3.bf16.msra.mxu0 %v2857_v31  ;;  %2842 = vmatpush3.bf16.msra.mxu1 %v2841_v55  ;;  %v647_v31 = vld [vmem:[#allocation2 + $0xf8] sm:$0xff]  ;;  %v2877_v54 = vpack.c.bf16 %v1005_v49, %v1004_v42 }
 0x130   : > { %431 = vperm.xlu0 %3233, %v3854_v35   ;;  %2860 = vmatprep.subr.bf16.mxu0 %v2859_v37  ;;  %v603_v60 = vpop.permute.xlu0 %602  ;;  %v2847_v33 = vpack.c.bf16 %v647_v31, %v646_v30  ;;  %v631_v37 = vld [vmem:[#allocation2 + $0x78] sm:$0xff]  ;;  %v3927_v30 = vadd.s32 4294966528, %v3730_v3 }
 0x131   : > { %vm607_vm5 = vcmp.eq.s32.totalorder %v3841_v58, %v603_v60  ;;  %2844 = vmatprep.subr.bf16.mxu1 %v2843_v4  ;;  %vm606_vm6 = vcmp.eq.s32.totalorder %v3833_v45, %v603_v60  ;;  %v2849_v43 = vpack.c.bf16 %v631_v37, %v630_v5  ;;  %v3882_v53 = vpop.permute.xlu1 %446  ;;  %v3889_v60 = vadd.s32 4294966784, %v3730_v3 }
 0x132   : > { %3239 = vset.pattern.permute.xlu1 %v3489_v14  ;;  %2336 = vmatprep.mubr.msk.f32.mxu0 %vm607_vm5, %v3491_v26 }
 0x133   : > { %557 = vperm.xlu1 %3239, %v3819_v21   ;;  %2862 = vmatpush3.bf16.msra.mxu0 %v2861_v48  ;;  %v2873_v48 = vpack.c.bf16 %v1003_v40, %v1002_v39 }
 0x134   : > { %3242 = vset.pattern.permute.xlu0 %v3482_v1  ;;  %2864 = vmatprep.subr.bf16.mxu0 %v2863_v51  ;;  %v1023_v51 = vld [vmem:[#allocation2 + $0x1f8] sm:$0xff] }
 0x135   : > { %576 = vperm.xlu0 %3242, %v3730_v3   ;;  %2846 = vmatpush3.bf16.msra.mxu1 %v2845_v27  ;;  %v2879_v55 = vpack.c.bf16 %v1023_v51, %v1022_v50  ;;  %v2915_v27 = vpack.c.bf16 %v1390_v25, %v1389_v24  ;;  %v4040_v24 = vld [vmem:[#allocation5 + $0x100] sm:$0xff]  ;;  %v4042_v25 = vld [vmem:[#allocation5 + $0x108] sm:$0xff] }
 0x136   : > { %2848 = vmatprep.subr.bf16.mxu1 %v2847_v33  ;;  %2337 = vmatmul.mubr.msk.f32.gmra.mrb[2].mxu0 %vm606_vm6, %v3491_v26  ;;  %v3891_v62 = vpop.permute.xlu1 %834  ;;  %vm527_vm6 = vcmp.eq.s32.totalorder %v3841_v58, %v3825_v34 }
 0x137   : > { %3240 = vset.pattern.permute.xlu1 %v3482_v1  ;;  %2866 = vmatpush3.bf16.msra.mxu0 %v2865_v63  ;;  %v3898_v63 = vadd.s32 4294966528, %v3728_v2 }
 0x138   : > { %583 = vperm.xlu1 %3240, %v3819_v21   ;;  %2868 = vmatprep.subr.bf16.mxu0 %v2867_v20  ;;  %v2875_v21 = vpack.c.bf16 %v1021_v6, %v1020_v47  ;;  %v2883_v20 = vpack.c.bf16 %v1042_v19, %v1041_v7 }
 0x139   : > { %959 = vperm.xlu0 %3242, %v3774_v52   ;;  %2850 = vmatpush3.bf16.msra.mxu1 %v2849_v43 }
 0x13a   : > { %2884 = vmatprep.subr.bf16.mxu1 %v2883_v20 }
 0x13b   : > { %2870 = vmatpush3.bf16.msra.mxu0 %v2869_v32  ;;  %v3902_v4 = vpop.permute.xlu1 %866 }
 0x13c   : > { %3241 = vset.pattern.permute.xlu1 %v3481_v0  ;;  %2872 = vmatprep.subr.bf16.mxu0 %v2871_v38 }
 0x13d   : > { %1337 = vperm.xlu0 %3242, %v3799_v8   ;;  %409 = vperm.xlu1 %3241, %v3854_v35  }
 0x13f   : > { %2874 = vmatpush3.bf16.msra.mxu0 %v2873_v48 }
 0x140   : > { %2876 = vmatprep.subr.bf16.mxu0 %v2875_v21  ;;  %v3910_v2 = vpop.permute.xlu1 %884 }
 0x141   : > { %3254 = vset.pattern.permute.xlu0 %v3490_v23  ;;  %3243 = vset.pattern.permute.xlu1 %v3489_v14 }
 0x142   : > { %1355 = vperm.xlu0 %3254, %v3799_v8   ;;  %941 = vperm.xlu1 %3243, %v3774_v52  }
 0x143   : > { %2878 = vmatpush3.bf16.msra.mxu0 %v2877_v54 }
 0x144   : > { %2880 = vmatprep.subr.bf16.mxu0 %v2879_v55 }
 0x145   : > { %v3916_v28 = vpop.permute.xlu1 %902 }
 0x146   : > { %3257 = vset.pattern.permute.xlu0 %v3485_v10  ;;  %3244 = vset.pattern.permute.xlu1 %v3487_v12  ;;  %vm908_vm5 = vcmp.eq.s32.totalorder %v3841_v58, %v3916_v28 }
 0x147   : > { %1250 = vperm.xlu0 %3257, %v3889_v60   ;;  %1283 = vperm.xlu1 %3244, %v3799_v8  }
 0x148   : > { %2882 = vmatpush3.bf16.msra.mxu0 %v2881_v61 }
 0x149   : > { %2916 = vmatprep.subr.bf16.mxu0 %v2915_v27 }
 0x14a   : > { %v3922_v29 = vpop.permute.xlu1 %920 }
 0x14b   : > { %3260 = vset.pattern.permute.xlu0 %v3484_v9  ;;  %3245 = vset.pattern.permute.xlu1 %v3485_v10 }
 0x14c   : > { %1610 = vperm.xlu0 %3260, %v3898_v63   ;;  %457 = vperm.xlu1 %3245, %v3854_v35  }
 0x14f   : > { %v3931_v31 = vpop.permute.xlu1 %938 }
 0x150   : > { %3265 = vset.pattern.permute.xlu0 %v3486_v11  ;;  %3246 = vset.pattern.permute.xlu1 %v3486_v11 }
 0x151   : > { %1646 = vperm.xlu0 %3265, %v3898_v63   ;;  %483 = vperm.xlu1 %3246, %v3854_v35  }
 0x154   : > { %v3938_v32 = vpop.permute.xlu1 %956 }
 0x155   : > { %3268 = vset.pattern.permute.xlu0 %v3487_v12  ;;  %3247 = vset.pattern.permute.xlu1 %v3487_v12 }
 0x156   : > { %1664 = vperm.xlu0 %3268, %v3898_v63   ;;  %509 = vperm.xlu1 %3247, %v3854_v35  }
 0x159   : > { %v3944_v3 = vpop.permute.xlu1 %974 }
 0x15a   : > { %3269 = vset.pattern.permute.xlu0 %v3488_v13  ;;  %3248 = vset.pattern.permute.xlu1 %v3488_v13 }
 0x15b   : > { %1304 = vperm.xlu0 %3269, %v3889_v60   ;;  %535 = vperm.xlu1 %3248, %v3854_v35  }
 0x15f   : > { %1682 = vperm.xlu0 %3269, %v3898_v63   ;;  %3249 = vset.pattern.permute.xlu1 %v3489_v14 }
 0x160   : > { %561 = vperm.xlu1 %3249, %v3854_v35  }
 0x163   : > { %1685 = vperm.xlu0 %3269, %v3927_v30  }
 0x164   : > { %3250 = vset.pattern.permute.xlu1 %v3482_v1 }
 0x165   : > { %587 = vperm.xlu1 %3250, %v3854_v35   ;;  %v3948_v35 = vpop.permute.xlu1 %851 }
 0x167   : > { %3275 = vset.pattern.permute.xlu0 %v3490_v23 }
 0x168   : > { %1358 = vperm.xlu0 %3275, %v3889_v60  }
 0x169   : > { %3251 = vset.pattern.permute.xlu1 %v3488_v13  ;;  %v3952_v13 = vpop.permute.xlu1 %869 }
 0x16a   : > { %1301 = vperm.xlu1 %3251, %v3799_v8  }
 0x16c   : > { %1736 = vperm.xlu0 %3275, %v3898_v63  }
 0x16d   : > { %v1216_v33 = vpop.permute.xlu1 %1215 }
 0x16e   : > { %3252 = vset.pattern.permute.xlu1 %v3489_v14  ;;  %vm1220_vm7 = vcmp.eq.s32.totalorder %v3833_v45, %v1216_v33  ;;  %vm1221_vm8 = vcmp.eq.s32.totalorder %v3841_v58, %v1216_v33 }
 0x16f   : > { %1319 = vperm.xlu1 %3252, %v3799_v8   ;;  %v3956_v8 = vpop.permute.xlu0 %498 }
 0x173   : > { %3253 = vset.pattern.permute.xlu1 %v3490_v23  ;;  %v3961_v5 = vpop.permute.xlu0 %905 }
 0x174   : > { %977 = vperm.xlu1 %3253, %v3774_v52   ;;  %v1230_v52 = vpop.permute.xlu1 %1229 }
 0x175   : > { %vm1234_vm9 = vcmp.eq.s32.totalorder %v3833_v45, %v1230_v52  ;;  %vm1235_vm10 = vcmp.eq.s32.totalorder %v3841_v58, %v1230_v52 }
 0x177   : > { %v3966_v38 = vpop.permute.xlu0 %396 }
 0x178   : > { %3255 = vset.pattern.permute.xlu1 %v3481_v0  ;;  %v1248_v37 = vpop.permute.xlu1 %1247 }
 0x179   : > { %1218 = vperm.xlu1 %3255, %v3889_v60   ;;  %vm1252_vm11 = vcmp.eq.s32.totalorder %v3833_v45, %v1248_v37  ;;  %vm1253_vm12 = vcmp.eq.s32.totalorder %v3841_v58, %v1248_v37 }
 0x17b   : > { %v3972_v40 = vpop.permute.xlu0 %837 }
 0x17c   : > { %v3970_v39 = vpop.permute.xlu1 %923 }
 0x17d   : > { %3256 = vset.pattern.permute.xlu1 %v3484_v9 }
 0x17e   : > { %1232 = vperm.xlu1 %3256, %v3889_v60  }
 0x182   : > { %3258 = vset.pattern.permute.xlu1 %v3486_v11 }
 0x183   : > { %1268 = vperm.xlu1 %3258, %v3889_v60  }
 0x187   : > { %3259 = vset.pattern.permute.xlu1 %v3481_v0 }
 0x188   : > { %1596 = vperm.xlu1 %3259, %v3898_v63  }
 0x18c   : > { %3261 = vset.pattern.permute.xlu1 %v3487_v12 }
 0x18d   : > { %1286 = vperm.xlu1 %3261, %v3889_v60  }
 0x191   : > { %3262 = vset.pattern.permute.xlu1 %v3485_v10 }
 0x192   : > { %1628 = vperm.xlu1 %3262, %v3898_v63  }
 0x196   : > { %3263 = vset.pattern.permute.xlu1 %v3481_v0 }
 0x197   : > { %1599 = vperm.xlu1 %3263, %v3927_v30  }
 0x199   : > { %v3980_v43 = vpop.permute.xlu1 %427  ;;  %v3982_v47 = vpop.permute.xlu0 %404 }
 0x19a   : > { %v1224_v6 = vsel %vm1220_vm7, %v3982_v47, 0.0  ;;  %v1225_v48 = vsel %vm1221_vm8, %v3982_v47, 0.0  ;;  %v1238_v0 = vsel %vm1234_vm9, %v3980_v43, 0.0  ;;  %v1239_v21 = vsel %vm1235_vm10, %v3980_v43, 0.0 }
 0x19b   : > { %3264 = vset.pattern.permute.xlu1 %v3484_v9  ;;  %v1242_v42 = vadd.f32 %v1238_v0, %v1224_v6  ;;  %v1243_v49 = vadd.f32 %v1239_v21, %v1225_v48  ;;  %vm839_vm7 = vcmp.eq.s32.totalorder %v3833_v45, %v3891_v62  ;;  %vm840_vm8 = vcmp.eq.s32.totalorder %v3841_v58, %v3891_v62 }
 0x19c   : > { %1613 = vperm.xlu1 %3264, %v3927_v30   ;;  %v413_v52 = vsel %vm399_vm14, %v3982_v47, 0.0  ;;  %v435_v37 = vsel %vm423_vm0, %v3980_v43, 0.0  ;;  %v412_v6 = vsel %vm398_vm13, %v3982_v47, 0.0  ;;  %v434_v48 = vsel %vm422_vm15, %v3980_v43, 0.0 }
 0x19d   : > { %vm553_vm14 = vcmp.eq.s32.totalorder %v3841_v58, %v3835_v46  ;;  %v843_v15 = vsel %vm839_vm7, %v3982_v47, 0.0  ;;  %v844_v16 = vsel %vm840_vm8, %v3982_v47, 0.0  ;;  %v2885_v21 = vpack.c.bf16 %v4042_v25, %v4040_v24  ;;  %v1030_v25 = vld [vmem:[#allocation5 + $0x128] sm:$0xff] }
 0x19e   : > { %v3992_v50 = vpop.permute.xlu1 %453  ;;  %v3994_v51 = vpop.permute.xlu0 %472  ;;  %vm925_vm13 = vcmp.eq.s32.totalorder %v3833_v45, %v3922_v29  ;;  %vm926_vm15 = vcmp.eq.s32.totalorder %v3841_v58, %v3922_v29  ;;  %vm578_vm7 = vcmp.eq.s32.totalorder %v3833_v45, %v3831_v41  ;;  %vm579_vm8 = vcmp.eq.s32.totalorder %v3841_v58, %v3831_v41  ;;  %v1373_v41 = vld [vmem:[#allocation2 + $0x200] sm:$0xff] }
 0x19f   : > { %v1256_v54 = vsel %vm1252_vm11, %v3992_v50, 0.0  ;;  %v1257_v55 = vsel %vm1253_vm12, %v3992_v50, 0.0  ;;  %vm872_vm12 = vcmp.eq.s32.totalorder %v3841_v58, %v3902_v4  ;;  %vm889_vm11 = vcmp.eq.s32.totalorder %v3833_v45, %v3910_v2 }
 0x1a0   : > { %3266 = vset.pattern.permute.xlu1 %v3489_v14  ;;  %v1260_v56 = vadd.f32 %v1256_v54, %v1242_v42  ;;  %v1261_v9 = vadd.f32 %v1257_v55, %v1243_v49  ;;  %v460_v62 = vsel %vm448_vm1, %v3992_v50, 0.0  ;;  %v439_v55 = vadd.f32 %v435_v37, %v413_v52 }
 0x1a1   : > { %1322 = vperm.xlu1 %3266, %v3889_v60   ;;  %vm4816_vm1 = vcmp.eq.s32.totalorder %v3833_v45, %v3902_v4  ;;  %v876_v52 = vsel %vm872_vm12, %v3992_v50, 0.0  ;;  %vm944_vm12 = vcmp.eq.s32.totalorder %v3841_v58, %v3931_v31 }
 0x1a2   : > { %v4000_v57 = vpop.permute.xlu0 %887 }
 0x1a3   : > { %v4002_v61 = vpop.permute.xlu1 %479 }
 0x1a4   : > { %v487_v17 = vsel %vm475_vm4, %v4002_v61, 0.0  ;;  %vm4819_vm4 = vcmp.eq.s32.totalorder %v3833_v45, %v3825_v34 }
 0x1a5   : > { %3267 = vset.pattern.permute.xlu1 %v3485_v10 }
 0x1a6   : > { %1631 = vperm.xlu1 %3267, %v3927_v30   ;;  %v1266_v7 = vpop.permute.xlu0 %1265 }
 0x1a7   : > { %vm1270_vm9 = vcmp.eq.s32.totalorder %v3833_v45, %v1266_v7  ;;  %vm1271_vm10 = vcmp.eq.s32.totalorder %v3841_v58, %v1266_v7 }
 0x1a8   : > { %v1274_v10 = vsel %vm1270_vm9, %v4002_v61, 0.0  ;;  %v1275_v19 = vsel %vm1271_vm10, %v4002_v61, 0.0  ;;  %v4038_v20 = vpop.permute.xlu1 %505  ;;  %vm890_vm9 = vcmp.eq.s32.totalorder %v3841_v58, %v3910_v2 }
 0x1a9   : > { %v4052_v27 = vadd.f32 %v1274_v10, %v1260_v56  ;;  %v4054_v33 = vadd.f32 %v1275_v19, %v1261_v9  ;;  %v438_v56 = vadd.f32 %v434_v48, %v412_v6  ;;  %v486_v10 = vsel %vm474_vm3, %v4002_v61, 0.0 }
 0x1aa   : > { %3270 = vset.pattern.permute.xlu1 %v3482_v1  ;;  %v875_v19 = vsel %vm4816_vm1, %v3992_v50, 0.0  ;;  %vm4818_vm3 = vcmp.eq.s32.totalorder %v3833_v45, %v3821_v22  ;;  %v894_v4 = vsel %vm890_vm9, %v4002_v61, 0.0  ;;  %vm962_vm9 = vcmp.eq.s32.totalorder %v3841_v58, %v3938_v32 }
 0x1ab   : > { %1340 = vperm.xlu1 %3270, %v3889_v60   ;;  %v849_v0 = vpop.permute.xlu0 %848  ;;  %v461_v60 = vsel %vm449_vm2, %v3992_v50, 0.0  ;;  %v464_v6 = vadd.f32 %v460_v62, %v438_v56  ;;  %vm4817_vm2 = vcmp.eq.s32.totalorder %v3841_v58, %v3821_v22  ;;  %v912_v56 = vsel %vm908_vm5, %v4038_v20, 0.0 }
 0x1ac   : > { %vm853_vm0 = vcmp.eq.s32.totalorder %v3833_v45, %v849_v0  ;;  %vm854_vm10 = vcmp.eq.s32.totalorder %v3841_v58, %v849_v0  ;;  %v465_v37 = vadd.f32 %v461_v60, %v439_v55  ;;  %v513_v18 = vsel %vm4817_vm2, %v4038_v20, 0.0 }
 0x1ad   : > { %v857_v42 = vsel %vm853_vm0, %v3980_v43, 0.0  ;;  %v858_v49 = vsel %vm854_vm10, %v3980_v43, 0.0  ;;  %v4112_v54 = vpop.permute.xlu1 %531  ;;  %v490_v60 = vadd.f32 %v486_v10, %v464_v6  ;;  %vm943_vm5 = vcmp.eq.s32.totalorder %v3833_v45, %v3931_v31 }
 0x1ae   : > { %v861_v9 = vadd.f32 %v857_v42, %v843_v15  ;;  %v862_v7 = vadd.f32 %v858_v49, %v844_v16  ;;  %v512_v16 = vsel %vm4818_vm3, %v4038_v20, 0.0  ;;  %v491_v0 = vadd.f32 %v487_v17, %v465_v37 }
 0x1af   : > { %3271 = vset.pattern.permute.xlu1 %v3486_v11  ;;  %v893_v11 = vsel %vm889_vm11, %v4002_v61, 0.0  ;;  %v539_v22 = vsel %vm527_vm6, %v4112_v54, 0.0  ;;  %v538_v55 = vsel %vm4819_vm4, %v4112_v54, 0.0  ;;  %vm4820_vm11 = vcmp.eq.s32.totalorder %v3833_v45, %v3916_v28 }
 0x1b0   : > { %v879_v48 = vadd.f32 %v875_v19, %v861_v9  ;;  %v880_v15 = vadd.f32 %v876_v52, %v862_v7  ;;  %1649 = vperm.xlu1 %3271, %v3927_v30   ;;  %v911_v2 = vsel %vm4820_vm11, %v4038_v20, 0.0  ;;  %v517_v9 = vadd.f32 %v513_v18, %v491_v0 }
 0x1b1   : > { %v516_v7 = vadd.f32 %v512_v16, %v490_v60  ;;  %vm4821_vm6 = vcmp.eq.s32.totalorder %v3833_v45, %v3835_v46  ;;  %v930_v37 = vsel %vm926_vm15, %v4112_v54, 0.0  ;;  %v1043_v60 = vld [vmem:[#allocation5 + $0x190] sm:$0xff]  ;;  %vm961_vm10 = vcmp.eq.s32.totalorder %v3833_v45, %v3938_v32 }
 0x1b2   : > { %v897_v62 = vadd.f32 %v893_v11, %v879_v48  ;;  %v898_v42 = vadd.f32 %v894_v4, %v880_v15  ;;  %v4148_v49 = vpop.permute.xlu1 %557  ;;  %v543_v28 = vadd.f32 %v539_v22, %v517_v9  ;;  %v4211_v9 = vpop.permute.xlu0 %431  ;;  %vm856_vm15 = vcmp.eq.s32.totalorder %v3841_v58, %v3948_v35 }
 0x1b3   : > { %v565_v34 = vsel %vm553_vm14, %v4148_v49, 0.0  ;;  %v564_v19 = vsel %vm4821_vm6, %v4148_v49, 0.0  ;;  %v542_v52 = vadd.f32 %v538_v55, %v516_v7  ;;  %v948_v16 = vsel %vm944_vm12, %v4148_v49, 0.0 }
 0x1b4   : > { %v915_v17 = vadd.f32 %v911_v2, %v897_v62  ;;  %v916_v10 = vadd.f32 %v912_v56, %v898_v42  ;;  %3272 = vset.pattern.permute.xlu1 %v3487_v12  ;;  %v929_v12 = vsel %vm925_vm13, %v4112_v54, 0.0  ;;  %v569_v15 = vadd.f32 %v565_v34, %v543_v28  ;;  %v1044_v62 = vld [vmem:[#allocation5 + $0x198] sm:$0xff]  ;;  %v1027_v2 = vld [vmem:[#allocation5 + $0x110] sm:$0xff]  ;;  %v1374_v56 = vld [vmem:[#allocation2 + $0x208] sm:$0xff] }
 0x1b5   : > { %1667 = vperm.xlu1 %3272, %v3927_v30   ;;  %v568_v18 = vadd.f32 %v564_v19, %v542_v52  ;;  %v947_v55 = vsel %vm943_vm5, %v4148_v49, 0.0  ;;  %vm842_vm14 = vcmp.eq.s32.totalorder %v3841_v58, %v3972_v40  ;;  %v1391_v34 = vld [vmem:[#allocation2 + $0x290] sm:$0xff]  ;;  %v1392_v19 = vld [vmem:[#allocation2 + $0x298] sm:$0xff]  ;;  %vm841_vm13 = vcmp.eq.s32.totalorder %v3833_v45, %v3972_v40  ;;  %v1045_v28 = vld [vmem:[#allocation5 + $0x1a0] sm:$0xff] }
 0x1b6   : > { %v934_v46 = vadd.f32 %v930_v37, %v916_v10  ;;  %v933_v6 = vadd.f32 %v929_v12, %v915_v17  ;;  %v1028_v10 = vld [vmem:[#allocation5 + $0x118] sm:$0xff]  ;;  %v2887_v31 = vpack.c.bf16 %v1044_v62, %v1043_v60  ;;  %v1046_v52 = vld [vmem:[#allocation5 + $0x1a8] sm:$0xff]  ;;  %vm855_vm0 = vcmp.eq.s32.totalorder %v3833_v45, %v3948_v35  ;;  %v1047_v62 = vld [vmem:[#allocation5 + $0x1b0] sm:$0xff] }
 0x1b7   : > { %v4190_v48 = vpop.permute.xlu1 %583  ;;  %v2891_v24 = vpack.c.bf16 %v1046_v52, %v1045_v28  ;;  %v859_v35 = vsel %vm855_vm0, %v4211_v9, 0.0  ;;  %v1049_v40 = vld [vmem:[#allocation5 + $0x1c0] sm:$0xff]  ;;  %v1396_v28 = vld [vmem:[#allocation2 + $0x2b8] sm:$0xff]  ;;  %vm425_vm1 = vcmp.eq.s32.totalorder %v3841_v58, %v3874_v44  ;;  %vm424_vm2 = vcmp.eq.s32.totalorder %v3833_v45, %v3874_v44 }
 0x1b8   : > { %v591_v29 = vsel %vm579_vm8, %v4190_v48, 0.0  ;;  %v590_v11 = vsel %vm578_vm7, %v4190_v48, 0.0  ;;  %v952_v4 = vadd.f32 %v948_v16, %v934_v46  ;;  %v966_v0 = vsel %vm962_vm9, %v4190_v48, 0.0  ;;  %v1375_v16 = vld [vmem:[#allocation2 + $0x210] sm:$0xff] }
 0x1b9   : > { %3273 = vset.pattern.permute.xlu1 %v3489_v14  ;;  %v595_v42 = vadd.f32 %v591_v29, %v569_v15  ;;  %v594_v22 = vadd.f32 %v590_v11, %v568_v18  ;;  %v951_v7 = vadd.f32 %v947_v55, %v933_v6  ;;  %v965_v17 = vsel %vm961_vm10, %v4190_v48, 0.0  ;;  %v1029_v15 = vld [vmem:[#allocation5 + $0x120] sm:$0xff]  ;;  %v1376_v29 = vld [vmem:[#allocation2 + $0x218] sm:$0xff] }
 0x1ba   : > { %1700 = vperm.xlu1 %3273, %v3898_v63   ;;  %v970_v32 = vadd.f32 %v966_v0, %v952_v4  ;;  %v2917_v46 = vpack.c.bf16 %v1374_v56, %v1373_v41  ;;  %v2889_v6 = vpack.c.bf16 %v1028_v10, %v1027_v2  ;;  %v2919_v18 = vpack.c.bf16 %v1392_v19, %v1391_v34  ;;  %v1394_v0 = vld [vmem:[#allocation2 + $0x2a8] sm:$0xff]  ;;  %v1031_v10 = vld [vmem:[#allocation5 + $0x130] sm:$0xff]  ;;  %v1032_v34 = vld [vmem:[#allocation5 + $0x138] sm:$0xff] }
 0x1bb   : > { %819 = vmatprep.mubr.f32.mxu1 %v595_v42  ;;  %v969_v12 = vadd.f32 %v965_v17, %v951_v7  ;;  %v860_v4 = vsel %vm856_vm15, %v4211_v9, 0.0  ;;  %v1048_v42 = vld [vmem:[#allocation5 + $0x1b8] sm:$0xff]  ;;  %v2921_v55 = vpack.c.bf16 %v1376_v29, %v1375_v16  ;;  %v2893_v56 = vpack.c.bf16 %v1030_v25, %v1029_v15  ;;  %v1378_v7 = vld [vmem:[#allocation2 + $0x228] sm:$0xff]  ;;  %v1033_v16 = vld [vmem:[#allocation5 + $0x140] sm:$0xff] }
 0x1bc   : > { %v4219_v37 = vpop.permute.xlu1 %409  ;;  %820 = vmatmul.mubr.f32.vlgmr.msra.gmra.mrb[0].mxu1 %v594_v22  ;;  %1121 = vmatprep.mubr.f32.mxu0 %v970_v32  ;;  %v1377_v32 = vld [vmem:[#allocation2 + $0x220] sm:$0xff]  ;;  %v2895_v17 = vpack.c.bf16 %v1048_v42, %v1047_v62  ;;  %v1050_v19 = vld [vmem:[#allocation5 + $0x1c8] sm:$0xff]  ;;  %v4250_v25 = vld [vmem:[#allocation5 + $0x158] sm:$0xff]  ;;  %vm450_vm3 = vcmp.eq.s32.totalorder %v3833_v45, %v3882_v53  ;;  %vm451_vm4 = vcmp.eq.s32.totalorder %v3841_v58, %v3882_v53 }
 0x1bd   : > { %2886 = vmatpush3.bf16.msra.mxu1 %v2885_v21  ;;  %v846_v11 = vsel %vm842_vm14, %v4219_v37, 0.0  ;;  %1122 = vmatmul.mubr.f32.vlgmr.msra.gmra.mrb[4].mxu0 %v969_v12  ;;  %v1393_v21 = vld [vmem:[#allocation2 + $0x2a0] sm:$0xff]  ;;  %v845_v22 = vsel %vm841_vm13, %v4219_v37, 0.0  ;;  %v2925_v52 = vpack.c.bf16 %v1378_v7, %v1377_v32  ;;  %v2897_v12 = vpack.c.bf16 %v1032_v34, %v1031_v10  ;;  %v1034_v29 = vld [vmem:[#allocation5 + $0x148] sm:$0xff]  ;;  %v1399_v10 = vld [vmem:[#allocation2 + $0x2d0] sm:$0xff] }
 0x1be   : > { %3274 = vset.pattern.permute.xlu1 %v3482_v1  ;;  %v4232_v60 = vadd.f32 %v860_v4, %v846_v11  ;;  %2888 = vmatprep.subr.bf16.mxu1 %v2887_v31  ;;  %v4240_v2 = vadd.f32 %v859_v35, %v845_v22  ;;  %v1395_v31 = vld [vmem:[#allocation2 + $0x2b0] sm:$0xff]  ;;  %v4257_v42 = vld [vmem:[#allocation5 + $0x1e0] sm:$0xff]  ;;  %v1398_v35 = vld [vmem:[#allocation2 + $0x2c8] sm:$0xff]  ;;  %vm874_vm11 = vcmp.eq.s32.totalorder %v3841_v58, %v3952_v13 }
 0x1bf   : > { %1718 = vperm.xlu1 %3274, %v3898_v63   ;;  %2918 = vmatpush3.bf16.msra.mxu0 %v2917_v46  ;;  %v2923_v63 = vpack.c.bf16 %v1394_v0, %v1393_v21  ;;  %v1379_v46 = vld [vmem:[#allocation2 + $0x230] sm:$0xff]  ;;  %v2927_v4 = vpack.c.bf16 %v1396_v28, %v1395_v31  ;;  %v1397_v22 = vld [vmem:[#allocation2 + $0x2c0] sm:$0xff]  ;;  %v1382_v7 = vld [vmem:[#allocation2 + $0x248] sm:$0xff]  ;;  %vm400_vm6 = vcmp.eq.s32.totalorder %v3833_v45, %v3966_v38 }
 0x1c0   : > { %2920 = vmatprep.subr.bf16.mxu0 %v2919_v18  ;;  %v2899_v18 = vpack.c.bf16 %v1050_v19, %v1049_v40  ;;  %v1051_v11 = vld [vmem:[#allocation5 + $0x1d0] sm:$0xff]  ;;  %v1381_v32 = vld [vmem:[#allocation2 + $0x240] sm:$0xff]  ;;  %v1400_v34 = vld [vmem:[#allocation2 + $0x2d8] sm:$0xff]  ;;  %vm401_vm5 = vcmp.eq.s32.totalorder %v3841_v58, %v3966_v38  ;;  %v2931_v31 = vpack.c.bf16 %v1398_v35, %v1397_v22  ;;  %vm873_vm12 = vcmp.eq.s32.totalorder %v3833_v45, %v3952_v13 }
 0x1c1   : > { %v4242_v41 = vpop.permute.xlu1 %941  ;;  %2890 = vmatpush3.bf16.msra.mxu1 %v2889_v6  ;;  %v1380_v6 = vld [vmem:[#allocation2 + $0x238] sm:$0xff]  ;;  %v4286_v19 = vld [vmem:[#allocation5 + $0x168] sm:$0xff]  ;;  %v4288_v28 = vld [vmem:[#allocation5 + $0x1f0] sm:$0xff]  ;;  %vm503_vm9 = vcmp.eq.s32.totalorder %v3841_v58, %v3956_v8  ;;  %vm502_vm10 = vcmp.eq.s32.totalorder %v3833_v45, %v3956_v8  ;;  %vm477_vm14 = vcmp.eq.s32.totalorder %v3841_v58, %v3994_v51  ;;  %vm892_vm13 = vcmp.eq.s32.totalorder %v3841_v58, %v4000_v57 }
 0x1c2   : > { %2892 = vmatprep.subr.bf16.mxu1 %v2891_v24  ;;  %v4248_v24 = vld [vmem:[#allocation5 + $0x150] sm:$0xff]  ;;  %v2929_v62 = vpack.c.bf16 %v1380_v6, %v1379_v46  ;;  %v2933_v46 = vpack.c.bf16 %v1382_v7, %v1381_v32  ;;  %v437_v13 = vsel %vm425_vm1, %v4211_v9, 0.0  ;;  %v1040_v35 = vld [vmem:[#allocation5 + $0x178] sm:$0xff]  ;;  %vm476_vm15 = vcmp.eq.s32.totalorder %v3833_v45, %v3994_v51  ;;  %v1386_v7 = vld [vmem:[#allocation2 + $0x268] sm:$0xff] }
 0x1c3   : > { %3276 = vset.pattern.permute.xlu1 %v3489_v14  ;;  %2922 = vmatpush3.bf16.msra.mxu0 %v2921_v55  ;;  %v1052_v14 = vld [vmem:[#allocation5 + $0x1d8] sm:$0xff]  ;;  %v1039_v22 = vld [vmem:[#allocation5 + $0x170] sm:$0xff]  ;;  %vm891_vm0 = vcmp.eq.s32.totalorder %v3833_v45, %v4000_v57  ;;  %vm529_vm1 = vcmp.eq.s32.totalorder %v3841_v58, %v3843_v59 }
 0x1c4   : > { %1703 = vperm.xlu1 %3276, %v3927_v30   ;;  %2924 = vmatprep.subr.bf16.mxu0 %v2923_v63  ;;  %v2901_v63 = vpack.c.bf16 %v1034_v29, %v1033_v16 }
 0x1c5   : > { %2894 = vmatpush3.bf16.msra.mxu1 %v2893_v56 }
 0x1c6   : > { %v1284_v15 = vpop.permute.xlu1 %1283  ;;  %2896 = vmatprep.subr.bf16.mxu1 %v2895_v17  ;;  %v4274_v17 = vpop.permute.xlu0 %576 }
 0x1c7   : > { %vm1288_vm7 = vcmp.eq.s32.totalorder %v3833_v45, %v1284_v15  ;;  %vm1289_vm8 = vcmp.eq.s32.totalorder %v3841_v58, %v1284_v15  ;;  %2926 = vmatpush3.bf16.msra.mxu0 %v2925_v52  ;;  %v4290_v52 = vld [vmem:[#allocation5 + $0x1f8] sm:$0xff]  ;;  %v1383_v15 = vld [vmem:[#allocation2 + $0x250] sm:$0xff] }
 0x1c8   : > { %v1292_v21 = vsel %vm1288_vm7, %v4038_v20, 0.0  ;;  %v1293_v0 = vsel %vm1289_vm8, %v4038_v20, 0.0  ;;  %3277 = vset.pattern.permute.xlu1 %v3482_v1  ;;  %v4268_v1 = vld [vmem:[#allocation5 + $0x1e8] sm:$0xff]  ;;  %2928 = vmatprep.subr.bf16.mxu0 %v2927_v4  ;;  %v1401_v4 = vld [vmem:[#allocation2 + $0x2e0] sm:$0xff]  ;;  %vm910_vm7 = vcmp.eq.s32.totalorder %v3841_v58, %v3961_v5  ;;  %vm909_vm8 = vcmp.eq.s32.totalorder %v3833_v45, %v3961_v5 }
 0x1c9   : > { %v4262_v55 = vadd.f32 %v1292_v21, %v4052_v27  ;;  %v4265_v56 = vadd.f32 %v1293_v0, %v4054_v33  ;;  %1721 = vperm.xlu1 %3277, %v3927_v30   ;;  %2898 = vmatpush3.bf16.msra.mxu1 %v2897_v12  ;;  %v2903_v27 = vpack.c.bf16 %v1052_v14, %v1051_v11  ;;  %v4276_v33 = vld [vmem:[#allocation5 + $0x160] sm:$0xff]  ;;  %v1402_v14 = vld [vmem:[#allocation2 + $0x2e8] sm:$0xff] }
 0x1ca   : > { %2900 = vmatprep.subr.bf16.mxu1 %v2899_v18  ;;  %v2905_v12 = vpack.c.bf16 %v4250_v25, %v4248_v24  ;;  %v1384_v18 = vld [vmem:[#allocation2 + $0x258] sm:$0xff]  ;;  %v2907_v16 = vpack.c.bf16 %v4268_v1, %v4257_v42  ;;  %v2935_v11 = vpack.c.bf16 %v1400_v34, %v1399_v10  ;;  %v2909_v24 = vpack.c.bf16 %v4286_v19, %v4276_v33  ;;  %v4323_v0 = vpop.permute.xlu0 %959  ;;  %v1385_v1 = vld [vmem:[#allocation2 + $0x260] sm:$0xff] }
 0x1cb   : > { %v4284_v40 = vpop.permute.xlu1 %457  ;;  %2930 = vmatpush3.bf16.msra.mxu0 %v2929_v62  ;;  %v2911_v25 = vpack.c.bf16 %v4290_v52, %v4288_v28  ;;  %v2937_v21 = vpack.c.bf16 %v1384_v18, %v1383_v15  ;;  %v1404_v33 = vld [vmem:[#allocation2 + $0x2f8] sm:$0xff]  ;;  %v436_v34 = vsel %vm424_vm2, %v4211_v9, 0.0  ;;  %v2913_v52 = vpack.c.bf16 %v1040_v35, %v1039_v22 }
 0x1cc   : > { %v878_v6 = vsel %vm874_vm11, %v4284_v40, 0.0  ;;  %2932 = vmatprep.subr.bf16.mxu0 %v2931_v31  ;;  %v463_v42 = vsel %vm451_vm4, %v4284_v40, 0.0  ;;  %v462_v19 = vsel %vm450_vm3, %v4284_v40, 0.0  ;;  %v2941_v53 = vpack.c.bf16 %v1386_v7, %v1385_v1 }
 0x1cd   : > { %3278 = vset.pattern.permute.xlu1 %v3490_v23  ;;  %2902 = vmatpush3.bf16.msra.mxu1 %v2901_v63  ;;  %v882_v29 = vadd.f32 %v878_v6, %v4232_v60  ;;  %v415_v23 = vsel %vm401_vm5, %v4219_v37, 0.0  ;;  %v877_v60 = vsel %vm873_vm12, %v4284_v40, 0.0  ;;  %v2939_v63 = vpack.c.bf16 %v1402_v14, %v1401_v4  ;;  %v1387_v14 = vld [vmem:[#allocation2 + $0x270] sm:$0xff] }
 0x1ce   : > { %1739 = vperm.xlu1 %3278, %v3927_v30   ;;  %2904 = vmatprep.subr.bf16.mxu1 %v2903_v27  ;;  %v881_v30 = vadd.f32 %v877_v60, %v4240_v2  ;;  %v414_v2 = vsel %vm400_vm6, %v4219_v37, 0.0  ;;  %v441_v32 = vadd.f32 %v437_v13, %v415_v23  ;;  %v1403_v27 = vld [vmem:[#allocation2 + $0x2f0] sm:$0xff]  ;;  %v1388_v23 = vld [vmem:[#allocation2 + $0x278] sm:$0xff]  ;;  %v4373_v51 = vpop.permute.xlu0 %1337  ;;  %v1770_v60 = vld [vmem:[#allocation2 + $0x380] sm:$0xff]  ;;  %vm928_vm2 = vcmp.eq.s32.totalorder %v3841_v58, %v3970_v39 }
 0x1cf   : > { %2934 = vmatpush3.bf16.msra.mxu0 %v2933_v46  ;;  %v440_v28 = vadd.f32 %v436_v34, %v414_v2  ;;  %v1423_v46 = vld [vmem:[#allocation5 + $0x288] sm:$0xff]  ;;  %v2943_v15 = vpack.c.bf16 %v1404_v33, %v1403_v27  ;;  %v2945_v1 = vpack.c.bf16 %v1388_v23, %v1387_v14  ;;  %vm528_vm3 = vcmp.eq.s32.totalorder %v3833_v45, %v3843_v59 }
 0x1d0   : > { %v4325_v62 = vpop.permute.xlu1 %483  ;;  %2936 = vmatprep.subr.bf16.mxu0 %v2935_v11  ;;  %v467_v31 = vadd.f32 %v463_v42, %v441_v32  ;;  %vm927_vm4 = vcmp.eq.s32.totalorder %v3833_v45, %v3970_v39  ;;  %vm554_vm11 = vcmp.eq.s32.totalorder %v3833_v45, %v3857_v36  ;;  %vm555_vm6 = vcmp.eq.s32.totalorder %v3841_v58, %v3857_v36 }
 0x1d1   : > { %2906 = vmatpush3.bf16.msra.mxu1 %v2905_v12  ;;  %v489_v38 = vsel %vm477_vm14, %v4325_v62, 0.0  ;;  %v896_v10 = vsel %vm892_vm13, %v4325_v62, 0.0  ;;  %v1422_v12 = vld [vmem:[#allocation5 + $0x280] sm:$0xff]  ;;  %v488_v6 = vsel %vm476_vm15, %v4325_v62, 0.0  ;;  %v895_v44 = vsel %vm891_vm0, %v4325_v62, 0.0 }
 0x1d2   : > { %2908 = vmatprep.subr.bf16.mxu1 %v2907_v16  ;;  %v493_v16 = vadd.f32 %v489_v38, %v467_v31  ;;  %v900_v11 = vadd.f32 %v896_v10, %v882_v29  ;;  %v466_v4 = vadd.f32 %v462_v19, %v440_v28  ;;  %v2947_v29 = vpack.c.bf16 %v1423_v46, %v1422_v12 }
 0x1d3   : > { %2938 = vmatpush3.bf16.msra.mxu0 %v2937_v21  ;;  %v1771_v21 = vld [vmem:[#allocation2 + $0x388] sm:$0xff]  ;;  %v899_v22 = vadd.f32 %v895_v44, %v881_v30  ;;  %v4392_v30 = vpop.permute.xlu0 %1355  ;;  %vm580_vm5 = vcmp.eq.s32.totalorder %v3833_v45, %v4274_v17  ;;  %vm945_vm12 = vcmp.eq.s32.totalorder %v3833_v45, %v4242_v41  ;;  %vm963_vm14 = vcmp.eq.s32.totalorder %v3833_v45, %v4323_v0 }
 0x1d4   : > { %2940 = vmatprep.subr.bf16.mxu0 %v2939_v63  ;;  %v492_v2 = vadd.f32 %v488_v6, %v466_v4  ;;  %vm964_vm13 = vcmp.eq.s32.totalorder %v3841_v58, %v4323_v0  ;;  %vm980_vm15 = vcmp.eq.s32.totalorder %v3841_v58, %v3944_v3 }
 0x1d5   : > { %v4369_v18 = vpop.permute.xlu1 %509  ;;  %2910 = vmatpush3.bf16.msra.mxu1 %v2909_v24 }
 0x1d6   : > { %v515_v57 = vsel %vm503_vm9, %v4369_v18, 0.0  ;;  %v914_v24 = vsel %vm910_vm7, %v4369_v18, 0.0  ;;  %2912 = vmatprep.subr.bf16.mxu1 %v2911_v25  ;;  %v514_v35 = vsel %vm502_vm10, %v4369_v18, 0.0  ;;  %v913_v63 = vsel %vm909_vm8, %v4369_v18, 0.0 }
 0x1d7   : > { %v519_v13 = vadd.f32 %v515_v57, %v493_v16  ;;  %v918_v42 = vadd.f32 %v914_v24, %v900_v11  ;;  %2942 = vmatpush3.bf16.msra.mxu0 %v2941_v53  ;;  %v518_v32 = vadd.f32 %v514_v35, %v492_v2  ;;  %v917_v5 = vadd.f32 %v913_v63, %v899_v22  ;;  %v4416_v39 = vpop.permute.xlu0 %1250  ;;  %v1408_v2 = vld [vmem:[#allocation5 + $0x210] sm:$0xff]  ;;  %v1409_v35 = vld [vmem:[#allocation5 + $0x218] sm:$0xff]  ;;  %v1426_v63 = vld [vmem:[#allocation5 + $0x2a0] sm:$0xff] }
 0x1d8   : > { %2944 = vmatprep.subr.bf16.mxu0 %v2943_v15  ;;  %v2979_v25 = vpack.c.bf16 %v1771_v21, %v1770_v60  ;;  %vm946_vm9 = vcmp.eq.s32.totalorder %v3841_v58, %v4242_v41  ;;  %vm581_vm10 = vcmp.eq.s32.totalorder %v3841_v58, %v4274_v17  ;;  %v1407_v60 = vld [vmem:[#allocation5 + $0x208] sm:$0xff]  ;;  %v1424_v21 = vld [vmem:[#allocation5 + $0x290] sm:$0xff]  ;;  %vm979_vm8 = vcmp.eq.s32.totalorder %v3833_v45, %v3944_v3 }
 0x1d9   : > { %2914 = vmatpush3.bf16.msra.mxu1 %v2913_v52 }
 0x1da   : > { %v4394_v7 = vpop.permute.xlu1 %535  ;;  %2948 = vmatprep.subr.bf16.mxu1 %v2947_v29  ;;  %v1406_v29 = vld [vmem:[#allocation5 + $0x200] sm:$0xff] }
 0x1db   : > { %v541_v8 = vsel %vm529_vm1, %v4394_v7, 0.0  ;;  %v932_v27 = vsel %vm928_vm2, %v4394_v7, 0.0  ;;  %2946 = vmatpush3.bf16.msra.mxu0 %v2945_v1  ;;  %v540_v10 = vsel %vm528_vm3, %v4394_v7, 0.0  ;;  %v931_v34 = vsel %vm927_vm4, %v4394_v7, 0.0  ;;  %v4437_v14 = vpop.permute.xlu0 %1610  ;;  %v1427_v1 = vld [vmem:[#allocation5 + $0x2a8] sm:$0xff] }
 0x1dc   : > { %v545_v33 = vadd.f32 %v541_v8, %v519_v13  ;;  %v936_v38 = vadd.f32 %v932_v27, %v918_v42  ;;  %2980 = vmatprep.subr.bf16.mxu0 %v2979_v25  ;;  %v544_v19 = vadd.f32 %v540_v10, %v518_v32  ;;  %v935_v31 = vadd.f32 %v931_v34, %v917_v5  ;;  %v1425_v13 = vld [vmem:[#allocation5 + $0x298] sm:$0xff]  ;;  %v1410_v10 = vld [vmem:[#allocation5 + $0x220] sm:$0xff]  ;;  %v1411_v34 = vld [vmem:[#allocation5 + $0x228] sm:$0xff] }
 0x1dd   : > { %v2949_v17 = vpack.c.bf16 %v1407_v60, %v1406_v29  ;;  %v2951_v22 = vpack.c.bf16 %v1425_v13, %v1424_v21  ;;  %vm1342_vm1 = vcmp.eq.s32.totalorder %v3833_v45, %v4373_v51  ;;  %vm1343_vm2 = vcmp.eq.s32.totalorder %v3841_v58, %v4373_v51  ;;  %v1430_v29 = vld [vmem:[#allocation5 + $0x2c0] sm:$0xff]  ;;  %v1431_v51 = vld [vmem:[#allocation5 + $0x2c8] sm:$0xff]  ;;  %v1756_v13 = vld [vmem:[#allocation2 + $0x310] sm:$0xff] }
 0x1de   : > { %v2953_v27 = vpack.c.bf16 %v1409_v35, %v1408_v2  ;;  %v1774_v2 = vld [vmem:[#allocation2 + $0x3a0] sm:$0xff]  ;;  %v2963_v35 = vpack.c.bf16 %v1431_v51, %v1430_v29  ;;  %v1419_v51 = vld [vmem:[#allocation5 + $0x268] sm:$0xff] }
 0x1df   : > { %v4408_v59 = vpop.permute.xlu1 %561  ;;  %v4446_v32 = vpop.permute.xlu0 %1646  ;;  %v1418_v29 = vld [vmem:[#allocation5 + $0x260] sm:$0xff] }
 0x1e0   : > { %v567_v28 = vsel %vm555_vm6, %v4408_v59, 0.0  ;;  %v950_v12 = vsel %vm946_vm9, %v4408_v59, 0.0  ;;  %v566_v36 = vsel %vm554_vm11, %v4408_v59, 0.0  ;;  %v949_v46 = vsel %vm945_vm12, %v4408_v59, 0.0 }
 0x1e1   : > { %v571_v52 = vadd.f32 %v567_v28, %v545_v33  ;;  %v570_v41 = vadd.f32 %v566_v36, %v544_v19  ;;  %v954_v44 = vadd.f32 %v950_v12, %v936_v38  ;;  %v953_v53 = vadd.f32 %v949_v46, %v935_v31  ;;  %v1428_v28 = vld [vmem:[#allocation5 + $0x2b0] sm:$0xff]  ;;  %v1754_v46 = vld [vmem:[#allocation2 + $0x300] sm:$0xff] }
 0x1e2   : > { %v2955_v33 = vpack.c.bf16 %v1427_v1, %v1426_v63  ;;  %v1414_v63 = vld [vmem:[#allocation5 + $0x240] sm:$0xff]  ;;  %v1415_v1 = vld [vmem:[#allocation5 + $0x248] sm:$0xff]  ;;  %vm1360_vm12 = vcmp.eq.s32.totalorder %v3833_v45, %v4392_v30 }
 0x1e4   : > { %v4428_v6 = vpop.permute.xlu1 %587 }
 0x1e5   : > { %v593_v15 = vsel %vm581_vm10, %v4428_v6, 0.0  ;;  %v968_v16 = vsel %vm964_vm13, %v4428_v6, 0.0  ;;  %v592_v11 = vsel %vm580_vm5, %v4428_v6, 0.0  ;;  %v967_v4 = vsel %vm963_vm14, %v4428_v6, 0.0 }
 0x1e6   : > { %v597_v23 = vadd.f32 %v593_v15, %v571_v52  ;;  %v972_v0 = vadd.f32 %v968_v16, %v954_v44  ;;  %v596_v57 = vadd.f32 %v592_v11, %v570_v41  ;;  %v971_v24 = vadd.f32 %v967_v4, %v953_v53  ;;  %v1429_v52 = vld [vmem:[#allocation5 + $0x2b8] sm:$0xff]  ;;  %v1755_v41 = vld [vmem:[#allocation2 + $0x308] sm:$0xff]  ;;  %v4469_v44 = vpop.permute.xlu0 %1664  ;;  %v1772_v15 = vld [vmem:[#allocation2 + $0x390] sm:$0xff] }
 0x1e7   : > { %v2957_v53 = vpack.c.bf16 %v1411_v34, %v1410_v10  ;;  %v1773_v16 = vld [vmem:[#allocation2 + $0x398] sm:$0xff]  ;;  %v2981_v60 = vpack.c.bf16 %v1755_v41, %v1754_v46  ;;  %vm1361_vm5 = vcmp.eq.s32.totalorder %v3841_v58, %v4392_v30  ;;  %v1759_v10 = vld [vmem:[#allocation2 + $0x328] sm:$0xff]  ;;  %v2965_v34 = vpack.c.bf16 %v1415_v1, %v1414_v63  ;;  %v1780_v1 = vld [vmem:[#allocation2 + $0x3d0] sm:$0xff] }
 0x1e8   : > { %824 = vmatprep.mubr.f32.mxu1 %v597_v23  ;;  %1126 = vmatprep.mubr.f32.mxu0 %v972_v0  ;;  %v2959_v0 = vpack.c.bf16 %v1429_v52, %v1428_v28  ;;  %v2983_v21 = vpack.c.bf16 %v1773_v16, %v1772_v15  ;;  %v1416_v52 = vld [vmem:[#allocation5 + $0x250] sm:$0xff]  ;;  %v1435_v46 = vld [vmem:[#allocation5 + $0x2e8] sm:$0xff]  ;;  %v1761_v16 = vld [vmem:[#allocation2 + $0x338] sm:$0xff]  ;;  %v2973_v63 = vpack.c.bf16 %v1419_v51, %v1418_v29 }
 0x1e9   : > { %v1302_v42 = vpop.permute.xlu1 %1301  ;;  %825 = vmatmul.mubr.f32.gmra.mrb[2].mxu1 %v596_v57  ;;  %1127 = vmatmul.mubr.f32.gmra.mrb[6].mxu0 %v971_v24  ;;  %v1412_v57 = vld [vmem:[#allocation5 + $0x230] sm:$0xff]  ;;  %v1413_v24 = vld [vmem:[#allocation5 + $0x238] sm:$0xff]  ;;  %v1767_v29 = vld [vmem:[#allocation2 + $0x368] sm:$0xff]  ;;  %vm1615_vm13 = vcmp.eq.s32.totalorder %v3833_v45, %v4437_v14 }
 0x1ea   : > { %vm1306_vm0 = vcmp.eq.s32.totalorder %v3833_v45, %v1302_v42  ;;  %vm1307_vm7 = vcmp.eq.s32.totalorder %v3841_v58, %v1302_v42  ;;  %2344 = vmatprep.mubr.msk.f32.mxu1 %vm980_vm15, %v3491_v26  ;;  %v1757_v42 = vld [vmem:[#allocation2 + $0x318] sm:$0xff]  ;;  %v1760_v15 = vld [vmem:[#allocation2 + $0x330] sm:$0xff]  ;;  %vm1616_vm15 = vcmp.eq.s32.totalorder %v3841_v58, %v4437_v14 }
 0x1eb   : > { %v1310_v5 = vsel %vm1306_vm0, %v4112_v54, 0.0  ;;  %v1311_v25 = vsel %vm1307_vm7, %v4112_v54, 0.0 }
 0x1ec   : > { %v1314_v3 = vadd.f32 %v1310_v5, %v4262_v55  ;;  %v1315_v38 = vadd.f32 %v1311_v25, %v4265_v56  ;;  %v1346_v55 = vsel %vm1342_vm1, %v4190_v48, 0.0  ;;  %v1347_v56 = vsel %vm1343_vm2, %v4190_v48, 0.0  ;;  %v4479_v5 = vpop.permute.xlu0 %1304 }
 0x1ed   : > { %2345 = vmatmul.mubr.msk.f32.vlgmr.msra.gmra.mrb[4].mxu1 %vm979_vm8, %v3491_v26  ;;  %vm1651_vm8 = vcmp.eq.s32.totalorder %v3833_v45, %v4446_v32  ;;  %vm1652_vm1 = vcmp.eq.s32.totalorder %v3841_v58, %v4446_v32  ;;  %v1796_v32 = vld [vmem:[#allocation5 + $0x348] sm:$0xff] }
 0x1ee   : > { %2950 = vmatpush3.bf16.msra.mxu1 %v2949_v17  ;;  %v1320_v8 = vpop.permute.xlu1 %1319  ;;  %v2961_v17 = vpack.c.bf16 %v1413_v24, %v1412_v57  ;;  %v1779_v57 = vld [vmem:[#allocation2 + $0x3c8] sm:$0xff] }
 0x1ef   : > { %vm1324_vm3 = vcmp.eq.s32.totalorder %v3833_v45, %v1320_v8  ;;  %vm1325_vm4 = vcmp.eq.s32.totalorder %v3841_v58, %v1320_v8  ;;  %2952 = vmatprep.subr.bf16.mxu1 %v2951_v22  ;;  %v1775_v22 = vld [vmem:[#allocation2 + $0x3a8] sm:$0xff]  ;;  %v1432_v8 = vld [vmem:[#allocation5 + $0x2d0] sm:$0xff] }
 0x1f0   : > { %v1328_v19 = vsel %vm1324_vm3, %v4148_v49, 0.0  ;;  %v1329_v31 = vsel %vm1325_vm4, %v4148_v49, 0.0  ;;  %vm1669_vm4 = vcmp.eq.s32.totalorder %v3833_v45, %v4469_v44 }
 0x1f1   : > { %v1332_v12 = vadd.f32 %v1328_v19, %v1314_v3  ;;  %v1333_v36 = vadd.f32 %v1329_v31, %v1315_v38  ;;  %v2987_v3 = vpack.c.bf16 %v1775_v22, %v1774_v2  ;;  %v1758_v38 = vld [vmem:[#allocation2 + $0x320] sm:$0xff]  ;;  %v1776_v19 = vld [vmem:[#allocation2 + $0x3b0] sm:$0xff]  ;;  %v1777_v31 = vld [vmem:[#allocation2 + $0x3b8] sm:$0xff] }
 0x1f2   : > { %2954 = vmatpush3.bf16.msra.mxu1 %v2953_v27  ;;  %v1433_v27 = vld [vmem:[#allocation5 + $0x2d8] sm:$0xff]  ;;  %v2989_v41 = vpack.c.bf16 %v1759_v10, %v1758_v38  ;;  %v1762_v2 = vld [vmem:[#allocation2 + $0x340] sm:$0xff]  ;;  %v1763_v22 = vld [vmem:[#allocation2 + $0x348] sm:$0xff] }
 0x1f3   : > { %v1350_v11 = vadd.f32 %v1346_v55, %v1332_v12  ;;  %v978_v4 = vpop.permute.xlu1 %977  ;;  %2956 = vmatprep.subr.bf16.mxu1 %v2955_v33  ;;  %v1351_v23 = vadd.f32 %v1347_v56, %v1333_v36  ;;  %v2985_v33 = vpack.c.bf16 %v1757_v42, %v1756_v13  ;;  %v2967_v28 = vpack.c.bf16 %v1433_v27, %v1432_v8  ;;  %v1417_v12 = vld [vmem:[#allocation5 + $0x258] sm:$0xff]  ;;  %v1434_v36 = vld [vmem:[#allocation5 + $0x2e0] sm:$0xff] }
 0x1f4   : > { %vm981_vm11 = vcmp.eq.s32.totalorder %v3833_v45, %v978_v4  ;;  %vm982_vm6 = vcmp.eq.s32.totalorder %v3841_v58, %v978_v4  ;;  %v2969_v4 = vpack.c.bf16 %v1417_v12, %v1416_v52  ;;  %v2971_v24 = vpack.c.bf16 %v1435_v46, %v1434_v36  ;;  %v1437_v13 = vld [vmem:[#allocation5 + $0x2f8] sm:$0xff]  ;;  %v1803_v10 = vld [vmem:[#allocation5 + $0x380] sm:$0xff]  ;;  %v1783_v46 = vld [vmem:[#allocation2 + $0x3e8] sm:$0xff] }
 0x1f5   : > { %2346 = vmatprep.mubr.msk.f32.mxu1 %vm982_vm6, %v3491_v26  ;;  %1502 = vmatprep.mubr.f32.mxu0 %v1351_v23  ;;  %v2993_v42 = vpack.c.bf16 %v1761_v16, %v1760_v15  ;;  %v1781_v8 = vld [vmem:[#allocation2 + $0x3d8] sm:$0xff]  ;;  %v1782_v36 = vld [vmem:[#allocation2 + $0x3e0] sm:$0xff]  ;;  %v1788_v15 = vld [vmem:[#allocation5 + $0x308] sm:$0xff] }
 0x1f6   : > { %2958 = vmatpush3.bf16.msra.mxu1 %v2957_v53  ;;  %1503 = vmatmul.mubr.f32.vlgmr.msra.gmra.mrb[8].mxu0 %v1350_v11  ;;  %v2991_v53 = vpack.c.bf16 %v1777_v31, %v1776_v19  ;;  %v4489_v11 = vpop.permute.xlu0 %1682  ;;  %v2997_v19 = vpack.c.bf16 %v1763_v22, %v1762_v2  ;;  %v2999_v31 = vpack.c.bf16 %v1781_v8, %v1780_v1  ;;  %v1765_v52 = vld [vmem:[#allocation2 + $0x358] sm:$0xff]  ;;  %v1805_v16 = vld [vmem:[#allocation5 + $0x390] sm:$0xff]  ;;  %v1807_v22 = vld [vmem:[#allocation5 + $0x3a0] sm:$0xff] }
 0x1f7   : > { %2347 = vmatmul.mubr.msk.f32.gmra.mrb[6].mxu1 %vm981_vm11, %v3491_v26  ;;  %2960 = vmatprep.subr.bf16.mxu1 %v2959_v0  ;;  %v1778_v0 = vld [vmem:[#allocation2 + $0x3c0] sm:$0xff]  ;;  %v1790_v2 = vld [vmem:[#allocation5 + $0x318] sm:$0xff]  ;;  %vm1670_vm11 = vcmp.eq.s32.totalorder %v3841_v58, %v4469_v44 }
 0x1f8   : > { %v4481_v25 = vpop.permute.xlu1 %1218  ;;  %2354 = vmatprep.mubr.msk.f32.mxu1 %vm1361_vm5, %v3491_v26  ;;  %2982 = vmatpush3.bf16.msra.mxu0 %v2981_v60  ;;  %v4507_v8 = vld [vmem:[#allocation5 + $0x320] sm:$0xff] }
 0x1f9   : > { %2984 = vmatprep.subr.bf16.mxu0 %v2983_v21  ;;  %v1436_v21 = vld [vmem:[#allocation5 + $0x2f0] sm:$0xff] }
 0x1fa   : > { %2962 = vmatpush3.bf16.msra.mxu1 %v2961_v17  ;;  %v2995_v17 = vpack.c.bf16 %v1779_v57, %v1778_v0  ;;  %v2975_v27 = vpack.c.bf16 %v1437_v13, %v1436_v21  ;;  %v4495_v38 = vpop.permute.xlu0 %1685  ;;  %v3003_v57 = vpack.c.bf16 %v1783_v46, %v1782_v36  ;;  %v1789_v21 = vld [vmem:[#allocation5 + $0x310] sm:$0xff] }
 0x1fb   : > { %2964 = vmatprep.subr.bf16.mxu1 %v2963_v35  ;;  %v1784_v13 = vld [vmem:[#allocation2 + $0x3f0] sm:$0xff]  ;;  %v3017_v36 = vpack.c.bf16 %v1790_v2, %v1789_v21 }
 0x1fc   : > { %2986 = vmatpush3.bf16.msra.mxu0 %v2985_v33  ;;  %v1420_v33 = vld [vmem:[#allocation5 + $0x270] sm:$0xff] }
 0x1fd   : > { %v4487_v55 = vpop.permute.xlu1 %1232  ;;  %v2409_v56 = vpop.f32.mrb[0].mxu0  ;;  %2988 = vmatprep.subr.bf16.mxu0 %v2987_v3  ;;  %v1421_v3 = vld [vmem:[#allocation5 + $0x278] sm:$0xff] }
 0x1fe   : > { %2966 = vmatpush3.bf16.msra.mxu1 %v2965_v34  ;;  %v2410_v23 = vpop.f32.mrb[1].mxu0  ;;  %v1804_v34 = vld [vmem:[#allocation5 + $0x388] sm:$0xff]  ;;  %v2977_v12 = vpack.c.bf16 %v1421_v3, %v1420_v33  ;;  %v4511_v33 = vld [vmem:[#allocation5 + $0x3b0] sm:$0xff]  ;;  %vm1236_vm6 = vcmp.eq.s32.totalorder %v3833_v45, %v4487_v55  ;;  %vm1237_vm5 = vcmp.eq.s32.totalorder %v3841_v58, %v4487_v55 }
 0x1ff   : > { %2968 = vmatprep.subr.bf16.mxu1 %v2967_v28  ;;  %v4491_v60 = vadd.f32 %v2410_v23, %v2409_v56  ;;  %v1764_v28 = vld [vmem:[#allocation2 + $0x350] sm:$0xff]  ;;  %v3011_v56 = vpack.c.bf16 %v1804_v34, %v1803_v10  ;;  %v4497_v23 = vpop.permute.xlu0 %1358  ;;  %v4521_v34 = vld [vmem:[#allocation5 + $0x3b8] sm:$0xff] }
 0x200   : > { %2990 = vmatpush3.bf16.msra.mxu0 %v2989_v41  ;;  %v3001_v0 = vpack.c.bf16 %v1765_v52, %v1764_v28  ;;  %vm1363_vm10 = vcmp.eq.s32.totalorder %v3841_v58, %v4497_v23  ;;  %v1769_v28 = vld [vmem:[#allocation2 + $0x378] sm:$0xff]  ;;  %vm1362_vm0 = vcmp.eq.s32.totalorder %v3833_v45, %v4497_v23 }
 0x201   : > { %2992 = vmatprep.subr.bf16.mxu0 %v2991_v53  ;;  %v1787_v53 = vld [vmem:[#allocation5 + $0x300] sm:$0xff] }
 0x202   : > { %2970 = vmatpush3.bf16.msra.mxu1 %v2969_v4  ;;  %v4493_v35 = vpop.permute.xlu1 %1268  ;;  %v1806_v4 = vld [vmem:[#allocation5 + $0x398] sm:$0xff]  ;;  %v3013_v51 = vpack.c.bf16 %v1788_v15, %v1787_v53  ;;  %v1793_v53 = vld [vmem:[#allocation5 + $0x330] sm:$0xff] }
 0x203   : > { %2972 = vmatprep.subr.bf16.mxu1 %v2971_v24  ;;  %v1766_v24 = vld [vmem:[#allocation2 + $0x360] sm:$0xff]  ;;  %v4513_v10 = vpop.permute.xlu0 %1736 }
 0x204   : > { %2994 = vmatpush3.bf16.msra.mxu0 %v2993_v42  ;;  %v1785_v42 = vld [vmem:[#allocation2 + $0x3f8] sm:$0xff]  ;;  %v3005_v3 = vpack.c.bf16 %v1767_v29, %v1766_v24  ;;  %vm1742_vm7 = vcmp.eq.s32.totalorder %v3841_v58, %v4513_v10  ;;  %v1620_v29 = vsel %vm1616_vm15, %v3980_v43, 0.0  ;;  %vm1255_vm15 = vcmp.eq.s32.totalorder %v3841_v58, %v4416_v39 }
 0x205   : > { %2996 = vmatprep.subr.bf16.mxu0 %v2995_v17  ;;  %v3015_v17 = vpack.c.bf16 %v1806_v4, %v1805_v16  ;;  %v1619_v16 = vsel %vm1615_vm13, %v3980_v43, 0.0  ;;  %vm1254_vm13 = vcmp.eq.s32.totalorder %v3833_v45, %v4416_v39 }
 0x206   : > { %2974 = vmatpush3.bf16.msra.mxu1 %v2973_v63  ;;  %v1808_v63 = vld [vmem:[#allocation5 + $0x3a8] sm:$0xff] }
 0x207   : > { %v1597_v41 = vpop.permute.xlu1 %1596  ;;  %2976 = vmatprep.subr.bf16.mxu1 %v2975_v27  ;;  %v4509_v27 = vld [vmem:[#allocation5 + $0x328] sm:$0xff] }
 0x208   : > { %2998 = vmatpush3.bf16.msra.mxu0 %v2997_v19  ;;  %vm1601_vm9 = vcmp.eq.s32.totalorder %v3833_v45, %v1597_v41  ;;  %vm1602_vm14 = vcmp.eq.s32.totalorder %v3841_v58, %v1597_v41  ;;  %v3007_v19 = vpack.c.bf16 %v1785_v42, %v1784_v13  ;;  %v3021_v4 = vpack.c.bf16 %v4509_v27, %v4507_v8 }
 0x209   : > { %3000 = vmatprep.subr.bf16.mxu0 %v2999_v31  ;;  %v1768_v31 = vld [vmem:[#allocation2 + $0x370] sm:$0xff]  ;;  %v2412_v52 = vpop.f32.mrb[2].mxu0  ;;  %v1606_v46 = vsel %vm1602_vm14, %v3982_v47, 0.0  ;;  %v3023_v41 = vpack.c.bf16 %v4521_v34, %v4511_v33  ;;  %v1673_v34 = vsel %vm1669_vm4, %v4038_v20, 0.0  ;;  %vm1223_vm14 = vcmp.eq.s32.totalorder %v3841_v58, %v4481_v25 }
 0x20a   : > { %2978 = vmatpush3.bf16.msra.mxu1 %v2977_v12  ;;  %v1605_v12 = vsel %vm1601_vm9, %v3982_v47, 0.0  ;;  %v2413_v30 = vpop.f32.mrb[3].mxu0  ;;  %v1794_v47 = vld [vmem:[#allocation5 + $0x338] sm:$0xff]  ;;  %v3009_v24 = vpack.c.bf16 %v1769_v28, %v1768_v31  ;;  %v1624_v13 = vadd.f32 %v1620_v29, %v1606_v46  ;;  %vm1688_vm9 = vcmp.eq.s32.totalorder %v3841_v58, %v4489_v11 }
 0x20b   : > { %3012 = vmatprep.subr.bf16.mxu1 %v3011_v56  ;;  %v3019_v56 = vpack.c.bf16 %v1808_v63, %v1807_v22  ;;  %v4539_v15 = vadd.f32 %v2413_v30, %v2412_v52  ;;  %v3025_v42 = vpack.c.bf16 %v1794_v47, %v1793_v53  ;;  %v1655_v22 = vsel %vm1651_vm8, %v4002_v61, 0.0  ;;  %v1795_v63 = vld [vmem:[#allocation5 + $0x340] sm:$0xff]  ;;  %v1797_v53 = vld [vmem:[#allocation5 + $0x350] sm:$0xff]  ;;  %v1816_v47 = vld [vmem:[#allocation5 + $0x3e8] sm:$0xff] }
 0x20c   : > { %v4505_v1 = vpop.permute.xlu1 %1286  ;;  %3002 = vmatpush3.bf16.msra.mxu0 %v3001_v0  ;;  %v4549_v0 = vld [vmem:[#allocation5 + $0x3c0] sm:$0xff]  ;;  %v1240_v31 = vsel %vm1236_vm6, %v4211_v9, 0.0  ;;  %v1241_v28 = vsel %vm1237_vm5, %v4211_v9, 0.0  ;;  %v1227_v46 = vsel %vm1223_vm14, %v4219_v37, 0.0  ;;  %vm1741_vm6 = vcmp.eq.s32.totalorder %v3833_v45, %v4513_v10 }
 0x20d   : > { %2355 = vmatmul.mubr.msk.f32.vlgmr.msra.gmra.mrb[8].mxu1 %vm1360_vm12, %v3491_v26  ;;  %3004 = vmatprep.subr.bf16.mxu0 %v3003_v57  ;;  %v4551_v57 = vld [vmem:[#allocation5 + $0x3c8] sm:$0xff]  ;;  %vm1687_vm12 = vcmp.eq.s32.totalorder %v3833_v45, %v4489_v11  ;;  %vm1290_vm8 = vcmp.eq.s32.totalorder %v3833_v45, %v4505_v1 }
 0x20e   : > { %3014 = vmatpush3.bf16.msra.mxu1 %v3013_v51  ;;  %2356 = vmatprep.mubr.msk.f32.mxu1 %vm1363_vm10, %v3491_v26  ;;  %v1623_v51 = vadd.f32 %v1619_v16, %v1605_v12  ;;  %v3027_v23 = vpack.c.bf16 %v4551_v57, %v4549_v0  ;;  %vm1222_vm10 = vcmp.eq.s32.totalorder %v3833_v45, %v4481_v25  ;;  %v1692_v25 = vsel %vm1688_vm9, %v4112_v54, 0.0 }
 0x20f   : > { %3016 = vmatprep.subr.bf16.mxu1 %v3015_v17  ;;  %v3029_v12 = vpack.c.bf16 %v1796_v32, %v1795_v63  ;;  %v1226_v30 = vsel %vm1222_vm10, %v4219_v37, 0.0  ;;  %v1258_v0 = vsel %vm1254_vm13, %v4284_v40, 0.0  ;;  %v1259_v57 = vsel %vm1255_vm15, %v4284_v40, 0.0 }
 0x210   : > { %3006 = vmatpush3.bf16.msra.mxu0 %v3005_v3  ;;  %v1814_v3 = vld [vmem:[#allocation5 + $0x3d8] sm:$0xff]  ;;  %v1244_v11 = vadd.f32 %v1240_v31, %v1226_v30 }
 0x211   : > { %v1629_v21 = vpop.permute.xlu1 %1628  ;;  %2357 = vmatmul.mubr.msk.f32.gmra.mrb[10].mxu1 %vm1362_vm0, %v3491_v26  ;;  %3008 = vmatprep.subr.bf16.mxu0 %v3007_v19  ;;  %v1674_v19 = vsel %vm1670_vm11, %v4038_v20, 0.0  ;;  %v1691_v20 = vsel %vm1687_vm12, %v4112_v54, 0.0  ;;  %v1245_v54 = vadd.f32 %v1241_v28, %v1227_v46  ;;  %vm1272_vm0 = vcmp.eq.s32.totalorder %v3833_v45, %v4493_v35 }
 0x212   : > { %vm1633_vm2 = vcmp.eq.s32.totalorder %v3833_v45, %v1629_v21  ;;  %vm1634_vm3 = vcmp.eq.s32.totalorder %v3841_v58, %v1629_v21  ;;  %3018 = vmatpush3.bf16.msra.mxu1 %v3017_v36  ;;  %2364 = vmatprep.mubr.msk.f32.mxu1 %vm1742_vm7, %v3491_v26  ;;  %vm1273_vm7 = vcmp.eq.s32.totalorder %v3841_v58, %v4493_v35  ;;  %v1799_v21 = vld [vmem:[#allocation5 + $0x360] sm:$0xff]  ;;  %v1276_v35 = vsel %vm1272_vm0, %v4325_v62, 0.0 }
 0x213   : > { %v1637_v43 = vsel %vm1633_vm2, %v3992_v50, 0.0  ;;  %v1638_v14 = vsel %vm1634_vm3, %v3992_v50, 0.0  ;;  %3020 = vmatprep.subr.bf16.mxu1 %v3019_v56  ;;  %v1656_v50 = vsel %vm1652_vm1, %v4002_v61, 0.0  ;;  %v1813_v61 = vld [vmem:[#allocation5 + $0x3d0] sm:$0xff]  ;;  %v1262_v29 = vadd.f32 %v1258_v0, %v1244_v11 }
 0x214   : > { %v1641_v17 = vadd.f32 %v1637_v43, %v1623_v51  ;;  %v1642_v2 = vadd.f32 %v1638_v14, %v1624_v13  ;;  %3010 = vmatpush3.bf16.msra.mxu0 %v3009_v24  ;;  %v3031_v36 = vpack.c.bf16 %v1814_v3, %v1813_v61  ;;  %v1263_v51 = vadd.f32 %v1259_v57, %v1245_v54  ;;  %v1800_v13 = vld [vmem:[#allocation5 + $0x368] sm:$0xff] }
 0x215   : > { %vm1291_vm1 = vcmp.eq.s32.totalorder %v3841_v58, %v4505_v1  ;;  %v1277_v43 = vsel %vm1273_vm7, %v4325_v62, 0.0  ;;  %vm1308_vm2 = vcmp.eq.s32.totalorder %v3833_v45, %v4479_v5  ;;  %vm1309_vm3 = vcmp.eq.s32.totalorder %v3841_v58, %v4479_v5 }
 0x216   : > { %v1659_v8 = vadd.f32 %v1655_v22, %v1641_v17  ;;  %v1660_v27 = vadd.f32 %v1656_v50, %v1642_v2  ;;  %v4595_v33 = vpop.permute.xlu1 %1599  ;;  %3022 = vmatpush3.bf16.msra.mxu1 %v3021_v4  ;;  %v1798_v4 = vld [vmem:[#allocation5 + $0x358] sm:$0xff]  ;;  %v1294_v17 = vsel %vm1290_vm8, %v4369_v18, 0.0  ;;  %v1295_v2 = vsel %vm1291_vm1, %v4369_v18, 0.0 }
 0x217   : > { %3024 = vmatprep.subr.bf16.mxu1 %v3023_v41  ;;  %v1815_v41 = vld [vmem:[#allocation5 + $0x3e0] sm:$0xff]  ;;  %v3033_v39 = vpack.c.bf16 %v1798_v4, %v1797_v53  ;;  %v3037_v22 = vpack.c.bf16 %v1800_v13, %v1799_v21  ;;  %v1280_v50 = vadd.f32 %v1276_v35, %v1262_v29  ;;  %v1281_v63 = vadd.f32 %v1277_v43, %v1263_v51 }
 0x218   : > { %v1677_v52 = vadd.f32 %v1673_v34, %v1659_v8  ;;  %v1678_v44 = vadd.f32 %v1674_v19, %v1660_v27  ;;  %v3035_v24 = vpack.c.bf16 %v1816_v47, %v1815_v41  ;;  %v1801_v8 = vld [vmem:[#allocation5 + $0x370] sm:$0xff]  ;;  %v1802_v27 = vld [vmem:[#allocation5 + $0x378] sm:$0xff]  ;;  %v1312_v19 = vsel %vm1308_vm2, %v4394_v7, 0.0 }
 0x219   : > { %v1298_v32 = vadd.f32 %v1294_v17, %v1280_v50  ;;  %v1299_v61 = vadd.f32 %v1295_v2, %v1281_v63  ;;  %v3041_v34 = vpack.c.bf16 %v1802_v27, %v1801_v8  ;;  %v1313_v31 = vsel %vm1309_vm3, %v4394_v7, 0.0 }
 0x21a   : > { %3026 = vmatpush3.bf16.msra.mxu1 %v3025_v42  ;;  %v4627_v55 = vadd.f32 %v1691_v20, %v1677_v52  ;;  %v4629_v56 = vadd.f32 %v1692_v25, %v1678_v44  ;;  %v1817_v42 = vld [vmem:[#allocation5 + $0x3f0] sm:$0xff]  ;;  %vm1603_vm14 = vcmp.eq.s32.totalorder %v3833_v45, %v4595_v33  ;;  %vm1604_vm13 = vcmp.eq.s32.totalorder %v3841_v58, %v4595_v33 }
 0x21b   : > { %v4635_v16 = vpop.permute.xlu1 %1613  ;;  %3028 = vmatprep.subr.bf16.mxu1 %v3027_v23  ;;  %v1818_v23 = vld [vmem:[#allocation5 + $0x3f8] sm:$0xff]  ;;  %v1316_v44 = vadd.f32 %v1312_v19, %v1298_v32  ;;  %v1317_v5 = vadd.f32 %v1313_v31, %v1299_v61  ;;  %v1607_v47 = vsel %vm1603_vm14, %v4219_v37, 0.0  ;;  %v1608_v0 = vsel %vm1604_vm13, %v4219_v37, 0.0  ;;  %v1985_v31 = vld [vmem:[#allocation7 + $0x8] sm:$0xff] }
 0x21c   : > { %v3039_v1 = vpack.c.bf16 %v1818_v23, %v1817_v42  ;;  %vm1617_vm9 = vcmp.eq.s32.totalorder %v3833_v45, %v4635_v16  ;;  %vm1618_vm10 = vcmp.eq.s32.totalorder %v3841_v58, %v4635_v16 }
 0x21d   : > { %v1621_v10 = vsel %vm1617_vm9, %v4211_v9, 0.0  ;;  %v1622_v4 = vsel %vm1618_vm10, %v4211_v9, 0.0 }
 0x21e   : > { %3030 = vmatpush3.bf16.msra.mxu1 %v3029_v12  ;;  %v1625_v57 = vadd.f32 %v1621_v10, %v1607_v47 }
 0x21f   : > { %3032 = vmatprep.subr.bf16.mxu1 %v3031_v36 }
 0x220   : > { %v1323_v14 = vpop.permute.xlu1 %1322 }
 0x221   : > { %vm1326_vm4 = vcmp.eq.s32.totalorder %v3833_v45, %v1323_v14  ;;  %vm1327_vm11 = vcmp.eq.s32.totalorder %v3841_v58, %v1323_v14 }
 0x222   : > { %3034 = vmatpush3.bf16.msra.mxu1 %v3033_v39  ;;  %v1330_v28 = vsel %vm1326_vm4, %v4408_v59, 0.0  ;;  %v1331_v52 = vsel %vm1327_vm11, %v4408_v59, 0.0  ;;  %v1626_v39 = vadd.f32 %v1622_v4, %v1608_v0  ;;  %v1992_v4 = vld [vmem:[#allocation7 + $0x40] sm:$0xff]  ;;  %v1994_v0 = vld [vmem:[#allocation7 + $0x50] sm:$0xff] }
 0x223   : > { %3036 = vmatprep.subr.bf16.mxu1 %v3035_v24  ;;  %v1334_v25 = vadd.f32 %v1330_v28, %v1316_v44  ;;  %v1335_v12 = vadd.f32 %v1331_v52, %v1317_v5  ;;  %v1986_v28 = vld [vmem:[#allocation7 + $0x10] sm:$0xff]  ;;  %v1987_v44 = vld [vmem:[#allocation7 + $0x18] sm:$0xff] }
 0x224   : > { %v3047_v5 = vpack.c.bf16 %v1987_v44, %v1986_v28 }
 0x225   : > { %v1632_v3 = vpop.permute.xlu1 %1631 }
 0x226   : > { %3038 = vmatpush3.bf16.msra.mxu1 %v3037_v22  ;;  %vm1635_vm15 = vcmp.eq.s32.totalorder %v3833_v45, %v1632_v3  ;;  %vm1636_vm0 = vcmp.eq.s32.totalorder %v3841_v58, %v1632_v3 }
 0x227   : > { %3040 = vmatprep.subr.bf16.mxu1 %v3039_v1  ;;  %v1639_v16 = vsel %vm1635_vm15, %v4284_v40, 0.0  ;;  %v1640_v33 = vsel %vm1636_vm0, %v4284_v40, 0.0 }
 0x228   : > { %v1643_v37 = vadd.f32 %v1639_v16, %v1625_v57  ;;  %v1644_v29 = vadd.f32 %v1640_v33, %v1626_v39  ;;  %v1995_v16 = vld [vmem:[#allocation7 + $0x58] sm:$0xff]  ;;  %v1997_v57 = vld [vmem:[#allocation7 + $0x68] sm:$0xff] }
 0x229   : > { %v3063_v33 = vpack.c.bf16 %v1995_v16, %v1994_v0 }
 0x22a   : > { %v1341_v20 = vpop.permute.xlu1 %1340  ;;  %3042 = vmatpush3.bf16.msra.mxu1 %v3041_v34 }
 0x22b   : > { %vm1344_vm5 = vcmp.eq.s32.totalorder %v3833_v45, %v1341_v20  ;;  %vm1345_vm12 = vcmp.eq.s32.totalorder %v3841_v58, %v1341_v20  ;;  %v1989_v20 = vld [vmem:[#allocation7 + $0x28] sm:$0xff] }
 0x22c   : > { %v1348_v36 = vsel %vm1344_vm5, %v4428_v6, 0.0  ;;  %v1349_v30 = vsel %vm1345_vm12, %v4428_v6, 0.0  ;;  %vm1689_vm5 = vcmp.eq.s32.totalorder %v3833_v45, %v4495_v38  ;;  %vm1690_vm12 = vcmp.eq.s32.totalorder %v3841_v58, %v4495_v38 }
 0x22d   : > { %v1352_v46 = vadd.f32 %v1348_v36, %v1334_v25  ;;  %v1353_v53 = vadd.f32 %v1349_v30, %v1335_v12  ;;  %2365 = vmatmul.mubr.msk.f32.vlgmr.msra.gmra.mrb[12].mxu1 %vm1741_vm6, %v3491_v26 }
 0x22f   : > { %v1650_v11 = vpop.permute.xlu1 %1649  ;;  %1507 = vmatprep.mubr.f32.mxu0 %v1353_v53 }
 0x230   : > { %1508 = vmatmul.mubr.f32.gmra.mrb[10].mxu0 %v1352_v46  ;;  %vm1653_vm1 = vcmp.eq.s32.totalorder %v3833_v45, %v1650_v11  ;;  %vm1654_vm2 = vcmp.eq.s32.totalorder %v3841_v58, %v1650_v11  ;;  %v1990_v11 = vld [vmem:[#allocation7 + $0x30] sm:$0xff] }
 0x231   : > { %v1657_v51 = vsel %vm1653_vm1, %v4325_v62, 0.0  ;;  %v1658_v40 = vsel %vm1654_vm2, %v4325_v62, 0.0 }
 0x232   : > { %v1661_v23 = vadd.f32 %v1657_v51, %v1643_v37  ;;  %v1662_v17 = vadd.f32 %v1658_v40, %v1644_v29  ;;  %v2084_v29 = vld [vmem:[#allocation8] sm:$0xff]  ;;  %v2085_v51 = vld [vmem:[#allocation8 + $0x8] sm:$0xff]  ;;  %v2086_v40 = vld [vmem:[#allocation8 + $0x10] sm:$0xff] }
 0x234   : > { %v1668_v54 = vpop.permute.xlu1 %1667 }
 0x235   : > { %vm1671_vm3 = vcmp.eq.s32.totalorder %v3833_v45, %v1668_v54  ;;  %vm1672_vm4 = vcmp.eq.s32.totalorder %v3841_v58, %v1668_v54  ;;  %v1991_v54 = vld [vmem:[#allocation7 + $0x38] sm:$0xff] }
 0x236   : > { %v1676_v43 = vsel %vm1672_vm4, %v4369_v18, 0.0  ;;  %v3055_v10 = vpack.c.bf16 %v1991_v54, %v1990_v11 }
 0x239   : > { %v1701_v41 = vpop.permute.xlu1 %1700 }
 0x23a   : > { %vm1705_vm7 = vcmp.eq.s32.totalorder %v3833_v45, %v1701_v41  ;;  %vm1706_vm8 = vcmp.eq.s32.totalorder %v3841_v58, %v1701_v41  ;;  %v1993_v41 = vld [vmem:[#allocation7 + $0x48] sm:$0xff] }
 0x23b   : > { %v1709_v9 = vsel %vm1705_vm7, %v4148_v49, 0.0  ;;  %v1710_v24 = vsel %vm1706_vm8, %v4148_v49, 0.0  ;;  %v1675_v49 = vsel %vm1671_vm3, %v4369_v18, 0.0  ;;  %v1694_v18 = vsel %vm1690_vm12, %v4394_v7, 0.0 }
 0x23c   : > { %v1713_v13 = vadd.f32 %v1709_v9, %v4627_v55  ;;  %v1714_v35 = vadd.f32 %v1710_v24, %v4629_v56  ;;  %v1679_v55 = vadd.f32 %v1675_v49, %v1661_v23  ;;  %v1680_v56 = vadd.f32 %v1676_v43, %v1662_v17  ;;  %v1998_v9 = vld [vmem:[#allocation7 + $0x70] sm:$0xff]  ;;  %v1999_v24 = vld [vmem:[#allocation7 + $0x78] sm:$0xff]  ;;  %v2088_v49 = vld [vmem:[#allocation8 + $0x20] sm:$0xff] }
 0x23d   : > { %v3059_v47 = vpack.c.bf16 %v1993_v41, %v1992_v4  ;;  %v3071_v37 = vpack.c.bf16 %v1999_v24, %v1998_v9  ;;  %v2089_v43 = vld [vmem:[#allocation8 + $0x28] sm:$0xff]  ;;  %v2091_v23 = vld [vmem:[#allocation8 + $0x38] sm:$0xff] }
 0x23e   : > { %v1719_v21 = vpop.permute.xlu1 %1718  ;;  %v1698_v8 = vadd.f32 %v1694_v18, %v1680_v56  ;;  %v2094_v56 = vld [vmem:[#allocation8 + $0x50] sm:$0xff] }
 0x23f   : > { %vm1723_vm11 = vcmp.eq.s32.totalorder %v3833_v45, %v1719_v21  ;;  %vm1724_vm6 = vcmp.eq.s32.totalorder %v3841_v58, %v1719_v21  ;;  %v3075_v21 = vpack.c.bf16 %v2085_v51, %v2084_v29 }
 0x240   : > { %v1727_v14 = vsel %vm1723_vm11, %v4190_v48, 0.0  ;;  %v1728_v42 = vsel %vm1724_vm6, %v4190_v48, 0.0  ;;  %v1693_v48 = vsel %vm1689_vm5, %v4394_v7, 0.0 }
 0x241   : > { %v1731_v62 = vadd.f32 %v1727_v14, %v1713_v13  ;;  %v1732_v2 = vadd.f32 %v1728_v42, %v1714_v35  ;;  %v1697_v1 = vadd.f32 %v1693_v48, %v1679_v55  ;;  %v2087_v13 = vld [vmem:[#allocation8 + $0x18] sm:$0xff]  ;;  %3076 = vmatprep.subr.bf16.mxu1 %v3075_v21  ;;  %v3083_v14 = vpack.c.bf16 %v2089_v43, %v2088_v49  ;;  %v2090_v42 = vld [vmem:[#allocation8 + $0x30] sm:$0xff] }
 0x242   : > { %v3079_v35 = vpack.c.bf16 %v2087_v13, %v2086_v40  ;;  %3078 = vmatpush3.bf16.msra.mxu1 %v3075_v21  ;;  %v3087_v17 = vpack.c.bf16 %v2091_v23, %v2090_v42  ;;  %v2098_v23 = vld [vmem:[#allocation8 + $0x70] sm:$0xff] }
 0x243   : > { %v1704_v22 = vpop.permute.xlu1 %1703  ;;  %1883 = vmatprep.mubr.f32.mxu0 %v1732_v2  ;;  %v2093_v2 = vld [vmem:[#allocation8 + $0x48] sm:$0xff] }
 0x244   : > { %vm1707_vm9 = vcmp.eq.s32.totalorder %v3833_v45, %v1704_v22  ;;  %vm1708_vm10 = vcmp.eq.s32.totalorder %v3841_v58, %v1704_v22  ;;  %1884 = vmatmul.mubr.f32.vlgmr.msra.gmra.mrb[12].mxu0 %v1731_v62  ;;  %3080 = vmatprep.subr.bf16.mxu1 %v3079_v35  ;;  %v2092_v62 = vld [vmem:[#allocation8 + $0x40] sm:$0xff]  ;;  %v2095_v22 = vld [vmem:[#allocation8 + $0x58] sm:$0xff] }
 0x245   : > { %v1711_v50 = vsel %vm1707_vm9, %v4408_v59, 0.0  ;;  %v1712_v63 = vsel %vm1708_vm10, %v4408_v59, 0.0  ;;  %v1984_v59 = vld [vmem:[#allocation7] sm:$0xff]  ;;  %v3091_v55 = vpack.c.bf16 %v2093_v2, %v2092_v62 }
 0x246   : > { %v1715_v27 = vadd.f32 %v1711_v50, %v1697_v1  ;;  %v1716_v32 = vadd.f32 %v1712_v63, %v1698_v8  ;;  %v3043_v52 = vpack.c.bf16 %v1985_v31, %v1984_v59  ;;  %3082 = vmatpush3.bf16.msra.mxu1 %v3079_v35  ;;  %v2369_v2 = vld [vmem:[%s4789_s5] ss:$0 sm:$0xff] }
 0x247   : > { %3084 = vmatprep.subr.bf16.mxu1 %v3083_v14 }
 0x248   : > { %v1722_v38 = vpop.permute.xlu1 %1721  ;;  %3044 = vmatprep.subr.bf16.mxu0 %v3043_v52 }
 0x249   : > { %vm1725_vm14 = vcmp.eq.s32.totalorder %v3833_v45, %v1722_v38  ;;  %vm1726_vm13 = vcmp.eq.s32.totalorder %v3841_v58, %v1722_v38  ;;  %3046 = vmatpush3.bf16.msra.mxu0 %v3043_v52  ;;  %v3095_v38 = vpack.c.bf16 %v2095_v22, %v2094_v56 }
 0x24a   : > { %v1729_v61 = vsel %vm1725_vm14, %v4428_v6, 0.0  ;;  %v1730_v3 = vsel %vm1726_vm13, %v4428_v6, 0.0  ;;  %v1988_v6 = vld [vmem:[#allocation7 + $0x20] sm:$0xff]  ;;  %3048 = vmatprep.subr.bf16.mxu0 %v3047_v5  ;;  %3086 = vmatpush3.bf16.msra.mxu1 %v3083_v14 }
 0x24b   : > { %v1733_v34 = vadd.f32 %v1729_v61, %v1715_v27  ;;  %v1734_v19 = vadd.f32 %v1730_v3, %v1716_v32  ;;  %v3051_v25 = vpack.c.bf16 %v1989_v20, %v1988_v6  ;;  %3088 = vmatprep.subr.bf16.mxu1 %v3087_v17  ;;  %v2096_v27 = vld [vmem:[#allocation8 + $0x60] sm:$0xff]  ;;  %v2097_v32 = vld [vmem:[#allocation8 + $0x68] sm:$0xff] }
 0x24c   : > { %v3099_v59 = vpack.c.bf16 %v2097_v32, %v2096_v27 }
 0x24d   : > { %v1740_v7 = vpop.permute.xlu1 %1739  ;;  %1888 = vmatprep.mubr.f32.mxu0 %v1734_v19  ;;  %3050 = vmatpush3.bf16.msra.mxu0 %v3047_v5 }
 0x24e   : > { %vm1743_vm15 = vcmp.eq.s32.totalorder %v3833_v45, %v1740_v7  ;;  %vm1744_vm0 = vcmp.eq.s32.totalorder %v3841_v58, %v1740_v7  ;;  %1889 = vmatmul.mubr.f32.gmra.mrb[14].mxu0 %v1733_v34  ;;  %3052 = vmatprep.subr.bf16.mxu0 %v3051_v25 }
 0x24f   : > { %2366 = vmatprep.mubr.msk.f32.mxu1 %vm1744_vm0, %v3491_v26  ;;  %3090 = vmatpush3.bf16.msra.mxu1 %v3087_v17  ;;  %v2099_v17 = vld [vmem:[#allocation8 + $0x78] sm:$0xff] }
 0x250   : > { %2367 = vmatmul.mubr.msk.f32.gmra.mrb[14].mxu1 %vm1743_vm15, %v3491_v26  ;;  %3092 = vmatprep.subr.bf16.mxu1 %v3091_v55  ;;  %v3103_v62 = vpack.c.bf16 %v2099_v17, %v2098_v23 }
 0x251   : > { %3054 = vmatpush3.bf16.msra.mxu0 %v3051_v25 }
 0x252   : > { %3056 = vmatprep.subr.bf16.mxu0 %v3055_v10 }
 0x253   : > { %3094 = vmatpush3.bf16.msra.mxu1 %v3091_v55 }
 0x254   : > { %3096 = vmatprep.subr.bf16.mxu1 %v3095_v38 }
 0x255   : > { %3058 = vmatpush3.bf16.msra.mxu0 %v3055_v10 }
 0x256   : > { %3060 = vmatprep.subr.bf16.mxu0 %v3059_v47 }
 0x257   : > { %3098 = vmatpush3.bf16.msra.mxu1 %v3095_v38 }
 0x258   : > { %3100 = vmatprep.subr.bf16.mxu1 %v3099_v59 }
 0x259   : > { %3062 = vmatpush3.bf16.msra.mxu0 %v3059_v47 }
 0x25a   : > { %3064 = vmatprep.subr.bf16.mxu0 %v3063_v33 }
 0x25b   : > { %3102 = vmatpush3.bf16.msra.mxu1 %v3099_v59 }
 0x25c   : > { %3104 = vmatprep.subr.bf16.mxu1 %v3103_v62 }
 0x25d   : > { %3066 = vmatpush3.bf16.msra.mxu0 %v3063_v33 }
 0x25f   : > { %3106 = vmatpush3.bf16.msra.mxu1 %v3103_v62 }
 0x28f   : > { %v2447_v45 = vpop.f32.mrb[0].mxu1 }
 0x290   : > { %v2448_v12 = vpop.f32.mrb[1].mxu1  ;;  %v2485_v36 = vpop.f32.mrb[4].mxu0 }
 0x291   : > { %v2449_v58 = vadd.f32 %v2448_v12, %v2447_v45  ;;  %v2486_v30 = vpop.f32.mrb[5].mxu0 }
 0x292   : > { %v2487_v46 = vadd.f32 %v2486_v30, %v2485_v36 }
 0x293   : > { %v822_v26 = vadd.f32 %v2449_v58, %v4491_v60  ;;  %v1996_v60 = vld [vmem:[#allocation7 + $0x60] sm:$0xff] }
 0x294   : > { %v3067_v39 = vpack.c.bf16 %v1997_v57, %v1996_v60 }
 0x295   : > { %v4721_v53 = vadd.f32 %v2487_v46, %v822_v26 }
 0x296   : > { %3068 = vmatprep.subr.bf16.mxu0 %v3067_v39 }
 0x297   : > { %3070 = vmatpush3.bf16.msra.mxu0 %v3067_v39  ;;  %v2368_v39 = vld [vmem:[%s4787_s3] ss:$0 sm:$0xff] }
 0x298   : > { %3072 = vmatprep.subr.bf16.mxu0 %v3071_v37 }
 0x29b   : > { %3074 = vmatpush3.bf16.msra.mxu0 %v3071_v37 }
 0x2bc   : > { %v2450_v48 = vpop.f32.mrb[2].mxu1  ;;  %v2488_v18 = vpop.f32.mrb[6].mxu0 }
 0x2bd   : > { %v2451_v50 = vpop.f32.mrb[3].mxu1  ;;  %v2489_v63 = vpop.f32.mrb[7].mxu0 }
 0x2be   : > { %v2452_v1 = vadd.f32 %v2451_v50, %v2450_v48  ;;  %v2490_v8 = vadd.f32 %v2489_v63, %v2488_v18  ;;  %v2370_v63 = vld [vmem:[%s4791_s7] ss:$0 sm:$0xff] }
 0x2c0   : > { %v827_v61 = vadd.f32 %v2452_v1, %v4539_v15  ;;  %v2523_v3 = vpop.f32.mrb[4].mxu1 }
 0x2c1   : > { %v2524_v34 = vpop.f32.mrb[5].mxu1 }
 0x2c2   : > { %v1133_v19 = vadd.f32 %v2490_v8, %v827_v61  ;;  %v2525_v7 = vadd.f32 %v2524_v34, %v2523_v3 }
 0x2c4   : > { %v1209_v31 = vadd.f32 %v2525_v7, %v4721_v53 }
 0x2c9   : > { %v2561_v28 = vpop.f32.mrb[8].mxu0 }
 0x2ca   : > { %v2526_v52 = vpop.f32.mrb[6].mxu1  ;;  %v2562_v44 = vpop.f32.mrb[9].mxu0 }
 0x2cb   : > { %v2527_v5 = vpop.f32.mrb[7].mxu1  ;;  %v2563_v6 = vadd.f32 %v2562_v44, %v2561_v28 }
 0x2cc   : > { %v2528_v20 = vadd.f32 %v2527_v5, %v2526_v52 }
 0x2cd   : > { %v1513_v25 = vadd.f32 %v2563_v6, %v1209_v31 }
 0x2ce   : > { %v1210_v15 = vadd.f32 %v2528_v20, %v1133_v19 }
 0x2e0   : > { %v2599_v45 = vpop.f32.mrb[8].mxu1 }
 0x2e1   : > { %v2600_v12 = vpop.f32.mrb[9].mxu1 }
 0x2e2   : > { %v2601_v58 = vadd.f32 %v2600_v12, %v2599_v45 }
 0x2e4   : > { %v1590_v36 = vadd.f32 %v2601_v58, %v1513_v25  ;;  %v2602_v30 = vpop.f32.mrb[10].mxu1 }
 0x2e5   : > { %v2603_v26 = vpop.f32.mrb[11].mxu1 }
 0x2e6   : > { %v2604_v46 = vadd.f32 %v2603_v26, %v2602_v30 }
 0x300   : > { %v2675_v11 = vpop.f32.mrb[12].mxu1 }
 0x301   : > { %v2676_v53 = vpop.f32.mrb[13].mxu1 }
 0x302   : > { %v2677_v54 = vadd.f32 %v2676_v53, %v2675_v11 }
 0x303   : > { %v2564_v10 = vpop.f32.mrb[10].mxu0 }
 0x304   : > { %v2565_v4 = vpop.f32.mrb[11].mxu0 }
 0x305   : > { %v2566_v41 = vadd.f32 %v2565_v4, %v2564_v10 }
 0x307   : > { %v1514_v47 = vadd.f32 %v2566_v41, %v1210_v15 }
 0x309   : > { %v1591_v0 = vadd.f32 %v2604_v46, %v1514_v47 }
 0x317   : > { %v2637_v16 = vpop.f32.mrb[12].mxu0 }
 0x318   : > { %v2638_v33 = vpop.f32.mrb[13].mxu0 }
 0x319   : > { %v2639_v60 = vadd.f32 %v2638_v33, %v2637_v16 }
 0x31b   : > { %v1894_v57 = vadd.f32 %v2639_v60, %v1590_v36 }
 0x31d   : > { %v1971_v9 = vadd.f32 %v2677_v54, %v1894_v57 }
 0x31f   : > { %v1980_v24 = vadd.f32 %v2368_v39, %v1971_v9 }
 0x321   : > { %v2640_v37 = vpop.f32.mrb[14].mxu0  ;;  %v1982_v29 = vmax.f32 %v1980_v24, 0.0 }
 0x322   : > { %v2641_v51 = vpop.f32.mrb[15].mxu0 }
 0x323   : > { %v2642_v40 = vadd.f32 %v2641_v51, %v2640_v37  ;;  %v2678_v21 = vpop.f32.mrb[14].mxu1  ;;  %2749 = vmatprep.mubr.f32.mxu0 %v1982_v29 }
 0x324   : > { %v2679_v13 = vpop.f32.mrb[15].mxu1 }
 0x325   : > { %v1895_v35 = vadd.f32 %v2642_v40, %v1591_v0  ;;  %v2680_v49 = vadd.f32 %v2679_v13, %v2678_v21 }
 0x327   : > { %v1972_v43 = vadd.f32 %v2680_v49, %v1895_v35 }
 0x329   : > { %v1981_v14 = vadd.f32 %v2368_v39, %v1972_v43 }
 0x32b   : > { %v1983_v42 = vmax.f32 %v1981_v14, 0.0 }
 0x32d   : > { %2750 = vmatmul.mubr.f32.vlgmr.msra.gmra.mrb[16].mxu0 %v1983_v42 }
 0x400   : > { %v2751_v55 = vpop.f32.mrb[16].mxu0 }
 0x401   : > { %v2079_v56 = vadd.f32 %v2751_v55, %v2369_v2  ;;  %v2073_v22 = vpop.f32.mrb[17].mxu0 }
 0x402   : > { %v2074_v48 = vadd.f32 %v2369_v2, %v2073_v22 }
 0x403   : > { %v2083_v50 = vmax.f32 %v2079_v56, 0.0 }
 0x404   : > { %v2082_v18 = vmax.f32 %v2074_v48, 0.0 }
 0x406   : > { %2784 = vmatprep.mubr.f32.mxu1 %v2082_v18 }
 0x407   : > { %2785 = vmatmul.mubr.f32.vlgmr.msra.gmra.mrb[16].mxu1 %v2083_v50 }
 0x4da   : > { %v2786_v1 = vpop.f32.mrb[16].mxu1 }
 0x4db   : > { %v2179_v8 = vadd.f32 %v2786_v1, %v2370_v63  ;;  %v2173_v38 = vpop.f32.mrb[17].mxu1 }
 0x4dc   : > { %v2174_v27 = vadd.f32 %v2370_v63, %v2173_v38 }
 0x4dd   : > { %v2183_v32 = vsub.f32 0.0, %v2179_v8 }
 0x4de   : > { %v2182_v61 = vsub.f32 0.0, %v2174_v27 }
 0x4df   : > { %v2186_v3 = vmul.f32 1.442695, %v2183_v32 }
 0x4e0   : > { %v2184_v34 = vmul.f32 1.442695, %v2182_v61 }
 0x4e1   : > { %3279 = vpow2.f32 %v2186_v3 }
 0x4e2   : > { %3281 = vpow2.f32 %v2184_v34 }
 0x4eb   : > { %v3280_v19 = vpop.eup %3279 }
 0x4ec   : > { %v3282_v7 = vpop.eup %3281  ;;  %v2189_v59 = vadd.f32 1.0, %v3280_v19 }
 0x4ed   : > { %v2188_v31 = vadd.f32 1.0, %v3282_v7 }
 0x4ee   : > { %3283 = vrcp.f32 %v2189_v59 }
 0x4ef   : > { %3285 = vrcp.f32 %v2188_v31 }
 0x4f8   : > { %v3284_v28 = vpop.eup %3283 }
 0x4f9   : > { %v3286_v52 = vpop.eup %3285  ;;  %2195 = vst [vmem:[%s358_s24 + $0x8] sm:$0xff] %v3284_v28 }
 0x4fa   : > { %2194 = vst [vmem:[%s358_s24] sm:$0xff] %v3286_v52 }
 0x4fb   : > { %3412 = shalt.err (!%p3409_p0)
}
 0x4fc   : > { %s3413_s14 = scalar_lea.hbm %s4739_s20, 256  ;;  %s3417_s13 = scalar_lea.hbm %s4792_s8, 512 }
 0x4fd   : > { %p3414_p10 = scmp.ne.s32.totalorder %s4739_s20, %s3413_s14  ;;  %p3418_p4 = scmp.lt.u32.totalorder %s4739_s20, %s4792_s8 }
 0x4fe   : > { %p3419_p12 = scmp.lt.u32.totalorder %s3417_s13, %s3413_s14  ;;  %p3421_p8 = scmp.lt.u32.totalorder %s3413_s14, %s4739_s20 }
 0x4ff   : > { %p3415_p2 = pnand %p3414_p10, %p4822_p11 }
 0x500   : > { %p3420_p7 = por %p3419_p12, %p3418_p4 }
 0x501   : > { %p3416_p3 = pneg %p3415_p2 }
 0x502   : > { %p3422_p13 = por %p3421_p8, %p3420_p7 }
 0x504   : > { %p3423_p1 = pnand %p3422_p13, %p3416_p3 }
 0x506   : > { %3426 = shalt.err (!%p3423_p1)
}
 0x507   : > { %s3493_s25 = smov 128   ;;  %s3494_s19 = smov 8  }
 0x508   : > { %3123 = dma.vmem_to_hbm [thread:$0]  (%p4822_p11), %s4741_s22, 256, %s4739_s20, %s4743_s18, %s3493_s25, %s3493_s25, %s3494_s19  }
 0x509 PF: > { %s4823_s24 = sld [smem:[#allocation18_spill]]  ;;  %p3150_p6 = scmp.ge.s32.totalorder %s3473_s30, 2 }
 0x50a   : > { %s2225_s29 = sand.u32 1, %s3461_s27  }
 0x50b   : > { %s2226_s17 = scalar_lea.sflag [#allocation4], %s2225_s29 }
 0x50f   : > { %p4824_p9 = scmp.ne.s32.totalorder %s4823_s24, 0 }
 0x511   : > { %p3139_p5 = pnand %p3150_p6, %p4824_p9 }
 0x513   : > { %3456 = dma.done.wait (!%p3139_p5), %s2226_s17, 256  }
 0x514   : > { %3458 = vsyncadd (!%p3139_p5), %s2226_s17, 4294967040  ;;  %s4825_s30 = sld [smem:[#allocation16_spill]]  ;;  %s4826_s26 = sld [smem:[#allocation15_spill]] }
 0x515   : > { %s4827_s29 = sld [smem:[#allocation17_spill]]  ;;  %s4828_s27 = smov %s3465_s28 }
 0x51a   : > { %p21_p0 = scmp.ge.s32.totalorder %s4825_s30, 4   ;;  %s4829_s28 = smov %s4826_s26 }
 0x51c   :  { %23 = sbr.rel (!%p21_p0) target bundleno = 6 (0x6), region = 110 }
 0x523   :  { %2231 = vsyncpa [#allocation3], 1 }
 0x524   :  { %2233 = vsyncpa [#allocation3 + $0x1], 1 }
 0x525   :  { %2234 = vsyncpa [#allocation6], 1 }
 0x526   :  { %2235 = vsyncpa [#allocation9], 1 }
 0x527   :  { %2236 = vsyncpa [#allocation4], 1 }
 0x528   :  { %2238 = vsyncpa [#allocation4 + $0x1], 1 }

</bundles_post_ra>
